<compile_context>
chip_gen: v7x
topology: tpu7x:2x2x1
jax: 0.10.0
libtpu: 0.0.40
codegen_flags: <defaults>
</compile_context>

<pallas_src>
import jax
import jax.numpy as jnp
from jax.experimental import pallas as pl
from jax.experimental.pallas import tpu as pltpu


# ----------------------------------------------------------------------------- kernel
def statnet_kernel(x_ref, h0_ref, wih_ref, bih_ref, whh_ref, bhn_ref,
                   fcw_ref, fcb_ref,
                   logits_ref, hN_ref,
                   gi_scr, hf_scr, hb_scr):
    S, TB, In = x_ref.shape
    G = hN_ref.shape[-1]          # 2*Hs = 128  (fused state width, lane-dense)
    Hs = G // 2

    # (1) One hoisted input projection for BOTH directions.  Columns are three
    #     128-lane gate slabs [r_f|r_b, z_f|z_b, n_f|n_b]; b_hr/b_hz are pre-folded
    #     into bih so only b_hn remains inside the recurrence.
    x_flat = x_ref[...].reshape(S * TB, In).astype(jnp.bfloat16)
    gi_scr[...] = (jnp.dot(x_flat, wih_ref[...], preferred_element_type=jnp.float32)
                   + bih_ref[...]).reshape(S, TB, 3 * G)

    whh = whh_ref[...]            # (G, 3G) bf16, block-diagonal per gate slab
    bhn = bhn_ref[...]            # (1, G)  f32
    lane3 = jax.lax.broadcasted_iota(jnp.int32, (TB, 3 * G), 1)
    fwd3 = (lane3 % G) < Hs       # forward lanes of every 128-lane slab

    # (2) Fused recurrence: a single bf16 (TB,128)@(128,384) matmul per step drives
    #     both directions.  Forward consumes time i, backward consumes time S-1-i;
    #     the gi lane-select does not depend on h, so it pipelines under the matmul.
    def step(i, h):
        g = jnp.where(fwd3, gi_scr[i], gi_scr[S - 1 - i])
        gh = jnp.dot(h.astype(jnp.bfloat16), whh,
                     preferred_element_type=jnp.float32)
        r = jax.nn.sigmoid(g[:, :G] + gh[:, :G])
        z = jax.nn.sigmoid(g[:, G:2 * G] + gh[:, G:2 * G])
        n = jnp.tanh(g[:, 2 * G:] + r * (gh[:, 2 * G:] + bhn))
        h = (1.0 - z) * n + z * h
        hf_scr[i] = h              # forward half of this row is valid at time i
        hb_scr[S - 1 - i] = h      # backward half of this row is valid at time S-1-i
        return h

    h_last = jax.lax.fori_loop(0, S, step, h0_ref[...], unroll=True)
    hN_ref[...] = h_last           # [fwd final | bwd final]; split in the wrapper

    # (3) Classifier: one K=128 matmul over all S*TB rows.  Recombine the two time
    #     orderings with a single vectorized lane-select (no reverse op needed).
    lane1 = jax.lax.broadcasted_iota(jnp.int32, (S * TB, G), 1)
    comb = jnp.where(lane1 < Hs,
                     hf_scr[...].reshape(S * TB, G),
                     hb_scr[...].reshape(S * TB, G)).astype(jnp.bfloat16)
    logits_ref[...] = (jnp.dot(comb, fcw_ref[...], preferred_element_type=jnp.float32)
                       + fcb_ref[...]).reshape(S, TB, -1)


# ----------------------------------------------------------------------------- wrapper
def _pick_batch_tile(B):
    """TB per generation: one big block on single-TC chips (v5e/v6e) so the hoisted
    projection gets M=S*B rows; two blocks on dual-TC v7x so megacore sharding via
    dimension_semantics=('parallel',) gives every TensorCore work."""
    kind = ""
    try:
        kind = jax.devices()[0].device_kind.lower()
    except Exception:
        pass
    dual_tc = ("v7" in kind) or ("7x" in kind)
    if dual_tc and B % 16 == 0:
        return B // 2
    return B


def run_statnet(params, x, h0, num_classes, batch_tile=None):
    S, B, In = x.shape
    G = params['whh'].shape[0]          # 2 * stat_hidden
    Hs = G // 2
    C_pad = params['fcw'].shape[1]
    TB = _pick_batch_tile(B) if batch_tile is None else min(batch_tile, B)
    assert B % TB == 0, "batch must be divisible by the batch tile"
    grid = (B // TB,)

    # Layout plumbing kept in the wrapper: fused initial state [h0_fwd | h0_bwd].
    h0_cat = jnp.concatenate([h0[0], h0[1]], axis=-1)          # (B, 2Hs)

    weights = [params[k] for k in ('wih', 'bih', 'whh', 'bhn', 'fcw', 'fcb')]

    in_specs = ([pl.BlockSpec((S, TB, In), lambda b: (0, b, 0)),
                 pl.BlockSpec((TB, G), lambda b: (b, 0))]
                + [pl.BlockSpec(w.shape, lambda b: (0, 0)) for w in weights])

    out_shape = (jax.ShapeDtypeStruct((S, B, C_pad), jnp.float32),
                 jax.ShapeDtypeStruct((B, G), jnp.float32))
    out_specs = (pl.BlockSpec((S, TB, C_pad), lambda b: (0, b, 0)),
                 pl.BlockSpec((TB, G), lambda b: (b, 0)))

    scratch_shapes = [pltpu.VMEM((S, TB, 3 * G), jnp.float32),   # fused input proj
                      pltpu.VMEM((S, TB, G), jnp.float32),       # h_cat stored at time i
                      pltpu.VMEM((S, TB, G), jnp.float32)]       # h_cat stored at time S-1-i

    logits_sbc, hN_cat = pl.pallas_call(
        statnet_kernel,
        out_shape=out_shape,
        grid_spec=pltpu.PrefetchScalarGridSpec(
            num_scalar_prefetch=0, grid=grid,
            in_specs=in_specs, out_specs=out_specs,
            scratch_shapes=scratch_shapes),
        compiler_params=pltpu.CompilerParams(
            dimension_semantics=("parallel",),
            vmem_limit_bytes=32 * 1024 * 1024),
    )(x, h0_cat, *weights)

    # torch cat order is row = b*S + s; sigmoid applied after slicing off padded lanes
    # (fuses with the transpose/slice in XLA, halves padded f32 kernel writeback).
    logits = jnp.transpose(logits_sbc, (1, 0, 2)).reshape(B * S, C_pad)[:, :num_classes]
    probs = jax.nn.sigmoid(logits)
    h_out = jnp.stack([hN_cat[:, :Hs], hN_cat[:, Hs:]], axis=0)  # (2, B, Hs)
    return logits, probs, h_out


# ----------------------------------------------------------------------------- params
def init_params(key, stat_hidden_size, word_hidden_size, num_classes, c_pad=128):
    Hs = stat_hidden_size
    In = 2 * word_hidden_size
    G = 2 * Hs
    keys = iter(jax.random.split(key, 40))

    def nrm(shape, std):
        return std * jax.random.normal(next(keys), shape, jnp.float32)

    # Raw per-direction / per-gate pieces, already transposed for x @ W / h @ W.
    # (Mapping from a real torch checkpoint: weight_ih_l0 is (3Hs, In) stacked [r;z;n];
    #  take W_ig = weight_ih[g*Hs:(g+1)*Hs].T, same for hh / biases / _reverse.)
    raw = {'f': {}, 'b': {}}
    for d in ('f', 'b'):
        for g in ('r', 'z', 'n'):
            raw[d]['wi_' + g] = nrm((In, Hs), 0.1)
            raw[d]['wh_' + g] = nrm((Hs, Hs), 0.1)
            raw[d]['bi_' + g] = nrm((Hs,), 0.1)
            raw[d]['bh_' + g] = nrm((Hs,), 0.1)
    raw['fc_w'] = nrm((G, num_classes), 0.05)   # torch fc.weight.T, rows = [fwd | bwd]
    raw['fc_b'] = nrm((num_classes,), 0.05)

    p = {}
    # Fused input projection, columns = three 128-lane slabs [r_f|r_b, z_f|z_b, n_f|n_b].
    p['wih'] = jnp.concatenate(
        [raw['f']['wi_r'], raw['b']['wi_r'],
         raw['f']['wi_z'], raw['b']['wi_z'],
         raw['f']['wi_n'], raw['b']['wi_n']], axis=1).astype(jnp.bfloat16)
    # b_hr / b_hz folded into the hoisted bias; b_hn kept for inside r*(gh_n + b_hn).
    p['bih'] = jnp.concatenate(
        [raw['f']['bi_r'] + raw['f']['bh_r'], raw['b']['bi_r'] + raw['b']['bh_r'],
         raw['f']['bi_z'] + raw['f']['bh_z'], raw['b']['bi_z'] + raw['b']['bh_z'],
         raw['f']['bi_n'], raw['b']['bi_n']])[None, :]
    p['bhn'] = jnp.concatenate([raw['f']['bh_n'], raw['b']['bh_n']])[None, :]

    # Block-diagonal recurrent weight: h_cat=[h_f|h_b] @ whh gives all six gate blocks
    # in one (2Hs, 6Hs) bf16 matmul.
    z64 = jnp.zeros((Hs, Hs), jnp.float32)

    def bd(g):
        top = jnp.concatenate([raw['f']['wh_' + g], z64], axis=1)
        bot = jnp.concatenate([z64, raw['b']['wh_' + g]], axis=1)
        return jnp.concatenate([top, bot], axis=0)             # (2Hs, 2Hs)

    p['whh'] = jnp.concatenate([bd('r'), bd('z'), bd('n')], axis=1).astype(jnp.bfloat16)

    # Classifier, zero-padded to a lane-dense C_pad (padded logits are 0, sliced off).
    p['fcw'] = jnp.pad(raw['fc_w'], ((0, 0), (0, c_pad - num_classes))).astype(jnp.bfloat16)
    p['fcb'] = jnp.pad(raw['fc_b'], (0, c_pad - num_classes))[None, :]

    # stat_weight / stat_bias / context_weight exist on the PyTorch module but are
    # never used by StatNet.forward, so they are created for fidelity only.
    p['stat_weight'] = nrm((G, G), 0.05)
    p['stat_bias'] = jnp.zeros((1, G), jnp.float32)
    p['context_weight'] = nrm((G, 1), 0.05)
    return p, raw


# ----------------------------------------------------------------------------- reference
def _gru_dir_ref(x, h0, w, reverse):
    S = x.shape[0]
    order = range(S - 1, -1, -1) if reverse else range(S)
    outs = [None] * S
    h = h0
    for s in order:
        xt = x[s]
        r = jax.nn.sigmoid(xt @ w['wi_r'] + w['bi_r'] + h @ w['wh_r'] + w['bh_r'])
        z = jax.nn.sigmoid(xt @ w['wi_z'] + w['bi_z'] + h @ w['wh_z'] + w['bh_z'])
        n = jnp.tanh(xt @ w['wi_n'] + w['bi_n'] + r * (h @ w['wh_n'] + w['bh_n']))
        h = (1.0 - z) * n + z * h
        outs[s] = h
    return jnp.stack(outs, 0), h


def statnet_reference(raw, x, h0):
    out_f, h_f = _gru_dir_ref(x, h0[0], raw['f'], reverse=False)
    out_b, h_b = _gru_dir_ref(x, h0[1], raw['b'], reverse=True)
    f_output = jnp.concatenate([out_f, out_b], axis=-1)         # (S, B, 2Hs)
    S, B, _ = f_output.shape
    flat = jnp.transpose(f_output, (1, 0, 2)).reshape(B * S, -1)
    logits = flat @ raw['fc_w'] + raw['fc_b']
    return logits, jax.nn.sigmoid(logits), jnp.stack([h_f, h_b], axis=0)


# ----------------------------------------------------------------------------- main
if __name__ == "__main__":
    key = jax.random.PRNGKey(0)
    S, B = 16, 16                                        # statements per doc, batch
    stat_hidden, word_hidden, num_classes = 64, 64, 4    # 2*H = 128 (lane-dense)

    pk, xk, hk = jax.random.split(key, 3)
    params, raw = init_params(pk, stat_hidden, word_hidden, num_classes)

    x = jax.random.normal(xk, (S, B, 2 * word_hidden), jnp.float32)   # time-major GRU input
    h0 = 0.1 * jax.random.normal(hk, (2, B, stat_hidden), jnp.float32)

    logits, probs, h_out = run_statnet(params, x, h0, num_classes)
    logits, probs, h_out = jax.block_until_ready((logits, probs, h_out))

    assert logits.shape == (B * S, num_classes)
    assert probs.shape == (B * S, num_classes)
    assert h_out.shape == (2, B, stat_hidden)

    # Pure-JAX f32 reference with un-fused weights (loose tol: bf16 MXU inputs).
    ref_logits, ref_probs, ref_h = statnet_reference(raw, x, h0)
    assert float(jnp.max(jnp.abs(logits - ref_logits))) < 8e-2
    assert float(jnp.max(jnp.abs(probs - ref_probs))) < 3e-2
    assert float(jnp.max(jnp.abs(h_out - ref_h))) < 5e-2

    print("KERNEL_OK")
</pallas_src>

<mosaic_0001>
module attributes {stable_mosaic.version = 11 : i64} {
  func.func @statnet_kernel(%arg0: i32, %arg1: memref<16x16x128xf32, #tpu.memory_space<vmem>>, %arg2: memref<16x128xf32, #tpu.memory_space<vmem>>, %arg3: memref<128x384xbf16, #tpu.memory_space<vmem>>, %arg4: memref<1x384xf32, #tpu.memory_space<vmem>>, %arg5: memref<128x384xbf16, #tpu.memory_space<vmem>>, %arg6: memref<1x128xf32, #tpu.memory_space<vmem>>, %arg7: memref<128x128xbf16, #tpu.memory_space<vmem>>, %arg8: memref<1x128xf32, #tpu.memory_space<vmem>>, %arg9: memref<16x16x128xf32, #tpu.memory_space<vmem>>, %arg10: memref<16x128xf32, #tpu.memory_space<vmem>>, %arg11: memref<16x16x384xf32, #tpu.memory_space<vmem>>, %arg12: memref<16x16x128xf32, #tpu.memory_space<vmem>>, %arg13: memref<16x16x128xf32, #tpu.memory_space<vmem>>) attributes {dimension_semantics = [#tpu.dimension_semantics<parallel>], iteration_bounds = array<i64: 1>, scalar_prefetch = 0 : i64, scratch_operands = 3 : i64, tpu.core_type = #tpu.core_type<tc>, window_params = [{transform_indices = @transform_0, window_bounds = array<i64: 16, 16, 128>}, {transform_indices = @transform_1, window_bounds = array<i64: 16, 128>}, {pipeline_mode = #tpu.pipeline_mode<synchronous>, transform_indices = @transform_2, window_bounds = array<i64: 128, 384>}, {pipeline_mode = #tpu.pipeline_mode<synchronous>, transform_indices = @transform_3, window_bounds = array<i64: 1, 384>}, {pipeline_mode = #tpu.pipeline_mode<synchronous>, transform_indices = @transform_4, window_bounds = array<i64: 128, 384>}, {pipeline_mode = #tpu.pipeline_mode<synchronous>, transform_indices = @transform_5, window_bounds = array<i64: 1, 128>}, {pipeline_mode = #tpu.pipeline_mode<synchronous>, transform_indices = @transform_6, window_bounds = array<i64: 128, 128>}, {pipeline_mode = #tpu.pipeline_mode<synchronous>, transform_indices = @transform_7, window_bounds = array<i64: 1, 128>}, {transform_indices = @transform_8, window_bounds = array<i64: 16, 16, 128>}, {transform_indices = @transform_9, window_bounds = array<i64: 16, 128>}]} {
    %c0 = arith.constant 0 : index
    %c0_0 = arith.constant 0 : index
    %c0_1 = arith.constant 0 : index
    %0 = vector.load %arg1[%c0, %c0_0, %c0_1] : memref<16x16x128xf32, #tpu.memory_space<vmem>>, vector<16x16x128xf32>
    %1 = vector.shape_cast %0 : vector<16x16x128xf32> to vector<256x128xf32>
    %2 = arith.truncf %1 : vector<256x128xf32> to vector<256x128xbf16>
    %c0_2 = arith.constant 0 : index
    %c0_3 = arith.constant 0 : index
    %3 = vector.load %arg3[%c0_2, %c0_3] : memref<128x384xbf16, #tpu.memory_space<vmem>>, vector<128x384xbf16>
    %cst = arith.constant dense<0.000000e+00> : vector<256x384xf32>
    %4 = tpu.matmul %2, %3, %cst {dimension_numbers = #tpu.dot_dimension_numbers<[1], [0], [0], [1], [0, 0, 1, 1], [], []>} : vector<256x128xbf16>, vector<128x384xbf16>, vector<256x384xf32> -> vector<256x384xf32>
    %c0_4 = arith.constant 0 : index
    %c0_5 = arith.constant 0 : index
    %5 = vector.load %arg4[%c0_4, %c0_5] : memref<1x384xf32, #tpu.memory_space<vmem>>, vector<1x384xf32>
    %6 = vector.broadcast %5 : vector<1x384xf32> to vector<256x384xf32>
    %7 = arith.addf %4, %6 : vector<256x384xf32>
    %8 = vector.shape_cast %7 : vector<256x384xf32> to vector<16x16x384xf32>
    %c0_6 = arith.constant 0 : index
    %c0_7 = arith.constant 0 : index
    %c0_8 = arith.constant 0 : index
    %9 = vector.load %arg11[%c0_6, %c0_7, %c0_8] : memref<16x16x384xf32, #tpu.memory_space<vmem>>, vector<16x16x384xf32>
    tpu.vector_store %arg11[%c0_6, %c0_7, %c0_8], %8 {strides = array<i32>} : memref<16x16x384xf32, #tpu.memory_space<vmem>>, vector<16x16x384xf32>,
    %c0_9 = arith.constant 0 : index
    %c0_10 = arith.constant 0 : index
    %10 = vector.load %arg5[%c0_9, %c0_10] : memref<128x384xbf16, #tpu.memory_space<vmem>>, vector<128x384xbf16>
    %c0_11 = arith.constant 0 : index
    %c0_12 = arith.constant 0 : index
    %11 = vector.load %arg6[%c0_11, %c0_12] : memref<1x128xf32, #tpu.memory_space<vmem>>, vector<1x128xf32>
    %12 = tpu.iota {dimensions = array<i32: 1>} : vector<16x384xi32>
    %c128_i32 = arith.constant 128 : i32
    %c0_i32 = arith.constant 0 : i32
    %13 = arith.cmpi eq, %c128_i32, %c0_i32 : i32
    %c1_i32 = arith.constant 1 : i32
    %14 = arith.select %13, %c1_i32, %c128_i32 : i32
    %15 = vector.broadcast %14 : i32 to vector<16x384xi32>
    %16 = arith.remsi %12, %15 : vector<16x384xi32>
    %c0_i32_13 = arith.constant 0 : i32
    %17 = vector.broadcast %c0_i32_13 : i32 to vector<16x384xi32>
    %18 = arith.cmpi ne, %16, %17 : vector<16x384xi32>
    %c0_i32_14 = arith.constant 0 : i32
    %19 = vector.broadcast %c0_i32_14 : i32 to vector<16x384xi32>
    %20 = arith.cmpi slt, %16, %19 : vector<16x384xi32>
    %c0_i32_15 = arith.constant 0 : i32
    %21 = arith.cmpi slt, %14, %c0_i32_15 : i32
    %22 = vector.broadcast %21 : i1 to vector<16x384xi1>
    %23 = vector.broadcast %22 : vector<16x384xi1> to vector<16x384xi1>
    %24 = arith.xori %20, %23 : vector<16x384xi1>
    %25 = arith.andi %24, %18 : vector<16x384xi1>
    %26 = vector.broadcast %14 : i32 to vector<16x384xi32>
    %27 = arith.addi %16, %26 : vector<16x384xi32>
    %28 = arith.select %25, %27, %16 : vector<16x384xi1>, vector<16x384xi32>
    %c64_i32 = arith.constant 64 : i32
    %29 = vector.broadcast %c64_i32 : i32 to vector<16x384xi32>
    %30 = arith.cmpi slt, %28, %29 : vector<16x384xi32>
    %c0_16 = arith.constant 0 : index
    %c0_17 = arith.constant 0 : index
    %31 = vector.load %arg2[%c0_16, %c0_17] : memref<16x128xf32, #tpu.memory_space<vmem>>, vector<16x128xf32>
    %c0_i32_18 = arith.constant 0 : i32
    %32 = arith.index_cast %c0_i32_18 : i32 to index
    %c0_19 = arith.constant 0 : index
    %c0_20 = arith.constant 0 : index
    %33 = vector.load %arg11[%32, %c0_19, %c0_20] : memref<16x16x384xf32, #tpu.memory_space<vmem>>, vector<1x16x384xf32>
    %34 = vector.shape_cast %33 : vector<1x16x384xf32> to vector<16x384xf32>
    %c15_i32 = arith.constant 15 : i32
    %35 = arith.subi %c15_i32, %c0_i32_18 : i32
    %36 = arith.index_cast %35 : i32 to index
    %c0_21 = arith.constant 0 : index
    %c0_22 = arith.constant 0 : index
    %37 = vector.load %arg11[%36, %c0_21, %c0_22] : memref<16x16x384xf32, #tpu.memory_space<vmem>>, vector<1x16x384xf32>
    %38 = vector.shape_cast %37 : vector<1x16x384xf32> to vector<16x384xf32>
    %39 = arith.select %30, %34, %38 : vector<16x384xi1>, vector<16x384xf32>
    %40 = arith.truncf %31 : vector<16x128xf32> to vector<16x128xbf16>
    %cst_23 = arith.constant dense<0.000000e+00> : vector<16x384xf32>
    %41 = tpu.matmul %40, %10, %cst_23 {dimension_numbers = #tpu.dot_dimension_numbers<[1], [0], [0], [1], [0, 0, 1, 1], [], []>} : vector<16x128xbf16>, vector<128x384xbf16>, vector<16x384xf32> -> vector<16x384xf32>
    %42 = vector.extract_strided_slice %39 {offsets = [0, 0], sizes = [16, 128], strides = [1, 1]} : vector<16x384xf32> to vector<16x128xf32>
    %43 = vector.extract_strided_slice %41 {offsets = [0, 0], sizes = [16, 128], strides = [1, 1]} : vector<16x384xf32> to vector<16x128xf32>
    %44 = arith.addf %42, %43 : vector<16x128xf32>
    %45 = arith.negf %44 : vector<16x128xf32>
    %46 = math.exp %45 : vector<16x128xf32>
    %cst_24 = arith.constant 1.000000e+00 : f32
    %47 = vector.broadcast %cst_24 : f32 to vector<16x128xf32>
    %48 = arith.addf %47, %46 : vector<16x128xf32>
    %49 = arith.divf %47, %48 : vector<16x128xf32>
    %50 = vector.extract_strided_slice %39 {offsets = [0, 128], sizes = [16, 128], strides = [1, 1]} : vector<16x384xf32> to vector<16x128xf32>
    %51 = vector.extract_strided_slice %41 {offsets = [0, 128], sizes = [16, 128], strides = [1, 1]} : vector<16x384xf32> to vector<16x128xf32>
    %52 = arith.addf %50, %51 : vector<16x128xf32>
    %53 = arith.negf %52 : vector<16x128xf32>
    %54 = math.exp %53 : vector<16x128xf32>
    %cst_25 = arith.constant 1.000000e+00 : f32
    %55 = vector.broadcast %cst_25 : f32 to vector<16x128xf32>
    %56 = arith.addf %55, %54 : vector<16x128xf32>
    %57 = arith.divf %55, %56 : vector<16x128xf32>
    %58 = vector.extract_strided_slice %39 {offsets = [0, 256], sizes = [16, 128], strides = [1, 1]} : vector<16x384xf32> to vector<16x128xf32>
    %59 = vector.extract_strided_slice %41 {offsets = [0, 256], sizes = [16, 128], strides = [1, 1]} : vector<16x384xf32> to vector<16x128xf32>
    %60 = vector.broadcast %11 : vector<1x128xf32> to vector<16x128xf32>
    %61 = arith.addf %59, %60 : vector<16x128xf32>
    %62 = arith.mulf %49, %61 : vector<16x128xf32>
    %63 = arith.addf %58, %62 : vector<16x128xf32>
    %64 = math.tanh %63 : vector<16x128xf32>
    %cst_26 = arith.constant 1.000000e+00 : f32
    %65 = vector.broadcast %cst_26 : f32 to vector<16x128xf32>
    %66 = arith.subf %65, %57 : vector<16x128xf32>
    %67 = arith.mulf %66, %64 : vector<16x128xf32>
    %68 = arith.mulf %57, %31 : vector<16x128xf32>
    %69 = arith.addf %67, %68 : vector<16x128xf32>
    %70 = arith.index_cast %c0_i32_18 : i32 to index
    %c0_27 = arith.constant 0 : index
    %c0_28 = arith.constant 0 : index
    %71 = vector.load %arg12[%70, %c0_27, %c0_28] : memref<16x16x128xf32, #tpu.memory_space<vmem>>, vector<1x16x128xf32>
    %72 = vector.shape_cast %71 : vector<1x16x128xf32> to vector<16x128xf32>
    %73 = vector.shape_cast %69 : vector<16x128xf32> to vector<1x16x128xf32>
    tpu.vector_store %arg12[%70, %c0_27, %c0_28], %73 {strides = array<i32>} : memref<16x16x128xf32, #tpu.memory_space<vmem>>, vector<1x16x128xf32>,
    %c15_i32_29 = arith.constant 15 : i32
    %74 = arith.subi %c15_i32_29, %c0_i32_18 : i32
    %75 = arith.index_cast %74 : i32 to index
    %c0_30 = arith.constant 0 : index
    %c0_31 = arith.constant 0 : index
    %76 = vector.load %arg13[%75, %c0_30, %c0_31] : memref<16x16x128xf32, #tpu.memory_space<vmem>>, vector<1x16x128xf32>
    %77 = vector.shape_cast %76 : vector<1x16x128xf32> to vector<16x128xf32>
    %78 = vector.shape_cast %69 : vector<16x128xf32> to vector<1x16x128xf32>
    tpu.vector_store %arg13[%75, %c0_30, %c0_31], %78 {strides = array<i32>} : memref<16x16x128xf32, #tpu.memory_space<vmem>>, vector<1x16x128xf32>,
    %c1_i32_32 = arith.constant 1 : i32
    %79 = arith.index_cast %c1_i32_32 : i32 to index
    %c0_33 = arith.constant 0 : index
    %c0_34 = arith.constant 0 : index
    %80 = vector.load %arg11[%79, %c0_33, %c0_34] : memref<16x16x384xf32, #tpu.memory_space<vmem>>, vector<1x16x384xf32>
    %81 = vector.shape_cast %80 : vector<1x16x384xf32> to vector<16x384xf32>
    %c15_i32_35 = arith.constant 15 : i32
    %82 = arith.subi %c15_i32_35, %c1_i32_32 : i32
    %83 = arith.index_cast %82 : i32 to index
    %c0_36 = arith.constant 0 : index
    %c0_37 = arith.constant 0 : index
    %84 = vector.load %arg11[%83, %c0_36, %c0_37] : memref<16x16x384xf32, #tpu.memory_space<vmem>>, vector<1x16x384xf32>
    %85 = vector.shape_cast %84 : vector<1x16x384xf32> to vector<16x384xf32>
    %86 = arith.select %30, %81, %85 : vector<16x384xi1>, vector<16x384xf32>
    %87 = arith.truncf %69 : vector<16x128xf32> to vector<16x128xbf16>
    %cst_38 = arith.constant dense<0.000000e+00> : vector<16x384xf32>
    %88 = tpu.matmul %87, %10, %cst_38 {dimension_numbers = #tpu.dot_dimension_numbers<[1], [0], [0], [1], [0, 0, 1, 1], [], []>} : vector<16x128xbf16>, vector<128x384xbf16>, vector<16x384xf32> -> vector<16x384xf32>
    %89 = vector.extract_strided_slice %86 {offsets = [0, 0], sizes = [16, 128], strides = [1, 1]} : vector<16x384xf32> to vector<16x128xf32>
    %90 = vector.extract_strided_slice %88 {offsets = [0, 0], sizes = [16, 128], strides = [1, 1]} : vector<16x384xf32> to vector<16x128xf32>
    %91 = arith.addf %89, %90 : vector<16x128xf32>
    %92 = arith.negf %91 : vector<16x128xf32>
    %93 = math.exp %92 : vector<16x128xf32>
    %cst_39 = arith.constant 1.000000e+00 : f32
    %94 = vector.broadcast %cst_39 : f32 to vector<16x128xf32>
    %95 = arith.addf %94, %93 : vector<16x128xf32>
    %96 = arith.divf %94, %95 : vector<16x128xf32>
    %97 = vector.extract_strided_slice %86 {offsets = [0, 128], sizes = [16, 128], strides = [1, 1]} : vector<16x384xf32> to vector<16x128xf32>
    %98 = vector.extract_strided_slice %88 {offsets = [0, 128], sizes = [16, 128], strides = [1, 1]} : vector<16x384xf32> to vector<16x128xf32>
    %99 = arith.addf %97, %98 : vector<16x128xf32>
    %100 = arith.negf %99 : vector<16x128xf32>
    %101 = math.exp %100 : vector<16x128xf32>
    %cst_40 = arith.constant 1.000000e+00 : f32
    %102 = vector.broadcast %cst_40 : f32 to vector<16x128xf32>
    %103 = arith.addf %102, %101 : vector<16x128xf32>
    %104 = arith.divf %102, %103 : vector<16x128xf32>
    %105 = vector.extract_strided_slice %86 {offsets = [0, 256], sizes = [16, 128], strides = [1, 1]} : vector<16x384xf32> to vector<16x128xf32>
    %106 = vector.extract_strided_slice %88 {offsets = [0, 256], sizes = [16, 128], strides = [1, 1]} : vector<16x384xf32> to vector<16x128xf32>
    %107 = vector.broadcast %11 : vector<1x128xf32> to vector<16x128xf32>
    %108 = arith.addf %106, %107 : vector<16x128xf32>
    %109 = arith.mulf %96, %108 : vector<16x128xf32>
    %110 = arith.addf %105, %109 : vector<16x128xf32>
    %111 = math.tanh %110 : vector<16x128xf32>
    %cst_41 = arith.constant 1.000000e+00 : f32
    %112 = vector.broadcast %cst_41 : f32 to vector<16x128xf32>
    %113 = arith.subf %112, %104 : vector<16x128xf32>
    %114 = arith.mulf %113, %111 : vector<16x128xf32>
    %115 = arith.mulf %104, %69 : vector<16x128xf32>
    %116 = arith.addf %114, %115 : vector<16x128xf32>
    %117 = arith.index_cast %c1_i32_32 : i32 to index
    %c0_42 = arith.constant 0 : index
    %c0_43 = arith.constant 0 : index
    %118 = vector.load %arg12[%117, %c0_42, %c0_43] : memref<16x16x128xf32, #tpu.memory_space<vmem>>, vector<1x16x128xf32>
    %119 = vector.shape_cast %118 : vector<1x16x128xf32> to vector<16x128xf32>
    %120 = vector.shape_cast %116 : vector<16x128xf32> to vector<1x16x128xf32>
    tpu.vector_store %arg12[%117, %c0_42, %c0_43], %120 {strides = array<i32>} : memref<16x16x128xf32, #tpu.memory_space<vmem>>, vector<1x16x128xf32>,
    %c15_i32_44 = arith.constant 15 : i32
    %121 = arith.subi %c15_i32_44, %c1_i32_32 : i32
    %122 = arith.index_cast %121 : i32 to index
    %c0_45 = arith.constant 0 : index
    %c0_46 = arith.constant 0 : index
    %123 = vector.load %arg13[%122, %c0_45, %c0_46] : memref<16x16x128xf32, #tpu.memory_space<vmem>>, vector<1x16x128xf32>
    %124 = vector.shape_cast %123 : vector<1x16x128xf32> to vector<16x128xf32>
    %125 = vector.shape_cast %116 : vector<16x128xf32> to vector<1x16x128xf32>
    tpu.vector_store %arg13[%122, %c0_45, %c0_46], %125 {strides = array<i32>} : memref<16x16x128xf32, #tpu.memory_space<vmem>>, vector<1x16x128xf32>,
    %c2_i32 = arith.constant 2 : i32
    %126 = arith.index_cast %c2_i32 : i32 to index
    %c0_47 = arith.constant 0 : index
    %c0_48 = arith.constant 0 : index
    %127 = vector.load %arg11[%126, %c0_47, %c0_48] : memref<16x16x384xf32, #tpu.memory_space<vmem>>, vector<1x16x384xf32>
    %128 = vector.shape_cast %127 : vector<1x16x384xf32> to vector<16x384xf32>
    %c15_i32_49 = arith.constant 15 : i32
    %129 = arith.subi %c15_i32_49, %c2_i32 : i32
    %130 = arith.index_cast %129 : i32 to index
    %c0_50 = arith.constant 0 : index
    %c0_51 = arith.constant 0 : index
    %131 = vector.load %arg11[%130, %c0_50, %c0_51] : memref<16x16x384xf32, #tpu.memory_space<vmem>>, vector<1x16x384xf32>
    %132 = vector.shape_cast %131 : vector<1x16x384xf32> to vector<16x384xf32>
    %133 = arith.select %30, %128, %132 : vector<16x384xi1>, vector<16x384xf32>
    %134 = arith.truncf %116 : vector<16x128xf32> to vector<16x128xbf16>
    %cst_52 = arith.constant dense<0.000000e+00> : vector<16x384xf32>
    %135 = tpu.matmul %134, %10, %cst_52 {dimension_numbers = #tpu.dot_dimension_numbers<[1], [0], [0], [1], [0, 0, 1, 1], [], []>} : vector<16x128xbf16>, vector<128x384xbf16>, vector<16x384xf32> -> vector<16x384xf32>
    %136 = vector.extract_strided_slice %133 {offsets = [0, 0], sizes = [16, 128], strides = [1, 1]} : vector<16x384xf32> to vector<16x128xf32>
    %137 = vector.extract_strided_slice %135 {offsets = [0, 0], sizes = [16, 128], strides = [1, 1]} : vector<16x384xf32> to vector<16x128xf32>
    %138 = arith.addf %136, %137 : vector<16x128xf32>
    %139 = arith.negf %138 : vector<16x128xf32>
    %140 = math.exp %139 : vector<16x128xf32>
    %cst_53 = arith.constant 1.000000e+00 : f32
    %141 = vector.broadcast %cst_53 : f32 to vector<16x128xf32>
    %142 = arith.addf %141, %140 : vector<16x128xf32>
    %143 = arith.divf %141, %142 : vector<16x128xf32>
    %144 = vector.extract_strided_slice %133 {offsets = [0, 128], sizes = [16, 128], strides = [1, 1]} : vector<16x384xf32> to vector<16x128xf32>
    %145 = vector.extract_strided_slice %135 {offsets = [0, 128], sizes = [16, 128], strides = [1, 1]} : vector<16x384xf32> to vector<16x128xf32>
    %146 = arith.addf %144, %145 : vector<16x128xf32>
    %147 = arith.negf %146 : vector<16x128xf32>
    %148 = math.exp %147 : vector<16x128xf32>
    %cst_54 = arith.constant 1.000000e+00 : f32
    %149 = vector.broadcast %cst_54 : f32 to vector<16x128xf32>
    %150 = arith.addf %149, %148 : vector<16x128xf32>
    %151 = arith.divf %149, %150 : vector<16x128xf32>
    %152 = vector.extract_strided_slice %133 {offsets = [0, 256], sizes = [16, 128], strides = [1, 1]} : vector<16x384xf32> to vector<16x128xf32>
    %153 = vector.extract_strided_slice %135 {offsets = [0, 256], sizes = [16, 128], strides = [1, 1]} : vector<16x384xf32> to vector<16x128xf32>
    %154 = vector.broadcast %11 : vector<1x128xf32> to vector<16x128xf32>
    %155 = arith.addf %153, %154 : vector<16x128xf32>
    %156 = arith.mulf %143, %155 : vector<16x128xf32>
    %157 = arith.addf %152, %156 : vector<16x128xf32>
    %158 = math.tanh %157 : vector<16x128xf32>
    %cst_55 = arith.constant 1.000000e+00 : f32
    %159 = vector.broadcast %cst_55 : f32 to vector<16x128xf32>
    %160 = arith.subf %159, %151 : vector<16x128xf32>
    %161 = arith.mulf %160, %158 : vector<16x128xf32>
    %162 = arith.mulf %151, %116 : vector<16x128xf32>
    %163 = arith.addf %161, %162 : vector<16x128xf32>
    %164 = arith.index_cast %c2_i32 : i32 to index
    %c0_56 = arith.constant 0 : index
    %c0_57 = arith.constant 0 : index
    %165 = vector.load %arg12[%164, %c0_56, %c0_57] : memref<16x16x128xf32, #tpu.memory_space<vmem>>, vector<1x16x128xf32>
    %166 = vector.shape_cast %165 : vector<1x16x128xf32> to vector<16x128xf32>
    %167 = vector.shape_cast %163 : vector<16x128xf32> to vector<1x16x128xf32>
    tpu.vector_store %arg12[%164, %c0_56, %c0_57], %167 {strides = array<i32>} : memref<16x16x128xf32, #tpu.memory_space<vmem>>, vector<1x16x128xf32>,
    %c15_i32_58 = arith.constant 15 : i32
    %168 = arith.subi %c15_i32_58, %c2_i32 : i32
    %169 = arith.index_cast %168 : i32 to index
    %c0_59 = arith.constant 0 : index
    %c0_60 = arith.constant 0 : index
    %170 = vector.load %arg13[%169, %c0_59, %c0_60] : memref<16x16x128xf32, #tpu.memory_space<vmem>>, vector<1x16x128xf32>
    %171 = vector.shape_cast %170 : vector<1x16x128xf32> to vector<16x128xf32>
    %172 = vector.shape_cast %163 : vector<16x128xf32> to vector<1x16x128xf32>
    tpu.vector_store %arg13[%169, %c0_59, %c0_60], %172 {strides = array<i32>} : memref<16x16x128xf32, #tpu.memory_space<vmem>>, vector<1x16x128xf32>,
    %c3_i32 = arith.constant 3 : i32
    %173 = arith.index_cast %c3_i32 : i32 to index
    %c0_61 = arith.constant 0 : index
    %c0_62 = arith.constant 0 : index
    %174 = vector.load %arg11[%173, %c0_61, %c0_62] : memref<16x16x384xf32, #tpu.memory_space<vmem>>, vector<1x16x384xf32>
    %175 = vector.shape_cast %174 : vector<1x16x384xf32> to vector<16x384xf32>
    %c15_i32_63 = arith.constant 15 : i32
    %176 = arith.subi %c15_i32_63, %c3_i32 : i32
    %177 = arith.index_cast %176 : i32 to index
    %c0_64 = arith.constant 0 : index
    %c0_65 = arith.constant 0 : index
    %178 = vector.load %arg11[%177, %c0_64, %c0_65] : memref<16x16x384xf32, #tpu.memory_space<vmem>>, vector<1x16x384xf32>
    %179 = vector.shape_cast %178 : vector<1x16x384xf32> to vector<16x384xf32>
    %180 = arith.select %30, %175, %179 : vector<16x384xi1>, vector<16x384xf32>
    %181 = arith.truncf %163 : vector<16x128xf32> to vector<16x128xbf16>
    %cst_66 = arith.constant dense<0.000000e+00> : vector<16x384xf32>
    %182 = tpu.matmul %181, %10, %cst_66 {dimension_numbers = #tpu.dot_dimension_numbers<[1], [0], [0], [1], [0, 0, 1, 1], [], []>} : vector<16x128xbf16>, vector<128x384xbf16>, vector<16x384xf32> -> vector<16x384xf32>
    %183 = vector.extract_strided_slice %180 {offsets = [0, 0], sizes = [16, 128], strides = [1, 1]} : vector<16x384xf32> to vector<16x128xf32>
    %184 = vector.extract_strided_slice %182 {offsets = [0, 0], sizes = [16, 128], strides = [1, 1]} : vector<16x384xf32> to vector<16x128xf32>
    %185 = arith.addf %183, %184 : vector<16x128xf32>
    %186 = arith.negf %185 : vector<16x128xf32>
    %187 = math.exp %186 : vector<16x128xf32>
    %cst_67 = arith.constant 1.000000e+00 : f32
    %188 = vector.broadcast %cst_67 : f32 to vector<16x128xf32>
    %189 = arith.addf %188, %187 : vector<16x128xf32>
    %190 = arith.divf %188, %189 : vector<16x128xf32>
    %191 = vector.extract_strided_slice %180 {offsets = [0, 128], sizes = [16, 128], strides = [1, 1]} : vector<16x384xf32> to vector<16x128xf32>
    %192 = vector.extract_strided_slice %182 {offsets = [0, 128], sizes = [16, 128], strides = [1, 1]} : vector<16x384xf32> to vector<16x128xf32>
    %193 = arith.addf %191, %192 : vector<16x128xf32>
    %194 = arith.negf %193 : vector<16x128xf32>
    %195 = math.exp %194 : vector<16x128xf32>
    %cst_68 = arith.constant 1.000000e+00 : f32
    %196 = vector.broadcast %cst_68 : f32 to vector<16x128xf32>
    %197 = arith.addf %196, %195 : vector<16x128xf32>
    %198 = arith.divf %196, %197 : vector<16x128xf32>
    %199 = vector.extract_strided_slice %180 {offsets = [0, 256], sizes = [16, 128], strides = [1, 1]} : vector<16x384xf32> to vector<16x128xf32>
    %200 = vector.extract_strided_slice %182 {offsets = [0, 256], sizes = [16, 128], strides = [1, 1]} : vector<16x384xf32> to vector<16x128xf32>
    %201 = vector.broadcast %11 : vector<1x128xf32> to vector<16x128xf32>
    %202 = arith.addf %200, %201 : vector<16x128xf32>
    %203 = arith.mulf %190, %202 : vector<16x128xf32>
    %204 = arith.addf %199, %203 : vector<16x128xf32>
    %205 = math.tanh %204 : vector<16x128xf32>
    %cst_69 = arith.constant 1.000000e+00 : f32
    %206 = vector.broadcast %cst_69 : f32 to vector<16x128xf32>
    %207 = arith.subf %206, %198 : vector<16x128xf32>
    %208 = arith.mulf %207, %205 : vector<16x128xf32>
    %209 = arith.mulf %198, %163 : vector<16x128xf32>
    %210 = arith.addf %208, %209 : vector<16x128xf32>
    %211 = arith.index_cast %c3_i32 : i32 to index
    %c0_70 = arith.constant 0 : index
    %c0_71 = arith.constant 0 : index
    %212 = vector.load %arg12[%211, %c0_70, %c0_71] : memref<16x16x128xf32, #tpu.memory_space<vmem>>, vector<1x16x128xf32>
    %213 = vector.shape_cast %212 : vector<1x16x128xf32> to vector<16x128xf32>
    %214 = vector.shape_cast %210 : vector<16x128xf32> to vector<1x16x128xf32>
    tpu.vector_store %arg12[%211, %c0_70, %c0_71], %214 {strides = array<i32>} : memref<16x16x128xf32, #tpu.memory_space<vmem>>, vector<1x16x128xf32>,
    %c15_i32_72 = arith.constant 15 : i32
    %215 = arith.subi %c15_i32_72, %c3_i32 : i32
    %216 = arith.index_cast %215 : i32 to index
    %c0_73 = arith.constant 0 : index
    %c0_74 = arith.constant 0 : index
    %217 = vector.load %arg13[%216, %c0_73, %c0_74] : memref<16x16x128xf32, #tpu.memory_space<vmem>>, vector<1x16x128xf32>
    %218 = vector.shape_cast %217 : vector<1x16x128xf32> to vector<16x128xf32>
    %219 = vector.shape_cast %210 : vector<16x128xf32> to vector<1x16x128xf32>
    tpu.vector_store %arg13[%216, %c0_73, %c0_74], %219 {strides = array<i32>} : memref<16x16x128xf32, #tpu.memory_space<vmem>>, vector<1x16x128xf32>,
    %c4_i32 = arith.constant 4 : i32
    %220 = arith.index_cast %c4_i32 : i32 to index
    %c0_75 = arith.constant 0 : index
    %c0_76 = arith.constant 0 : index
    %221 = vector.load %arg11[%220, %c0_75, %c0_76] : memref<16x16x384xf32, #tpu.memory_space<vmem>>, vector<1x16x384xf32>
    %222 = vector.shape_cast %221 : vector<1x16x384xf32> to vector<16x384xf32>
    %c15_i32_77 = arith.constant 15 : i32
    %223 = arith.subi %c15_i32_77, %c4_i32 : i32
    %224 = arith.index_cast %223 : i32 to index
    %c0_78 = arith.constant 0 : index
    %c0_79 = arith.constant 0 : index
    %225 = vector.load %arg11[%224, %c0_78, %c0_79] : memref<16x16x384xf32, #tpu.memory_space<vmem>>, vector<1x16x384xf32>
    %226 = vector.shape_cast %225 : vector<1x16x384xf32> to vector<16x384xf32>
    %227 = arith.select %30, %222, %226 : vector<16x384xi1>, vector<16x384xf32>
    %228 = arith.truncf %210 : vector<16x128xf32> to vector<16x128xbf16>
    %cst_80 = arith.constant dense<0.000000e+00> : vector<16x384xf32>
    %229 = tpu.matmul %228, %10, %cst_80 {dimension_numbers = #tpu.dot_dimension_numbers<[1], [0], [0], [1], [0, 0, 1, 1], [], []>} : vector<16x128xbf16>, vector<128x384xbf16>, vector<16x384xf32> -> vector<16x384xf32>
    %230 = vector.extract_strided_slice %227 {offsets = [0, 0], sizes = [16, 128], strides = [1, 1]} : vector<16x384xf32> to vector<16x128xf32>
    %231 = vector.extract_strided_slice %229 {offsets = [0, 0], sizes = [16, 128], strides = [1, 1]} : vector<16x384xf32> to vector<16x128xf32>
    %232 = arith.addf %230, %231 : vector<16x128xf32>
    %233 = arith.negf %232 : vector<16x128xf32>
    %234 = math.exp %233 : vector<16x128xf32>
    %cst_81 = arith.constant 1.000000e+00 : f32
    %235 = vector.broadcast %cst_81 : f32 to vector<16x128xf32>
    %236 = arith.addf %235, %234 : vector<16x128xf32>
    %237 = arith.divf %235, %236 : vector<16x128xf32>
    %238 = vector.extract_strided_slice %227 {offsets = [0, 128], sizes = [16, 128], strides = [1, 1]} : vector<16x384xf32> to vector<16x128xf32>
    %239 = vector.extract_strided_slice %229 {offsets = [0, 128], sizes = [16, 128], strides = [1, 1]} : vector<16x384xf32> to vector<16x128xf32>
    %240 = arith.addf %238, %239 : vector<16x128xf32>
    %241 = arith.negf %240 : vector<16x128xf32>
    %242 = math.exp %241 : vector<16x128xf32>
    %cst_82 = arith.constant 1.000000e+00 : f32
    %243 = vector.broadcast %cst_82 : f32 to vector<16x128xf32>
    %244 = arith.addf %243, %242 : vector<16x128xf32>
    %245 = arith.divf %243, %244 : vector<16x128xf32>
    %246 = vector.extract_strided_slice %227 {offsets = [0, 256], sizes = [16, 128], strides = [1, 1]} : vector<16x384xf32> to vector<16x128xf32>
    %247 = vector.extract_strided_slice %229 {offsets = [0, 256], sizes = [16, 128], strides = [1, 1]} : vector<16x384xf32> to vector<16x128xf32>
    %248 = vector.broadcast %11 : vector<1x128xf32> to vector<16x128xf32>
    %249 = arith.addf %247, %248 : vector<16x128xf32>
    %250 = arith.mulf %237, %249 : vector<16x128xf32>
    %251 = arith.addf %246, %250 : vector<16x128xf32>
    %252 = math.tanh %251 : vector<16x128xf32>
    %cst_83 = arith.constant 1.000000e+00 : f32
    %253 = vector.broadcast %cst_83 : f32 to vector<16x128xf32>
    %254 = arith.subf %253, %245 : vector<16x128xf32>
    %255 = arith.mulf %254, %252 : vector<16x128xf32>
    %256 = arith.mulf %245, %210 : vector<16x128xf32>
    %257 = arith.addf %255, %256 : vector<16x128xf32>
    %258 = arith.index_cast %c4_i32 : i32 to index
    %c0_84 = arith.constant 0 : index
    %c0_85 = arith.constant 0 : index
    %259 = vector.load %arg12[%258, %c0_84, %c0_85] : memref<16x16x128xf32, #tpu.memory_space<vmem>>, vector<1x16x128xf32>
    %260 = vector.shape_cast %259 : vector<1x16x128xf32> to vector<16x128xf32>
    %261 = vector.shape_cast %257 : vector<16x128xf32> to vector<1x16x128xf32>
    tpu.vector_store %arg12[%258, %c0_84, %c0_85], %261 {strides = array<i32>} : memref<16x16x128xf32, #tpu.memory_space<vmem>>, vector<1x16x128xf32>,
    %c15_i32_86 = arith.constant 15 : i32
    %262 = arith.subi %c15_i32_86, %c4_i32 : i32
    %263 = arith.index_cast %262 : i32 to index
    %c0_87 = arith.constant 0 : index
    %c0_88 = arith.constant 0 : index
    %264 = vector.load %arg13[%263, %c0_87, %c0_88] : memref<16x16x128xf32, #tpu.memory_space<vmem>>, vector<1x16x128xf32>
    %265 = vector.shape_cast %264 : vector<1x16x128xf32> to vector<16x128xf32>
    %266 = vector.shape_cast %257 : vector<16x128xf32> to vector<1x16x128xf32>
    tpu.vector_store %arg13[%263, %c0_87, %c0_88], %266 {strides = array<i32>} : memref<16x16x128xf32, #tpu.memory_space<vmem>>, vector<1x16x128xf32>,
    %c5_i32 = arith.constant 5 : i32
    %267 = arith.index_cast %c5_i32 : i32 to index
    %c0_89 = arith.constant 0 : index
    %c0_90 = arith.constant 0 : index
    %268 = vector.load %arg11[%267, %c0_89, %c0_90] : memref<16x16x384xf32, #tpu.memory_space<vmem>>, vector<1x16x384xf32>
    %269 = vector.shape_cast %268 : vector<1x16x384xf32> to vector<16x384xf32>
    %c15_i32_91 = arith.constant 15 : i32
    %270 = arith.subi %c15_i32_91, %c5_i32 : i32
    %271 = arith.index_cast %270 : i32 to index
    %c0_92 = arith.constant 0 : index
    %c0_93 = arith.constant 0 : index
    %272 = vector.load %arg11[%271, %c0_92, %c0_93] : memref<16x16x384xf32, #tpu.memory_space<vmem>>, vector<1x16x384xf32>
    %273 = vector.shape_cast %272 : vector<1x16x384xf32> to vector<16x384xf32>
    %274 = arith.select %30, %269, %273 : vector<16x384xi1>, vector<16x384xf32>
    %275 = arith.truncf %257 : vector<16x128xf32> to vector<16x128xbf16>
    %cst_94 = arith.constant dense<0.000000e+00> : vector<16x384xf32>
    %276 = tpu.matmul %275, %10, %cst_94 {dimension_numbers = #tpu.dot_dimension_numbers<[1], [0], [0], [1], [0, 0, 1, 1], [], []>} : vector<16x128xbf16>, vector<128x384xbf16>, vector<16x384xf32> -> vector<16x384xf32>
    %277 = vector.extract_strided_slice %274 {offsets = [0, 0], sizes = [16, 128], strides = [1, 1]} : vector<16x384xf32> to vector<16x128xf32>
    %278 = vector.extract_strided_slice %276 {offsets = [0, 0], sizes = [16, 128], strides = [1, 1]} : vector<16x384xf32> to vector<16x128xf32>
    %279 = arith.addf %277, %278 : vector<16x128xf32>
    %280 = arith.negf %279 : vector<16x128xf32>
    %281 = math.exp %280 : vector<16x128xf32>
    %cst_95 = arith.constant 1.000000e+00 : f32
    %282 = vector.broadcast %cst_95 : f32 to vector<16x128xf32>
    %283 = arith.addf %282, %281 : vector<16x128xf32>
    %284 = arith.divf %282, %283 : vector<16x128xf32>
    %285 = vector.extract_strided_slice %274 {offsets = [0, 128], sizes = [16, 128], strides = [1, 1]} : vector<16x384xf32> to vector<16x128xf32>
    %286 = vector.extract_strided_slice %276 {offsets = [0, 128], sizes = [16, 128], strides = [1, 1]} : vector<16x384xf32> to vector<16x128xf32>
    %287 = arith.addf %285, %286 : vector<16x128xf32>
    %288 = arith.negf %287 : vector<16x128xf32>
    %289 = math.exp %288 : vector<16x128xf32>
    %cst_96 = arith.constant 1.000000e+00 : f32
    %290 = vector.broadcast %cst_96 : f32 to vector<16x128xf32>
    %291 = arith.addf %290, %289 : vector<16x128xf32>
    %292 = arith.divf %290, %291 : vector<16x128xf32>
    %293 = vector.extract_strided_slice %274 {offsets = [0, 256], sizes = [16, 128], strides = [1, 1]} : vector<16x384xf32> to vector<16x128xf32>
    %294 = vector.extract_strided_slice %276 {offsets = [0, 256], sizes = [16, 128], strides = [1, 1]} : vector<16x384xf32> to vector<16x128xf32>
    %295 = vector.broadcast %11 : vector<1x128xf32> to vector<16x128xf32>
    %296 = arith.addf %294, %295 : vector<16x128xf32>
    %297 = arith.mulf %284, %296 : vector<16x128xf32>
    %298 = arith.addf %293, %297 : vector<16x128xf32>
    %299 = math.tanh %298 : vector<16x128xf32>
    %cst_97 = arith.constant 1.000000e+00 : f32
    %300 = vector.broadcast %cst_97 : f32 to vector<16x128xf32>
    %301 = arith.subf %300, %292 : vector<16x128xf32>
    %302 = arith.mulf %301, %299 : vector<16x128xf32>
    %303 = arith.mulf %292, %257 : vector<16x128xf32>
    %304 = arith.addf %302, %303 : vector<16x128xf32>
    %305 = arith.index_cast %c5_i32 : i32 to index
    %c0_98 = arith.constant 0 : index
    %c0_99 = arith.constant 0 : index
    %306 = vector.load %arg12[%305, %c0_98, %c0_99] : memref<16x16x128xf32, #tpu.memory_space<vmem>>, vector<1x16x128xf32>
    %307 = vector.shape_cast %306 : vector<1x16x128xf32> to vector<16x128xf32>
    %308 = vector.shape_cast %304 : vector<16x128xf32> to vector<1x16x128xf32>
    tpu.vector_store %arg12[%305, %c0_98, %c0_99], %308 {strides = array<i32>} : memref<16x16x128xf32, #tpu.memory_space<vmem>>, vector<1x16x128xf32>,
    %c15_i32_100 = arith.constant 15 : i32
    %309 = arith.subi %c15_i32_100, %c5_i32 : i32
    %310 = arith.index_cast %309 : i32 to index
    %c0_101 = arith.constant 0 : index
    %c0_102 = arith.constant 0 : index
    %311 = vector.load %arg13[%310, %c0_101, %c0_102] : memref<16x16x128xf32, #tpu.memory_space<vmem>>, vector<1x16x128xf32>
    %312 = vector.shape_cast %311 : vector<1x16x128xf32> to vector<16x128xf32>
    %313 = vector.shape_cast %304 : vector<16x128xf32> to vector<1x16x128xf32>
    tpu.vector_store %arg13[%310, %c0_101, %c0_102], %313 {strides = array<i32>} : memref<16x16x128xf32, #tpu.memory_space<vmem>>, vector<1x16x128xf32>,
    %c6_i32 = arith.constant 6 : i32
    %314 = arith.index_cast %c6_i32 : i32 to index
    %c0_103 = arith.constant 0 : index
    %c0_104 = arith.constant 0 : index
    %315 = vector.load %arg11[%314, %c0_103, %c0_104] : memref<16x16x384xf32, #tpu.memory_space<vmem>>, vector<1x16x384xf32>
    %316 = vector.shape_cast %315 : vector<1x16x384xf32> to vector<16x384xf32>
    %c15_i32_105 = arith.constant 15 : i32
    %317 = arith.subi %c15_i32_105, %c6_i32 : i32
    %318 = arith.index_cast %317 : i32 to index
    %c0_106 = arith.constant 0 : index
    %c0_107 = arith.constant 0 : index
    %319 = vector.load %arg11[%318, %c0_106, %c0_107] : memref<16x16x384xf32, #tpu.memory_space<vmem>>, vector<1x16x384xf32>
    %320 = vector.shape_cast %319 : vector<1x16x384xf32> to vector<16x384xf32>
    %321 = arith.select %30, %316, %320 : vector<16x384xi1>, vector<16x384xf32>
    %322 = arith.truncf %304 : vector<16x128xf32> to vector<16x128xbf16>
    %cst_108 = arith.constant dense<0.000000e+00> : vector<16x384xf32>
    %323 = tpu.matmul %322, %10, %cst_108 {dimension_numbers = #tpu.dot_dimension_numbers<[1], [0], [0], [1], [0, 0, 1, 1], [], []>} : vector<16x128xbf16>, vector<128x384xbf16>, vector<16x384xf32> -> vector<16x384xf32>
    %324 = vector.extract_strided_slice %321 {offsets = [0, 0], sizes = [16, 128], strides = [1, 1]} : vector<16x384xf32> to vector<16x128xf32>
    %325 = vector.extract_strided_slice %323 {offsets = [0, 0], sizes = [16, 128], strides = [1, 1]} : vector<16x384xf32> to vector<16x128xf32>
    %326 = arith.addf %324, %325 : vector<16x128xf32>
    %327 = arith.negf %326 : vector<16x128xf32>
    %328 = math.exp %327 : vector<16x128xf32>
    %cst_109 = arith.constant 1.000000e+00 : f32
    %329 = vector.broadcast %cst_109 : f32 to vector<16x128xf32>
    %330 = arith.addf %329, %328 : vector<16x128xf32>
    %331 = arith.divf %329, %330 : vector<16x128xf32>
    %332 = vector.extract_strided_slice %321 {offsets = [0, 128], sizes = [16, 128], strides = [1, 1]} : vector<16x384xf32> to vector<16x128xf32>
    %333 = vector.extract_strided_slice %323 {offsets = [0, 128], sizes = [16, 128], strides = [1, 1]} : vector<16x384xf32> to vector<16x128xf32>
    %334 = arith.addf %332, %333 : vector<16x128xf32>
    %335 = arith.negf %334 : vector<16x128xf32>
    %336 = math.exp %335 : vector<16x128xf32>
    %cst_110 = arith.constant 1.000000e+00 : f32
    %337 = vector.broadcast %cst_110 : f32 to vector<16x128xf32>
    %338 = arith.addf %337, %336 : vector<16x128xf32>
    %339 = arith.divf %337, %338 : vector<16x128xf32>
    %340 = vector.extract_strided_slice %321 {offsets = [0, 256], sizes = [16, 128], strides = [1, 1]} : vector<16x384xf32> to vector<16x128xf32>
    %341 = vector.extract_strided_slice %323 {offsets = [0, 256], sizes = [16, 128], strides = [1, 1]} : vector<16x384xf32> to vector<16x128xf32>
    %342 = vector.broadcast %11 : vector<1x128xf32> to vector<16x128xf32>
    %343 = arith.addf %341, %342 : vector<16x128xf32>
    %344 = arith.mulf %331, %343 : vector<16x128xf32>
    %345 = arith.addf %340, %344 : vector<16x128xf32>
    %346 = math.tanh %345 : vector<16x128xf32>
    %cst_111 = arith.constant 1.000000e+00 : f32
    %347 = vector.broadcast %cst_111 : f32 to vector<16x128xf32>
    %348 = arith.subf %347, %339 : vector<16x128xf32>
    %349 = arith.mulf %348, %346 : vector<16x128xf32>
    %350 = arith.mulf %339, %304 : vector<16x128xf32>
    %351 = arith.addf %349, %350 : vector<16x128xf32>
    %352 = arith.index_cast %c6_i32 : i32 to index
    %c0_112 = arith.constant 0 : index
    %c0_113 = arith.constant 0 : index
    %353 = vector.load %arg12[%352, %c0_112, %c0_113] : memref<16x16x128xf32, #tpu.memory_space<vmem>>, vector<1x16x128xf32>
    %354 = vector.shape_cast %353 : vector<1x16x128xf32> to vector<16x128xf32>
    %355 = vector.shape_cast %351 : vector<16x128xf32> to vector<1x16x128xf32>
    tpu.vector_store %arg12[%352, %c0_112, %c0_113], %355 {strides = array<i32>} : memref<16x16x128xf32, #tpu.memory_space<vmem>>, vector<1x16x128xf32>,
    %c15_i32_114 = arith.constant 15 : i32
    %356 = arith.subi %c15_i32_114, %c6_i32 : i32
    %357 = arith.index_cast %356 : i32 to index
    %c0_115 = arith.constant 0 : index
    %c0_116 = arith.constant 0 : index
    %358 = vector.load %arg13[%357, %c0_115, %c0_116] : memref<16x16x128xf32, #tpu.memory_space<vmem>>, vector<1x16x128xf32>
    %359 = vector.shape_cast %358 : vector<1x16x128xf32> to vector<16x128xf32>
    %360 = vector.shape_cast %351 : vector<16x128xf32> to vector<1x16x128xf32>
    tpu.vector_store %arg13[%357, %c0_115, %c0_116], %360 {strides = array<i32>} : memref<16x16x128xf32, #tpu.memory_space<vmem>>, vector<1x16x128xf32>,
    %c7_i32 = arith.constant 7 : i32
    %361 = arith.index_cast %c7_i32 : i32 to index
    %c0_117 = arith.constant 0 : index
    %c0_118 = arith.constant 0 : index
    %362 = vector.load %arg11[%361, %c0_117, %c0_118] : memref<16x16x384xf32, #tpu.memory_space<vmem>>, vector<1x16x384xf32>
    %363 = vector.shape_cast %362 : vector<1x16x384xf32> to vector<16x384xf32>
    %c15_i32_119 = arith.constant 15 : i32
    %364 = arith.subi %c15_i32_119, %c7_i32 : i32
    %365 = arith.index_cast %364 : i32 to index
    %c0_120 = arith.constant 0 : index
    %c0_121 = arith.constant 0 : index
    %366 = vector.load %arg11[%365, %c0_120, %c0_121] : memref<16x16x384xf32, #tpu.memory_space<vmem>>, vector<1x16x384xf32>
    %367 = vector.shape_cast %366 : vector<1x16x384xf32> to vector<16x384xf32>
    %368 = arith.select %30, %363, %367 : vector<16x384xi1>, vector<16x384xf32>
    %369 = arith.truncf %351 : vector<16x128xf32> to vector<16x128xbf16>
    %cst_122 = arith.constant dense<0.000000e+00> : vector<16x384xf32>
    %370 = tpu.matmul %369, %10, %cst_122 {dimension_numbers = #tpu.dot_dimension_numbers<[1], [0], [0], [1], [0, 0, 1, 1], [], []>} : vector<16x128xbf16>, vector<128x384xbf16>, vector<16x384xf32> -> vector<16x384xf32>
    %371 = vector.extract_strided_slice %368 {offsets = [0, 0], sizes = [16, 128], strides = [1, 1]} : vector<16x384xf32> to vector<16x128xf32>
    %372 = vector.extract_strided_slice %370 {offsets = [0, 0], sizes = [16, 128], strides = [1, 1]} : vector<16x384xf32> to vector<16x128xf32>
    %373 = arith.addf %371, %372 : vector<16x128xf32>
    %374 = arith.negf %373 : vector<16x128xf32>
    %375 = math.exp %374 : vector<16x128xf32>
    %cst_123 = arith.constant 1.000000e+00 : f32
    %376 = vector.broadcast %cst_123 : f32 to vector<16x128xf32>
    %377 = arith.addf %376, %375 : vector<16x128xf32>
    %378 = arith.divf %376, %377 : vector<16x128xf32>
    %379 = vector.extract_strided_slice %368 {offsets = [0, 128], sizes = [16, 128], strides = [1, 1]} : vector<16x384xf32> to vector<16x128xf32>
    %380 = vector.extract_strided_slice %370 {offsets = [0, 128], sizes = [16, 128], strides = [1, 1]} : vector<16x384xf32> to vector<16x128xf32>
    %381 = arith.addf %379, %380 : vector<16x128xf32>
    %382 = arith.negf %381 : vector<16x128xf32>
    %383 = math.exp %382 : vector<16x128xf32>
    %cst_124 = arith.constant 1.000000e+00 : f32
    %384 = vector.broadcast %cst_124 : f32 to vector<16x128xf32>
    %385 = arith.addf %384, %383 : vector<16x128xf32>
    %386 = arith.divf %384, %385 : vector<16x128xf32>
    %387 = vector.extract_strided_slice %368 {offsets = [0, 256], sizes = [16, 128], strides = [1, 1]} : vector<16x384xf32> to vector<16x128xf32>
    %388 = vector.extract_strided_slice %370 {offsets = [0, 256], sizes = [16, 128], strides = [1, 1]} : vector<16x384xf32> to vector<16x128xf32>
    %389 = vector.broadcast %11 : vector<1x128xf32> to vector<16x128xf32>
    %390 = arith.addf %388, %389 : vector<16x128xf32>
    %391 = arith.mulf %378, %390 : vector<16x128xf32>
    %392 = arith.addf %387, %391 : vector<16x128xf32>
    %393 = math.tanh %392 : vector<16x128xf32>
    %cst_125 = arith.constant 1.000000e+00 : f32
    %394 = vector.broadcast %cst_125 : f32 to vector<16x128xf32>
    %395 = arith.subf %394, %386 : vector<16x128xf32>
    %396 = arith.mulf %395, %393 : vector<16x128xf32>
    %397 = arith.mulf %386, %351 : vector<16x128xf32>
    %398 = arith.addf %396, %397 : vector<16x128xf32>
    %399 = arith.index_cast %c7_i32 : i32 to index
    %c0_126 = arith.constant 0 : index
    %c0_127 = arith.constant 0 : index
    %400 = vector.load %arg12[%399, %c0_126, %c0_127] : memref<16x16x128xf32, #tpu.memory_space<vmem>>, vector<1x16x128xf32>
    %401 = vector.shape_cast %400 : vector<1x16x128xf32> to vector<16x128xf32>
    %402 = vector.shape_cast %398 : vector<16x128xf32> to vector<1x16x128xf32>
    tpu.vector_store %arg12[%399, %c0_126, %c0_127], %402 {strides = array<i32>} : memref<16x16x128xf32, #tpu.memory_space<vmem>>, vector<1x16x128xf32>,
    %c15_i32_128 = arith.constant 15 : i32
    %403 = arith.subi %c15_i32_128, %c7_i32 : i32
    %404 = arith.index_cast %403 : i32 to index
    %c0_129 = arith.constant 0 : index
    %c0_130 = arith.constant 0 : index
    %405 = vector.load %arg13[%404, %c0_129, %c0_130] : memref<16x16x128xf32, #tpu.memory_space<vmem>>, vector<1x16x128xf32>
    %406 = vector.shape_cast %405 : vector<1x16x128xf32> to vector<16x128xf32>
    %407 = vector.shape_cast %398 : vector<16x128xf32> to vector<1x16x128xf32>
    tpu.vector_store %arg13[%404, %c0_129, %c0_130], %407 {strides = array<i32>} : memref<16x16x128xf32, #tpu.memory_space<vmem>>, vector<1x16x128xf32>,
    %c8_i32 = arith.constant 8 : i32
    %408 = arith.index_cast %c8_i32 : i32 to index
    %c0_131 = arith.constant 0 : index
    %c0_132 = arith.constant 0 : index
    %409 = vector.load %arg11[%408, %c0_131, %c0_132] : memref<16x16x384xf32, #tpu.memory_space<vmem>>, vector<1x16x384xf32>
    %410 = vector.shape_cast %409 : vector<1x16x384xf32> to vector<16x384xf32>
    %c15_i32_133 = arith.constant 15 : i32
    %411 = arith.subi %c15_i32_133, %c8_i32 : i32
    %412 = arith.index_cast %411 : i32 to index
    %c0_134 = arith.constant 0 : index
    %c0_135 = arith.constant 0 : index
    %413 = vector.load %arg11[%412, %c0_134, %c0_135] : memref<16x16x384xf32, #tpu.memory_space<vmem>>, vector<1x16x384xf32>
    %414 = vector.shape_cast %413 : vector<1x16x384xf32> to vector<16x384xf32>
    %415 = arith.select %30, %410, %414 : vector<16x384xi1>, vector<16x384xf32>
    %416 = arith.truncf %398 : vector<16x128xf32> to vector<16x128xbf16>
    %cst_136 = arith.constant dense<0.000000e+00> : vector<16x384xf32>
    %417 = tpu.matmul %416, %10, %cst_136 {dimension_numbers = #tpu.dot_dimension_numbers<[1], [0], [0], [1], [0, 0, 1, 1], [], []>} : vector<16x128xbf16>, vector<128x384xbf16>, vector<16x384xf32> -> vector<16x384xf32>
    %418 = vector.extract_strided_slice %415 {offsets = [0, 0], sizes = [16, 128], strides = [1, 1]} : vector<16x384xf32> to vector<16x128xf32>
    %419 = vector.extract_strided_slice %417 {offsets = [0, 0], sizes = [16, 128], strides = [1, 1]} : vector<16x384xf32> to vector<16x128xf32>
    %420 = arith.addf %418, %419 : vector<16x128xf32>
    %421 = arith.negf %420 : vector<16x128xf32>
    %422 = math.exp %421 : vector<16x128xf32>
    %cst_137 = arith.constant 1.000000e+00 : f32
    %423 = vector.broadcast %cst_137 : f32 to vector<16x128xf32>
    %424 = arith.addf %423, %422 : vector<16x128xf32>
    %425 = arith.divf %423, %424 : vector<16x128xf32>
    %426 = vector.extract_strided_slice %415 {offsets = [0, 128], sizes = [16, 128], strides = [1, 1]} : vector<16x384xf32> to vector<16x128xf32>
    %427 = vector.extract_strided_slice %417 {offsets = [0, 128], sizes = [16, 128], strides = [1, 1]} : vector<16x384xf32> to vector<16x128xf32>
    %428 = arith.addf %426, %427 : vector<16x128xf32>
    %429 = arith.negf %428 : vector<16x128xf32>
    %430 = math.exp %429 : vector<16x128xf32>
    %cst_138 = arith.constant 1.000000e+00 : f32
    %431 = vector.broadcast %cst_138 : f32 to vector<16x128xf32>
    %432 = arith.addf %431, %430 : vector<16x128xf32>
    %433 = arith.divf %431, %432 : vector<16x128xf32>
    %434 = vector.extract_strided_slice %415 {offsets = [0, 256], sizes = [16, 128], strides = [1, 1]} : vector<16x384xf32> to vector<16x128xf32>
    %435 = vector.extract_strided_slice %417 {offsets = [0, 256], sizes = [16, 128], strides = [1, 1]} : vector<16x384xf32> to vector<16x128xf32>
    %436 = vector.broadcast %11 : vector<1x128xf32> to vector<16x128xf32>
    %437 = arith.addf %435, %436 : vector<16x128xf32>
    %438 = arith.mulf %425, %437 : vector<16x128xf32>
    %439 = arith.addf %434, %438 : vector<16x128xf32>
    %440 = math.tanh %439 : vector<16x128xf32>
    %cst_139 = arith.constant 1.000000e+00 : f32
    %441 = vector.broadcast %cst_139 : f32 to vector<16x128xf32>
    %442 = arith.subf %441, %433 : vector<16x128xf32>
    %443 = arith.mulf %442, %440 : vector<16x128xf32>
    %444 = arith.mulf %433, %398 : vector<16x128xf32>
    %445 = arith.addf %443, %444 : vector<16x128xf32>
    %446 = arith.index_cast %c8_i32 : i32 to index
    %c0_140 = arith.constant 0 : index
    %c0_141 = arith.constant 0 : index
    %447 = vector.load %arg12[%446, %c0_140, %c0_141] : memref<16x16x128xf32, #tpu.memory_space<vmem>>, vector<1x16x128xf32>
    %448 = vector.shape_cast %447 : vector<1x16x128xf32> to vector<16x128xf32>
    %449 = vector.shape_cast %445 : vector<16x128xf32> to vector<1x16x128xf32>
    tpu.vector_store %arg12[%446, %c0_140, %c0_141], %449 {strides = array<i32>} : memref<16x16x128xf32, #tpu.memory_space<vmem>>, vector<1x16x128xf32>,
    %c15_i32_142 = arith.constant 15 : i32
    %450 = arith.subi %c15_i32_142, %c8_i32 : i32
    %451 = arith.index_cast %450 : i32 to index
    %c0_143 = arith.constant 0 : index
    %c0_144 = arith.constant 0 : index
    %452 = vector.load %arg13[%451, %c0_143, %c0_144] : memref<16x16x128xf32, #tpu.memory_space<vmem>>, vector<1x16x128xf32>
    %453 = vector.shape_cast %452 : vector<1x16x128xf32> to vector<16x128xf32>
    %454 = vector.shape_cast %445 : vector<16x128xf32> to vector<1x16x128xf32>
    tpu.vector_store %arg13[%451, %c0_143, %c0_144], %454 {strides = array<i32>} : memref<16x16x128xf32, #tpu.memory_space<vmem>>, vector<1x16x128xf32>,
    %c9_i32 = arith.constant 9 : i32
    %455 = arith.index_cast %c9_i32 : i32 to index
    %c0_145 = arith.constant 0 : index
    %c0_146 = arith.constant 0 : index
    %456 = vector.load %arg11[%455, %c0_145, %c0_146] : memref<16x16x384xf32, #tpu.memory_space<vmem>>, vector<1x16x384xf32>
    %457 = vector.shape_cast %456 : vector<1x16x384xf32> to vector<16x384xf32>
    %c15_i32_147 = arith.constant 15 : i32
    %458 = arith.subi %c15_i32_147, %c9_i32 : i32
    %459 = arith.index_cast %458 : i32 to index
    %c0_148 = arith.constant 0 : index
    %c0_149 = arith.constant 0 : index
    %460 = vector.load %arg11[%459, %c0_148, %c0_149] : memref<16x16x384xf32, #tpu.memory_space<vmem>>, vector<1x16x384xf32>
    %461 = vector.shape_cast %460 : vector<1x16x384xf32> to vector<16x384xf32>
    %462 = arith.select %30, %457, %461 : vector<16x384xi1>, vector<16x384xf32>
    %463 = arith.truncf %445 : vector<16x128xf32> to vector<16x128xbf16>
    %cst_150 = arith.constant dense<0.000000e+00> : vector<16x384xf32>
    %464 = tpu.matmul %463, %10, %cst_150 {dimension_numbers = #tpu.dot_dimension_numbers<[1], [0], [0], [1], [0, 0, 1, 1], [], []>} : vector<16x128xbf16>, vector<128x384xbf16>, vector<16x384xf32> -> vector<16x384xf32>
    %465 = vector.extract_strided_slice %462 {offsets = [0, 0], sizes = [16, 128], strides = [1, 1]} : vector<16x384xf32> to vector<16x128xf32>
    %466 = vector.extract_strided_slice %464 {offsets = [0, 0], sizes = [16, 128], strides = [1, 1]} : vector<16x384xf32> to vector<16x128xf32>
    %467 = arith.addf %465, %466 : vector<16x128xf32>
    %468 = arith.negf %467 : vector<16x128xf32>
    %469 = math.exp %468 : vector<16x128xf32>
    %cst_151 = arith.constant 1.000000e+00 : f32
    %470 = vector.broadcast %cst_151 : f32 to vector<16x128xf32>
    %471 = arith.addf %470, %469 : vector<16x128xf32>
    %472 = arith.divf %470, %471 : vector<16x128xf32>
    %473 = vector.extract_strided_slice %462 {offsets = [0, 128], sizes = [16, 128], strides = [1, 1]} : vector<16x384xf32> to vector<16x128xf32>
    %474 = vector.extract_strided_slice %464 {offsets = [0, 128], sizes = [16, 128], strides = [1, 1]} : vector<16x384xf32> to vector<16x128xf32>
    %475 = arith.addf %473, %474 : vector<16x128xf32>
    %476 = arith.negf %475 : vector<16x128xf32>
    %477 = math.exp %476 : vector<16x128xf32>
    %cst_152 = arith.constant 1.000000e+00 : f32
    %478 = vector.broadcast %cst_152 : f32 to vector<16x128xf32>
    %479 = arith.addf %478, %477 : vector<16x128xf32>
    %480 = arith.divf %478, %479 : vector<16x128xf32>
    %481 = vector.extract_strided_slice %462 {offsets = [0, 256], sizes = [16, 128], strides = [1, 1]} : vector<16x384xf32> to vector<16x128xf32>
    %482 = vector.extract_strided_slice %464 {offsets = [0, 256], sizes = [16, 128], strides = [1, 1]} : vector<16x384xf32> to vector<16x128xf32>
    %483 = vector.broadcast %11 : vector<1x128xf32> to vector<16x128xf32>
    %484 = arith.addf %482, %483 : vector<16x128xf32>
    %485 = arith.mulf %472, %484 : vector<16x128xf32>
    %486 = arith.addf %481, %485 : vector<16x128xf32>
    %487 = math.tanh %486 : vector<16x128xf32>
    %cst_153 = arith.constant 1.000000e+00 : f32
    %488 = vector.broadcast %cst_153 : f32 to vector<16x128xf32>
    %489 = arith.subf %488, %480 : vector<16x128xf32>
    %490 = arith.mulf %489, %487 : vector<16x128xf32>
    %491 = arith.mulf %480, %445 : vector<16x128xf32>
    %492 = arith.addf %490, %491 : vector<16x128xf32>
    %493 = arith.index_cast %c9_i32 : i32 to index
    %c0_154 = arith.constant 0 : index
    %c0_155 = arith.constant 0 : index
    %494 = vector.load %arg12[%493, %c0_154, %c0_155] : memref<16x16x128xf32, #tpu.memory_space<vmem>>, vector<1x16x128xf32>
    %495 = vector.shape_cast %494 : vector<1x16x128xf32> to vector<16x128xf32>
    %496 = vector.shape_cast %492 : vector<16x128xf32> to vector<1x16x128xf32>
    tpu.vector_store %arg12[%493, %c0_154, %c0_155], %496 {strides = array<i32>} : memref<16x16x128xf32, #tpu.memory_space<vmem>>, vector<1x16x128xf32>,
    %c15_i32_156 = arith.constant 15 : i32
    %497 = arith.subi %c15_i32_156, %c9_i32 : i32
    %498 = arith.index_cast %497 : i32 to index
    %c0_157 = arith.constant 0 : index
    %c0_158 = arith.constant 0 : index
    %499 = vector.load %arg13[%498, %c0_157, %c0_158] : memref<16x16x128xf32, #tpu.memory_space<vmem>>, vector<1x16x128xf32>
    %500 = vector.shape_cast %499 : vector<1x16x128xf32> to vector<16x128xf32>
    %501 = vector.shape_cast %492 : vector<16x128xf32> to vector<1x16x128xf32>
    tpu.vector_store %arg13[%498, %c0_157, %c0_158], %501 {strides = array<i32>} : memref<16x16x128xf32, #tpu.memory_space<vmem>>, vector<1x16x128xf32>,
    %c10_i32 = arith.constant 10 : i32
    %502 = arith.index_cast %c10_i32 : i32 to index
    %c0_159 = arith.constant 0 : index
    %c0_160 = arith.constant 0 : index
    %503 = vector.load %arg11[%502, %c0_159, %c0_160] : memref<16x16x384xf32, #tpu.memory_space<vmem>>, vector<1x16x384xf32>
    %504 = vector.shape_cast %503 : vector<1x16x384xf32> to vector<16x384xf32>
    %c15_i32_161 = arith.constant 15 : i32
    %505 = arith.subi %c15_i32_161, %c10_i32 : i32
    %506 = arith.index_cast %505 : i32 to index
    %c0_162 = arith.constant 0 : index
    %c0_163 = arith.constant 0 : index
    %507 = vector.load %arg11[%506, %c0_162, %c0_163] : memref<16x16x384xf32, #tpu.memory_space<vmem>>, vector<1x16x384xf32>
    %508 = vector.shape_cast %507 : vector<1x16x384xf32> to vector<16x384xf32>
    %509 = arith.select %30, %504, %508 : vector<16x384xi1>, vector<16x384xf32>
    %510 = arith.truncf %492 : vector<16x128xf32> to vector<16x128xbf16>
    %cst_164 = arith.constant dense<0.000000e+00> : vector<16x384xf32>
    %511 = tpu.matmul %510, %10, %cst_164 {dimension_numbers = #tpu.dot_dimension_numbers<[1], [0], [0], [1], [0, 0, 1, 1], [], []>} : vector<16x128xbf16>, vector<128x384xbf16>, vector<16x384xf32> -> vector<16x384xf32>
    %512 = vector.extract_strided_slice %509 {offsets = [0, 0], sizes = [16, 128], strides = [1, 1]} : vector<16x384xf32> to vector<16x128xf32>
    %513 = vector.extract_strided_slice %511 {offsets = [0, 0], sizes = [16, 128], strides = [1, 1]} : vector<16x384xf32> to vector<16x128xf32>
    %514 = arith.addf %512, %513 : vector<16x128xf32>
    %515 = arith.negf %514 : vector<16x128xf32>
    %516 = math.exp %515 : vector<16x128xf32>
    %cst_165 = arith.constant 1.000000e+00 : f32
    %517 = vector.broadcast %cst_165 : f32 to vector<16x128xf32>
    %518 = arith.addf %517, %516 : vector<16x128xf32>
    %519 = arith.divf %517, %518 : vector<16x128xf32>
    %520 = vector.extract_strided_slice %509 {offsets = [0, 128], sizes = [16, 128], strides = [1, 1]} : vector<16x384xf32> to vector<16x128xf32>
    %521 = vector.extract_strided_slice %511 {offsets = [0, 128], sizes = [16, 128], strides = [1, 1]} : vector<16x384xf32> to vector<16x128xf32>
    %522 = arith.addf %520, %521 : vector<16x128xf32>
    %523 = arith.negf %522 : vector<16x128xf32>
    %524 = math.exp %523 : vector<16x128xf32>
    %cst_166 = arith.constant 1.000000e+00 : f32
    %525 = vector.broadcast %cst_166 : f32 to vector<16x128xf32>
    %526 = arith.addf %525, %524 : vector<16x128xf32>
    %527 = arith.divf %525, %526 : vector<16x128xf32>
    %528 = vector.extract_strided_slice %509 {offsets = [0, 256], sizes = [16, 128], strides = [1, 1]} : vector<16x384xf32> to vector<16x128xf32>
    %529 = vector.extract_strided_slice %511 {offsets = [0, 256], sizes = [16, 128], strides = [1, 1]} : vector<16x384xf32> to vector<16x128xf32>
    %530 = vector.broadcast %11 : vector<1x128xf32> to vector<16x128xf32>
    %531 = arith.addf %529, %530 : vector<16x128xf32>
    %532 = arith.mulf %519, %531 : vector<16x128xf32>
    %533 = arith.addf %528, %532 : vector<16x128xf32>
    %534 = math.tanh %533 : vector<16x128xf32>
    %cst_167 = arith.constant 1.000000e+00 : f32
    %535 = vector.broadcast %cst_167 : f32 to vector<16x128xf32>
    %536 = arith.subf %535, %527 : vector<16x128xf32>
    %537 = arith.mulf %536, %534 : vector<16x128xf32>
    %538 = arith.mulf %527, %492 : vector<16x128xf32>
    %539 = arith.addf %537, %538 : vector<16x128xf32>
    %540 = arith.index_cast %c10_i32 : i32 to index
    %c0_168 = arith.constant 0 : index
    %c0_169 = arith.constant 0 : index
    %541 = vector.load %arg12[%540, %c0_168, %c0_169] : memref<16x16x128xf32, #tpu.memory_space<vmem>>, vector<1x16x128xf32>
    %542 = vector.shape_cast %541 : vector<1x16x128xf32> to vector<16x128xf32>
    %543 = vector.shape_cast %539 : vector<16x128xf32> to vector<1x16x128xf32>
    tpu.vector_store %arg12[%540, %c0_168, %c0_169], %543 {strides = array<i32>} : memref<16x16x128xf32, #tpu.memory_space<vmem>>, vector<1x16x128xf32>,
    %c15_i32_170 = arith.constant 15 : i32
    %544 = arith.subi %c15_i32_170, %c10_i32 : i32
    %545 = arith.index_cast %544 : i32 to index
    %c0_171 = arith.constant 0 : index
    %c0_172 = arith.constant 0 : index
    %546 = vector.load %arg13[%545, %c0_171, %c0_172] : memref<16x16x128xf32, #tpu.memory_space<vmem>>, vector<1x16x128xf32>
    %547 = vector.shape_cast %546 : vector<1x16x128xf32> to vector<16x128xf32>
    %548 = vector.shape_cast %539 : vector<16x128xf32> to vector<1x16x128xf32>
    tpu.vector_store %arg13[%545, %c0_171, %c0_172], %548 {strides = array<i32>} : memref<16x16x128xf32, #tpu.memory_space<vmem>>, vector<1x16x128xf32>,
    %c11_i32 = arith.constant 11 : i32
    %549 = arith.index_cast %c11_i32 : i32 to index
    %c0_173 = arith.constant 0 : index
    %c0_174 = arith.constant 0 : index
    %550 = vector.load %arg11[%549, %c0_173, %c0_174] : memref<16x16x384xf32, #tpu.memory_space<vmem>>, vector<1x16x384xf32>
    %551 = vector.shape_cast %550 : vector<1x16x384xf32> to vector<16x384xf32>
    %c15_i32_175 = arith.constant 15 : i32
    %552 = arith.subi %c15_i32_175, %c11_i32 : i32
    %553 = arith.index_cast %552 : i32 to index
    %c0_176 = arith.constant 0 : index
    %c0_177 = arith.constant 0 : index
    %554 = vector.load %arg11[%553, %c0_176, %c0_177] : memref<16x16x384xf32, #tpu.memory_space<vmem>>, vector<1x16x384xf32>
    %555 = vector.shape_cast %554 : vector<1x16x384xf32> to vector<16x384xf32>
    %556 = arith.select %30, %551, %555 : vector<16x384xi1>, vector<16x384xf32>
    %557 = arith.truncf %539 : vector<16x128xf32> to vector<16x128xbf16>
    %cst_178 = arith.constant dense<0.000000e+00> : vector<16x384xf32>
    %558 = tpu.matmul %557, %10, %cst_178 {dimension_numbers = #tpu.dot_dimension_numbers<[1], [0], [0], [1], [0, 0, 1, 1], [], []>} : vector<16x128xbf16>, vector<128x384xbf16>, vector<16x384xf32> -> vector<16x384xf32>
    %559 = vector.extract_strided_slice %556 {offsets = [0, 0], sizes = [16, 128], strides = [1, 1]} : vector<16x384xf32> to vector<16x128xf32>
    %560 = vector.extract_strided_slice %558 {offsets = [0, 0], sizes = [16, 128], strides = [1, 1]} : vector<16x384xf32> to vector<16x128xf32>
    %561 = arith.addf %559, %560 : vector<16x128xf32>
    %562 = arith.negf %561 : vector<16x128xf32>
    %563 = math.exp %562 : vector<16x128xf32>
    %cst_179 = arith.constant 1.000000e+00 : f32
    %564 = vector.broadcast %cst_179 : f32 to vector<16x128xf32>
    %565 = arith.addf %564, %563 : vector<16x128xf32>
    %566 = arith.divf %564, %565 : vector<16x128xf32>
    %567 = vector.extract_strided_slice %556 {offsets = [0, 128], sizes = [16, 128], strides = [1, 1]} : vector<16x384xf32> to vector<16x128xf32>
    %568 = vector.extract_strided_slice %558 {offsets = [0, 128], sizes = [16, 128], strides = [1, 1]} : vector<16x384xf32> to vector<16x128xf32>
    %569 = arith.addf %567, %568 : vector<16x128xf32>
    %570 = arith.negf %569 : vector<16x128xf32>
    %571 = math.exp %570 : vector<16x128xf32>
    %cst_180 = arith.constant 1.000000e+00 : f32
    %572 = vector.broadcast %cst_180 : f32 to vector<16x128xf32>
    %573 = arith.addf %572, %571 : vector<16x128xf32>
    %574 = arith.divf %572, %573 : vector<16x128xf32>
    %575 = vector.extract_strided_slice %556 {offsets = [0, 256], sizes = [16, 128], strides = [1, 1]} : vector<16x384xf32> to vector<16x128xf32>
    %576 = vector.extract_strided_slice %558 {offsets = [0, 256], sizes = [16, 128], strides = [1, 1]} : vector<16x384xf32> to vector<16x128xf32>
    %577 = vector.broadcast %11 : vector<1x128xf32> to vector<16x128xf32>
    %578 = arith.addf %576, %577 : vector<16x128xf32>
    %579 = arith.mulf %566, %578 : vector<16x128xf32>
    %580 = arith.addf %575, %579 : vector<16x128xf32>
    %581 = math.tanh %580 : vector<16x128xf32>
    %cst_181 = arith.constant 1.000000e+00 : f32
    %582 = vector.broadcast %cst_181 : f32 to vector<16x128xf32>
    %583 = arith.subf %582, %574 : vector<16x128xf32>
    %584 = arith.mulf %583, %581 : vector<16x128xf32>
    %585 = arith.mulf %574, %539 : vector<16x128xf32>
    %586 = arith.addf %584, %585 : vector<16x128xf32>
    %587 = arith.index_cast %c11_i32 : i32 to index
    %c0_182 = arith.constant 0 : index
    %c0_183 = arith.constant 0 : index
    %588 = vector.load %arg12[%587, %c0_182, %c0_183] : memref<16x16x128xf32, #tpu.memory_space<vmem>>, vector<1x16x128xf32>
    %589 = vector.shape_cast %588 : vector<1x16x128xf32> to vector<16x128xf32>
    %590 = vector.shape_cast %586 : vector<16x128xf32> to vector<1x16x128xf32>
    tpu.vector_store %arg12[%587, %c0_182, %c0_183], %590 {strides = array<i32>} : memref<16x16x128xf32, #tpu.memory_space<vmem>>, vector<1x16x128xf32>,
    %c15_i32_184 = arith.constant 15 : i32
    %591 = arith.subi %c15_i32_184, %c11_i32 : i32
    %592 = arith.index_cast %591 : i32 to index
    %c0_185 = arith.constant 0 : index
    %c0_186 = arith.constant 0 : index
    %593 = vector.load %arg13[%592, %c0_185, %c0_186] : memref<16x16x128xf32, #tpu.memory_space<vmem>>, vector<1x16x128xf32>
    %594 = vector.shape_cast %593 : vector<1x16x128xf32> to vector<16x128xf32>
    %595 = vector.shape_cast %586 : vector<16x128xf32> to vector<1x16x128xf32>
    tpu.vector_store %arg13[%592, %c0_185, %c0_186], %595 {strides = array<i32>} : memref<16x16x128xf32, #tpu.memory_space<vmem>>, vector<1x16x128xf32>,
    %c12_i32 = arith.constant 12 : i32
    %596 = arith.index_cast %c12_i32 : i32 to index
    %c0_187 = arith.constant 0 : index
    %c0_188 = arith.constant 0 : index
    %597 = vector.load %arg11[%596, %c0_187, %c0_188] : memref<16x16x384xf32, #tpu.memory_space<vmem>>, vector<1x16x384xf32>
    %598 = vector.shape_cast %597 : vector<1x16x384xf32> to vector<16x384xf32>
    %c15_i32_189 = arith.constant 15 : i32
    %599 = arith.subi %c15_i32_189, %c12_i32 : i32
    %600 = arith.index_cast %599 : i32 to index
    %c0_190 = arith.constant 0 : index
    %c0_191 = arith.constant 0 : index
    %601 = vector.load %arg11[%600, %c0_190, %c0_191] : memref<16x16x384xf32, #tpu.memory_space<vmem>>, vector<1x16x384xf32>
    %602 = vector.shape_cast %601 : vector<1x16x384xf32> to vector<16x384xf32>
    %603 = arith.select %30, %598, %602 : vector<16x384xi1>, vector<16x384xf32>
    %604 = arith.truncf %586 : vector<16x128xf32> to vector<16x128xbf16>
    %cst_192 = arith.constant dense<0.000000e+00> : vector<16x384xf32>
    %605 = tpu.matmul %604, %10, %cst_192 {dimension_numbers = #tpu.dot_dimension_numbers<[1], [0], [0], [1], [0, 0, 1, 1], [], []>} : vector<16x128xbf16>, vector<128x384xbf16>, vector<16x384xf32> -> vector<16x384xf32>
    %606 = vector.extract_strided_slice %603 {offsets = [0, 0], sizes = [16, 128], strides = [1, 1]} : vector<16x384xf32> to vector<16x128xf32>
    %607 = vector.extract_strided_slice %605 {offsets = [0, 0], sizes = [16, 128], strides = [1, 1]} : vector<16x384xf32> to vector<16x128xf32>
    %608 = arith.addf %606, %607 : vector<16x128xf32>
    %609 = arith.negf %608 : vector<16x128xf32>
    %610 = math.exp %609 : vector<16x128xf32>
    %cst_193 = arith.constant 1.000000e+00 : f32
    %611 = vector.broadcast %cst_193 : f32 to vector<16x128xf32>
    %612 = arith.addf %611, %610 : vector<16x128xf32>
    %613 = arith.divf %611, %612 : vector<16x128xf32>
    %614 = vector.extract_strided_slice %603 {offsets = [0, 128], sizes = [16, 128], strides = [1, 1]} : vector<16x384xf32> to vector<16x128xf32>
    %615 = vector.extract_strided_slice %605 {offsets = [0, 128], sizes = [16, 128], strides = [1, 1]} : vector<16x384xf32> to vector<16x128xf32>
    %616 = arith.addf %614, %615 : vector<16x128xf32>
    %617 = arith.negf %616 : vector<16x128xf32>
    %618 = math.exp %617 : vector<16x128xf32>
    %cst_194 = arith.constant 1.000000e+00 : f32
    %619 = vector.broadcast %cst_194 : f32 to vector<16x128xf32>
    %620 = arith.addf %619, %618 : vector<16x128xf32>
    %621 = arith.divf %619, %620 : vector<16x128xf32>
    %622 = vector.extract_strided_slice %603 {offsets = [0, 256], sizes = [16, 128], strides = [1, 1]} : vector<16x384xf32> to vector<16x128xf32>
    %623 = vector.extract_strided_slice %605 {offsets = [0, 256], sizes = [16, 128], strides = [1, 1]} : vector<16x384xf32> to vector<16x128xf32>
    %624 = vector.broadcast %11 : vector<1x128xf32> to vector<16x128xf32>
    %625 = arith.addf %623, %624 : vector<16x128xf32>
    %626 = arith.mulf %613, %625 : vector<16x128xf32>
    %627 = arith.addf %622, %626 : vector<16x128xf32>
    %628 = math.tanh %627 : vector<16x128xf32>
    %cst_195 = arith.constant 1.000000e+00 : f32
    %629 = vector.broadcast %cst_195 : f32 to vector<16x128xf32>
    %630 = arith.subf %629, %621 : vector<16x128xf32>
    %631 = arith.mulf %630, %628 : vector<16x128xf32>
    %632 = arith.mulf %621, %586 : vector<16x128xf32>
    %633 = arith.addf %631, %632 : vector<16x128xf32>
    %634 = arith.index_cast %c12_i32 : i32 to index
    %c0_196 = arith.constant 0 : index
    %c0_197 = arith.constant 0 : index
    %635 = vector.load %arg12[%634, %c0_196, %c0_197] : memref<16x16x128xf32, #tpu.memory_space<vmem>>, vector<1x16x128xf32>
    %636 = vector.shape_cast %635 : vector<1x16x128xf32> to vector<16x128xf32>
    %637 = vector.shape_cast %633 : vector<16x128xf32> to vector<1x16x128xf32>
    tpu.vector_store %arg12[%634, %c0_196, %c0_197], %637 {strides = array<i32>} : memref<16x16x128xf32, #tpu.memory_space<vmem>>, vector<1x16x128xf32>,
    %c15_i32_198 = arith.constant 15 : i32
    %638 = arith.subi %c15_i32_198, %c12_i32 : i32
    %639 = arith.index_cast %638 : i32 to index
    %c0_199 = arith.constant 0 : index
    %c0_200 = arith.constant 0 : index
    %640 = vector.load %arg13[%639, %c0_199, %c0_200] : memref<16x16x128xf32, #tpu.memory_space<vmem>>, vector<1x16x128xf32>
    %641 = vector.shape_cast %640 : vector<1x16x128xf32> to vector<16x128xf32>
    %642 = vector.shape_cast %633 : vector<16x128xf32> to vector<1x16x128xf32>
    tpu.vector_store %arg13[%639, %c0_199, %c0_200], %642 {strides = array<i32>} : memref<16x16x128xf32, #tpu.memory_space<vmem>>, vector<1x16x128xf32>,
    %c13_i32 = arith.constant 13 : i32
    %643 = arith.index_cast %c13_i32 : i32 to index
    %c0_201 = arith.constant 0 : index
    %c0_202 = arith.constant 0 : index
    %644 = vector.load %arg11[%643, %c0_201, %c0_202] : memref<16x16x384xf32, #tpu.memory_space<vmem>>, vector<1x16x384xf32>
    %645 = vector.shape_cast %644 : vector<1x16x384xf32> to vector<16x384xf32>
    %c15_i32_203 = arith.constant 15 : i32
    %646 = arith.subi %c15_i32_203, %c13_i32 : i32
    %647 = arith.index_cast %646 : i32 to index
    %c0_204 = arith.constant 0 : index
    %c0_205 = arith.constant 0 : index
    %648 = vector.load %arg11[%647, %c0_204, %c0_205] : memref<16x16x384xf32, #tpu.memory_space<vmem>>, vector<1x16x384xf32>
    %649 = vector.shape_cast %648 : vector<1x16x384xf32> to vector<16x384xf32>
    %650 = arith.select %30, %645, %649 : vector<16x384xi1>, vector<16x384xf32>
    %651 = arith.truncf %633 : vector<16x128xf32> to vector<16x128xbf16>
    %cst_206 = arith.constant dense<0.000000e+00> : vector<16x384xf32>
    %652 = tpu.matmul %651, %10, %cst_206 {dimension_numbers = #tpu.dot_dimension_numbers<[1], [0], [0], [1], [0, 0, 1, 1], [], []>} : vector<16x128xbf16>, vector<128x384xbf16>, vector<16x384xf32> -> vector<16x384xf32>
    %653 = vector.extract_strided_slice %650 {offsets = [0, 0], sizes = [16, 128], strides = [1, 1]} : vector<16x384xf32> to vector<16x128xf32>
    %654 = vector.extract_strided_slice %652 {offsets = [0, 0], sizes = [16, 128], strides = [1, 1]} : vector<16x384xf32> to vector<16x128xf32>
    %655 = arith.addf %653, %654 : vector<16x128xf32>
    %656 = arith.negf %655 : vector<16x128xf32>
    %657 = math.exp %656 : vector<16x128xf32>
    %cst_207 = arith.constant 1.000000e+00 : f32
    %658 = vector.broadcast %cst_207 : f32 to vector<16x128xf32>
    %659 = arith.addf %658, %657 : vector<16x128xf32>
    %660 = arith.divf %658, %659 : vector<16x128xf32>
    %661 = vector.extract_strided_slice %650 {offsets = [0, 128], sizes = [16, 128], strides = [1, 1]} : vector<16x384xf32> to vector<16x128xf32>
    %662 = vector.extract_strided_slice %652 {offsets = [0, 128], sizes = [16, 128], strides = [1, 1]} : vector<16x384xf32> to vector<16x128xf32>
    %663 = arith.addf %661, %662 : vector<16x128xf32>
    %664 = arith.negf %663 : vector<16x128xf32>
    %665 = math.exp %664 : vector<16x128xf32>
    %cst_208 = arith.constant 1.000000e+00 : f32
    %666 = vector.broadcast %cst_208 : f32 to vector<16x128xf32>
    %667 = arith.addf %666, %665 : vector<16x128xf32>
    %668 = arith.divf %666, %667 : vector<16x128xf32>
    %669 = vector.extract_strided_slice %650 {offsets = [0, 256], sizes = [16, 128], strides = [1, 1]} : vector<16x384xf32> to vector<16x128xf32>
    %670 = vector.extract_strided_slice %652 {offsets = [0, 256], sizes = [16, 128], strides = [1, 1]} : vector<16x384xf32> to vector<16x128xf32>
    %671 = vector.broadcast %11 : vector<1x128xf32> to vector<16x128xf32>
    %672 = arith.addf %670, %671 : vector<16x128xf32>
    %673 = arith.mulf %660, %672 : vector<16x128xf32>
    %674 = arith.addf %669, %673 : vector<16x128xf32>
    %675 = math.tanh %674 : vector<16x128xf32>
    %cst_209 = arith.constant 1.000000e+00 : f32
    %676 = vector.broadcast %cst_209 : f32 to vector<16x128xf32>
    %677 = arith.subf %676, %668 : vector<16x128xf32>
    %678 = arith.mulf %677, %675 : vector<16x128xf32>
    %679 = arith.mulf %668, %633 : vector<16x128xf32>
    %680 = arith.addf %678, %679 : vector<16x128xf32>
    %681 = arith.index_cast %c13_i32 : i32 to index
    %c0_210 = arith.constant 0 : index
    %c0_211 = arith.constant 0 : index
    %682 = vector.load %arg12[%681, %c0_210, %c0_211] : memref<16x16x128xf32, #tpu.memory_space<vmem>>, vector<1x16x128xf32>
    %683 = vector.shape_cast %682 : vector<1x16x128xf32> to vector<16x128xf32>
    %684 = vector.shape_cast %680 : vector<16x128xf32> to vector<1x16x128xf32>
    tpu.vector_store %arg12[%681, %c0_210, %c0_211], %684 {strides = array<i32>} : memref<16x16x128xf32, #tpu.memory_space<vmem>>, vector<1x16x128xf32>,
    %c15_i32_212 = arith.constant 15 : i32
    %685 = arith.subi %c15_i32_212, %c13_i32 : i32
    %686 = arith.index_cast %685 : i32 to index
    %c0_213 = arith.constant 0 : index
    %c0_214 = arith.constant 0 : index
    %687 = vector.load %arg13[%686, %c0_213, %c0_214] : memref<16x16x128xf32, #tpu.memory_space<vmem>>, vector<1x16x128xf32>
    %688 = vector.shape_cast %687 : vector<1x16x128xf32> to vector<16x128xf32>
    %689 = vector.shape_cast %680 : vector<16x128xf32> to vector<1x16x128xf32>
    tpu.vector_store %arg13[%686, %c0_213, %c0_214], %689 {strides = array<i32>} : memref<16x16x128xf32, #tpu.memory_space<vmem>>, vector<1x16x128xf32>,
    %c14_i32 = arith.constant 14 : i32
    %690 = arith.index_cast %c14_i32 : i32 to index
    %c0_215 = arith.constant 0 : index
    %c0_216 = arith.constant 0 : index
    %691 = vector.load %arg11[%690, %c0_215, %c0_216] : memref<16x16x384xf32, #tpu.memory_space<vmem>>, vector<1x16x384xf32>
    %692 = vector.shape_cast %691 : vector<1x16x384xf32> to vector<16x384xf32>
    %c15_i32_217 = arith.constant 15 : i32
    %693 = arith.subi %c15_i32_217, %c14_i32 : i32
    %694 = arith.index_cast %693 : i32 to index
    %c0_218 = arith.constant 0 : index
    %c0_219 = arith.constant 0 : index
    %695 = vector.load %arg11[%694, %c0_218, %c0_219] : memref<16x16x384xf32, #tpu.memory_space<vmem>>, vector<1x16x384xf32>
    %696 = vector.shape_cast %695 : vector<1x16x384xf32> to vector<16x384xf32>
    %697 = arith.select %30, %692, %696 : vector<16x384xi1>, vector<16x384xf32>
    %698 = arith.truncf %680 : vector<16x128xf32> to vector<16x128xbf16>
    %cst_220 = arith.constant dense<0.000000e+00> : vector<16x384xf32>
    %699 = tpu.matmul %698, %10, %cst_220 {dimension_numbers = #tpu.dot_dimension_numbers<[1], [0], [0], [1], [0, 0, 1, 1], [], []>} : vector<16x128xbf16>, vector<128x384xbf16>, vector<16x384xf32> -> vector<16x384xf32>
    %700 = vector.extract_strided_slice %697 {offsets = [0, 0], sizes = [16, 128], strides = [1, 1]} : vector<16x384xf32> to vector<16x128xf32>
    %701 = vector.extract_strided_slice %699 {offsets = [0, 0], sizes = [16, 128], strides = [1, 1]} : vector<16x384xf32> to vector<16x128xf32>
    %702 = arith.addf %700, %701 : vector<16x128xf32>
    %703 = arith.negf %702 : vector<16x128xf32>
    %704 = math.exp %703 : vector<16x128xf32>
    %cst_221 = arith.constant 1.000000e+00 : f32
    %705 = vector.broadcast %cst_221 : f32 to vector<16x128xf32>
    %706 = arith.addf %705, %704 : vector<16x128xf32>
    %707 = arith.divf %705, %706 : vector<16x128xf32>
    %708 = vector.extract_strided_slice %697 {offsets = [0, 128], sizes = [16, 128], strides = [1, 1]} : vector<16x384xf32> to vector<16x128xf32>
    %709 = vector.extract_strided_slice %699 {offsets = [0, 128], sizes = [16, 128], strides = [1, 1]} : vector<16x384xf32> to vector<16x128xf32>
    %710 = arith.addf %708, %709 : vector<16x128xf32>
    %711 = arith.negf %710 : vector<16x128xf32>
    %712 = math.exp %711 : vector<16x128xf32>
    %cst_222 = arith.constant 1.000000e+00 : f32
    %713 = vector.broadcast %cst_222 : f32 to vector<16x128xf32>
    %714 = arith.addf %713, %712 : vector<16x128xf32>
    %715 = arith.divf %713, %714 : vector<16x128xf32>
    %716 = vector.extract_strided_slice %697 {offsets = [0, 256], sizes = [16, 128], strides = [1, 1]} : vector<16x384xf32> to vector<16x128xf32>
    %717 = vector.extract_strided_slice %699 {offsets = [0, 256], sizes = [16, 128], strides = [1, 1]} : vector<16x384xf32> to vector<16x128xf32>
    %718 = vector.broadcast %11 : vector<1x128xf32> to vector<16x128xf32>
    %719 = arith.addf %717, %718 : vector<16x128xf32>
    %720 = arith.mulf %707, %719 : vector<16x128xf32>
    %721 = arith.addf %716, %720 : vector<16x128xf32>
    %722 = math.tanh %721 : vector<16x128xf32>
    %cst_223 = arith.constant 1.000000e+00 : f32
    %723 = vector.broadcast %cst_223 : f32 to vector<16x128xf32>
    %724 = arith.subf %723, %715 : vector<16x128xf32>
    %725 = arith.mulf %724, %722 : vector<16x128xf32>
    %726 = arith.mulf %715, %680 : vector<16x128xf32>
    %727 = arith.addf %725, %726 : vector<16x128xf32>
    %728 = arith.index_cast %c14_i32 : i32 to index
    %c0_224 = arith.constant 0 : index
    %c0_225 = arith.constant 0 : index
    %729 = vector.load %arg12[%728, %c0_224, %c0_225] : memref<16x16x128xf32, #tpu.memory_space<vmem>>, vector<1x16x128xf32>
    %730 = vector.shape_cast %729 : vector<1x16x128xf32> to vector<16x128xf32>
    %731 = vector.shape_cast %727 : vector<16x128xf32> to vector<1x16x128xf32>
    tpu.vector_store %arg12[%728, %c0_224, %c0_225], %731 {strides = array<i32>} : memref<16x16x128xf32, #tpu.memory_space<vmem>>, vector<1x16x128xf32>,
    %c15_i32_226 = arith.constant 15 : i32
    %732 = arith.subi %c15_i32_226, %c14_i32 : i32
    %733 = arith.index_cast %732 : i32 to index
    %c0_227 = arith.constant 0 : index
    %c0_228 = arith.constant 0 : index
    %734 = vector.load %arg13[%733, %c0_227, %c0_228] : memref<16x16x128xf32, #tpu.memory_space<vmem>>, vector<1x16x128xf32>
    %735 = vector.shape_cast %734 : vector<1x16x128xf32> to vector<16x128xf32>
    %736 = vector.shape_cast %727 : vector<16x128xf32> to vector<1x16x128xf32>
    tpu.vector_store %arg13[%733, %c0_227, %c0_228], %736 {strides = array<i32>} : memref<16x16x128xf32, #tpu.memory_space<vmem>>, vector<1x16x128xf32>,
    %c15_i32_229 = arith.constant 15 : i32
    %737 = arith.index_cast %c15_i32_229 : i32 to index
    %c0_230 = arith.constant 0 : index
    %c0_231 = arith.constant 0 : index
    %738 = vector.load %arg11[%737, %c0_230, %c0_231] : memref<16x16x384xf32, #tpu.memory_space<vmem>>, vector<1x16x384xf32>
    %739 = vector.shape_cast %738 : vector<1x16x384xf32> to vector<16x384xf32>
    %c15_i32_232 = arith.constant 15 : i32
    %740 = arith.subi %c15_i32_232, %c15_i32_229 : i32
    %741 = arith.index_cast %740 : i32 to index
    %c0_233 = arith.constant 0 : index
    %c0_234 = arith.constant 0 : index
    %742 = vector.load %arg11[%741, %c0_233, %c0_234] : memref<16x16x384xf32, #tpu.memory_space<vmem>>, vector<1x16x384xf32>
    %743 = vector.shape_cast %742 : vector<1x16x384xf32> to vector<16x384xf32>
    %744 = arith.select %30, %739, %743 : vector<16x384xi1>, vector<16x384xf32>
    %745 = arith.truncf %727 : vector<16x128xf32> to vector<16x128xbf16>
    %cst_235 = arith.constant dense<0.000000e+00> : vector<16x384xf32>
    %746 = tpu.matmul %745, %10, %cst_235 {dimension_numbers = #tpu.dot_dimension_numbers<[1], [0], [0], [1], [0, 0, 1, 1], [], []>} : vector<16x128xbf16>, vector<128x384xbf16>, vector<16x384xf32> -> vector<16x384xf32>
    %747 = vector.extract_strided_slice %744 {offsets = [0, 0], sizes = [16, 128], strides = [1, 1]} : vector<16x384xf32> to vector<16x128xf32>
    %748 = vector.extract_strided_slice %746 {offsets = [0, 0], sizes = [16, 128], strides = [1, 1]} : vector<16x384xf32> to vector<16x128xf32>
    %749 = arith.addf %747, %748 : vector<16x128xf32>
    %750 = arith.negf %749 : vector<16x128xf32>
    %751 = math.exp %750 : vector<16x128xf32>
    %cst_236 = arith.constant 1.000000e+00 : f32
    %752 = vector.broadcast %cst_236 : f32 to vector<16x128xf32>
    %753 = arith.addf %752, %751 : vector<16x128xf32>
    %754 = arith.divf %752, %753 : vector<16x128xf32>
    %755 = vector.extract_strided_slice %744 {offsets = [0, 128], sizes = [16, 128], strides = [1, 1]} : vector<16x384xf32> to vector<16x128xf32>
    %756 = vector.extract_strided_slice %746 {offsets = [0, 128], sizes = [16, 128], strides = [1, 1]} : vector<16x384xf32> to vector<16x128xf32>
    %757 = arith.addf %755, %756 : vector<16x128xf32>
    %758 = arith.negf %757 : vector<16x128xf32>
    %759 = math.exp %758 : vector<16x128xf32>
    %cst_237 = arith.constant 1.000000e+00 : f32
    %760 = vector.broadcast %cst_237 : f32 to vector<16x128xf32>
    %761 = arith.addf %760, %759 : vector<16x128xf32>
    %762 = arith.divf %760, %761 : vector<16x128xf32>
    %763 = vector.extract_strided_slice %744 {offsets = [0, 256], sizes = [16, 128], strides = [1, 1]} : vector<16x384xf32> to vector<16x128xf32>
    %764 = vector.extract_strided_slice %746 {offsets = [0, 256], sizes = [16, 128], strides = [1, 1]} : vector<16x384xf32> to vector<16x128xf32>
    %765 = vector.broadcast %11 : vector<1x128xf32> to vector<16x128xf32>
    %766 = arith.addf %764, %765 : vector<16x128xf32>
    %767 = arith.mulf %754, %766 : vector<16x128xf32>
    %768 = arith.addf %763, %767 : vector<16x128xf32>
    %769 = math.tanh %768 : vector<16x128xf32>
    %cst_238 = arith.constant 1.000000e+00 : f32
    %770 = vector.broadcast %cst_238 : f32 to vector<16x128xf32>
    %771 = arith.subf %770, %762 : vector<16x128xf32>
    %772 = arith.mulf %771, %769 : vector<16x128xf32>
    %773 = arith.mulf %762, %727 : vector<16x128xf32>
    %774 = arith.addf %772, %773 : vector<16x128xf32>
    %775 = arith.index_cast %c15_i32_229 : i32 to index
    %c0_239 = arith.constant 0 : index
    %c0_240 = arith.constant 0 : index
    %776 = vector.load %arg12[%775, %c0_239, %c0_240] : memref<16x16x128xf32, #tpu.memory_space<vmem>>, vector<1x16x128xf32>
    %777 = vector.shape_cast %776 : vector<1x16x128xf32> to vector<16x128xf32>
    %778 = vector.shape_cast %774 : vector<16x128xf32> to vector<1x16x128xf32>
    tpu.vector_store %arg12[%775, %c0_239, %c0_240], %778 {strides = array<i32>} : memref<16x16x128xf32, #tpu.memory_space<vmem>>, vector<1x16x128xf32>,
    %c15_i32_241 = arith.constant 15 : i32
    %779 = arith.subi %c15_i32_241, %c15_i32_229 : i32
    %780 = arith.index_cast %779 : i32 to index
    %c0_242 = arith.constant 0 : index
    %c0_243 = arith.constant 0 : index
    %781 = vector.load %arg13[%780, %c0_242, %c0_243] : memref<16x16x128xf32, #tpu.memory_space<vmem>>, vector<1x16x128xf32>
    %782 = vector.shape_cast %781 : vector<1x16x128xf32> to vector<16x128xf32>
    %783 = vector.shape_cast %774 : vector<16x128xf32> to vector<1x16x128xf32>
    tpu.vector_store %arg13[%780, %c0_242, %c0_243], %783 {strides = array<i32>} : memref<16x16x128xf32, #tpu.memory_space<vmem>>, vector<1x16x128xf32>,
    %c16_i32 = arith.constant 16 : i32
    %c0_244 = arith.constant 0 : index
    %c0_245 = arith.constant 0 : index
    %784 = vector.load %arg10[%c0_244, %c0_245] : memref<16x128xf32, #tpu.memory_space<vmem>>, vector<16x128xf32>
    tpu.vector_store %arg10[%c0_244, %c0_245], %774 {strides = array<i32>} : memref<16x128xf32, #tpu.memory_space<vmem>>, vector<16x128xf32>,
    %785 = tpu.iota {dimensions = array<i32: 1>} : vector<256x128xi32>
    %c64_i32_246 = arith.constant 64 : i32
    %786 = vector.broadcast %c64_i32_246 : i32 to vector<256x128xi32>
    %787 = arith.cmpi slt, %785, %786 : vector<256x128xi32>
    %c0_247 = arith.constant 0 : index
    %c0_248 = arith.constant 0 : index
    %c0_249 = arith.constant 0 : index
    %788 = vector.load %arg12[%c0_247, %c0_248, %c0_249] : memref<16x16x128xf32, #tpu.memory_space<vmem>>, vector<16x16x128xf32>
    %789 = vector.shape_cast %788 : vector<16x16x128xf32> to vector<256x128xf32>
    %c0_250 = arith.constant 0 : index
    %c0_251 = arith.constant 0 : index
    %c0_252 = arith.constant 0 : index
    %790 = vector.load %arg13[%c0_250, %c0_251, %c0_252] : memref<16x16x128xf32, #tpu.memory_space<vmem>>, vector<16x16x128xf32>
    %791 = vector.shape_cast %790 : vector<16x16x128xf32> to vector<256x128xf32>
    %792 = arith.select %787, %789, %791 : vector<256x128xi1>, vector<256x128xf32>
    %793 = arith.truncf %792 : vector<256x128xf32> to vector<256x128xbf16>
    %c0_253 = arith.constant 0 : index
    %c0_254 = arith.constant 0 : index
    %794 = vector.load %arg7[%c0_253, %c0_254] : memref<128x128xbf16, #tpu.memory_space<vmem>>, vector<128x128xbf16>
    %cst_255 = arith.constant dense<0.000000e+00> : vector<256x128xf32>
    %795 = tpu.matmul %793, %794, %cst_255 {dimension_numbers = #tpu.dot_dimension_numbers<[1], [0], [0], [1], [0, 0, 1, 1], [], []>} : vector<256x128xbf16>, vector<128x128xbf16>, vector<256x128xf32> -> vector<256x128xf32>
    %c0_256 = arith.constant 0 : index
    %c0_257 = arith.constant 0 : index
    %796 = vector.load %arg8[%c0_256, %c0_257] : memref<1x128xf32, #tpu.memory_space<vmem>>, vector<1x128xf32>
    %797 = vector.broadcast %796 : vector<1x128xf32> to vector<256x128xf32>
    %798 = arith.addf %795, %797 : vector<256x128xf32>
    %799 = vector.shape_cast %798 : vector<256x128xf32> to vector<16x16x128xf32>
    %c0_258 = arith.constant 0 : index
    %c0_259 = arith.constant 0 : index
    %c0_260 = arith.constant 0 : index
    %800 = vector.load %arg9[%c0_258, %c0_259, %c0_260] : memref<16x16x128xf32, #tpu.memory_space<vmem>>, vector<16x16x128xf32>
    tpu.vector_store %arg9[%c0_258, %c0_259, %c0_260], %799 {strides = array<i32>} : memref<16x16x128xf32, #tpu.memory_space<vmem>>, vector<16x16x128xf32>,
    return
  }
  func.func @transform_0(%arg0: i32) -> (i32, i32, i32) {
    %c0_i32 = arith.constant 0 : i32
    %c0_i32_0 = arith.constant 0 : i32
    %c0_i32_1 = arith.constant 0 : i32
    return %c0_i32, %arg0, %c0_i32_0 : i32, i32, i32
  }
  func.func @transform_1(%arg0: i32) -> (i32, i32) {
    %c0_i32 = arith.constant 0 : i32
    %c0_i32_0 = arith.constant 0 : i32
    return %arg0, %c0_i32 : i32, i32
  }
  func.func @transform_2(%arg0: i32) -> (i32, i32) {
    %c0_i32 = arith.constant 0 : i32
    %c0_i32_0 = arith.constant 0 : i32
    %c0_i32_1 = arith.constant 0 : i32
    return %c0_i32, %c0_i32_0 : i32, i32
  }
  func.func @transform_3(%arg0: i32) -> (i32, i32) {
    %c0_i32 = arith.constant 0 : i32
    %c0_i32_0 = arith.constant 0 : i32
    %c0_i32_1 = arith.constant 0 : i32
    return %c0_i32, %c0_i32_0 : i32, i32
  }
  func.func @transform_4(%arg0: i32) -> (i32, i32) {
    %c0_i32 = arith.constant 0 : i32
    %c0_i32_0 = arith.constant 0 : i32
    %c0_i32_1 = arith.constant 0 : i32
    return %c0_i32, %c0_i32_0 : i32, i32
  }
  func.func @transform_5(%arg0: i32) -> (i32, i32) {
    %c0_i32 = arith.constant 0 : i32
    %c0_i32_0 = arith.constant 0 : i32
    %c0_i32_1 = arith.constant 0 : i32
    return %c0_i32, %c0_i32_0 : i32, i32
  }
  func.func @transform_6(%arg0: i32) -> (i32, i32) {
    %c0_i32 = arith.constant 0 : i32
    %c0_i32_0 = arith.constant 0 : i32
    %c0_i32_1 = arith.constant 0 : i32
    return %c0_i32, %c0_i32_0 : i32, i32
  }
  func.func @transform_7(%arg0: i32) -> (i32, i32) {
    %c0_i32 = arith.constant 0 : i32
    %c0_i32_0 = arith.constant 0 : i32
    %c0_i32_1 = arith.constant 0 : i32
    return %c0_i32, %c0_i32_0 : i32, i32
  }
  func.func @transform_8(%arg0: i32) -> (i32, i32, i32) {
    %c0_i32 = arith.constant 0 : i32
    %c0_i32_0 = arith.constant 0 : i32
    %c0_i32_1 = arith.constant 0 : i32
    return %c0_i32, %arg0, %c0_i32_0 : i32, i32, i32
  }
  func.func @transform_9(%arg0: i32) -> (i32, i32) {
    %c0_i32 = arith.constant 0 : i32
    %c0_i32_0 = arith.constant 0 : i32
    return %arg0, %c0_i32 : i32, i32
  }
}

</mosaic_0001>

<bundles_post_ra>
// kernel: tpu_custom_call.1
= control target key start
LH: loop header
LB: loop body
LE: loop exit
PB: predicated region body
PF: predicated region fallthrough
CT: control target
= control target key end

     0   :  { %15 = vsyncpa [#allocation6], 0  ;;  %s7591_s0 = inlined_call_operand.hbm [shape: f32[16,16,128], index: 0, kind: input, shape index: {}]   ;;  %s7592_s1 = inlined_call_operand.hbm [shape: f32[16,128], index: 1, kind: input, shape index: {}]   ;;  %s7593_s2 = inlined_call_operand.hbm [shape: bf16[128,384], index: 2, kind: input, shape index: {}]   ;;  %s7594_s3 = inlined_call_operand.vmem [shape: f32[1,384], index: 3, kind: input, shape index: {}]   ;;  %s7595_s4 = inlined_call_operand.hbm [shape: bf16[128,384], index: 4, kind: input, shape index: {}]   ;;  %s7596_s5 = inlined_call_operand.vmem [shape: f32[1,128], index: 5, kind: input, shape index: {}]   ;;  %s7597_s6 = inlined_call_operand.hbm [shape: bf16[128,128], index: 6, kind: input, shape index: {}]   ;;  %s7598_s7 = inlined_call_operand.vmem [shape: f32[1,128], index: 7, kind: input, shape index: {}]   ;;  %s7599_s8 = inlined_call_operand.hbm [shape: f32[16,16,128], index: 8, kind: output, shape index: {0}]   ;;  %s7600_s9 = inlined_call_operand.hbm [shape: f32[16,128], index: 9, kind: output, shape index: {1}]  }
   0x1   :  { %16 = vsyncpa [#allocation9], 0 }
   0x2   :  { %17 = vsyncpa [#allocation12], 0 }
   0x3   :  { %18 = vsyncpa [#allocation7], 0 }
   0x4   :  { %19 = vsyncpa [#allocation16], 0  ;;  %s5248_s30 = smov [#allocation8]   ;;  %s5084_s13 = scalar_lea.hbm %s7592_s1, 256 }
   0x5   :  { %s37_s10 = sshll.u32 %s5248_s30, 4  ;;  %p5085_p0 = scmp.ne.s32.totalorder %s7592_s1, %s5084_s13  ;;  %s38_s10 = int_to_ptr.vmem [resolvable:$true] %s37_s10 }
   0x6   :  { %p5088_p1 = scmp.lt.u32.totalorder %s5084_s13, %s7592_s1 }
   0x8   :  { %p5090_p2 = pnand %p5088_p1, %p5085_p0 }
   0xa   :  { %5093 = shalt.err (!%p5090_p2)
}
   0xb   :  { %s5094_s18 = scalar_lea.vmem %s38_s10, 256  ;;  %p5099_p4 = scmp.lt.s32.totalorder %s38_s10, %s38_s10 }
   0xc   :  { %p5095_p3 = scmp.ne.s32.totalorder %s38_s10, %s5094_s18  ;;  %p5100_p5 = scmp.lt.s32.totalorder %s5094_s18, %s5094_s18 }
   0xe   :  { %p5101_p6 = por %p5100_p5, %p5099_p4 }
  0x10   :  { %p5102_p7 = pnand %p5101_p6, %p5095_p3 }
  0x12   :  { %5105 = shalt.err (!%p5102_p7)
}
  0x13   :  { %s5249_s19 = smov 128   ;;  %s5250_s20 = smov 8  }
  0x14   :  { %43 = dma.hbm_to_vmem [thread:$0]  %s7592_s1, 256, %s38_s10, [#allocation9], %s5249_s19, %s5249_s19, %s5250_s20  }
  0x15   :  { %s5251_s23 = smov [#allocation11]   ;;  %s5252_s25 = smov [#allocation5]  }
  0x16   :  { %s63_s24 = sshll.u32 %s5251_s23, 4  ;;  %s25_s26 = sshll.u32 %s5252_s25, 4  ;;  %s64_s24 = int_to_ptr.vmem [resolvable:$true] %s63_s24  ;;  %s26_s26 = int_to_ptr.vmem [resolvable:$true] %s25_s26 }
  0x17   :  { %s5106_s29 = scalar_lea.hbm %s7595_s4, 3072 }
  0x18   :  { %p5107_p8 = scmp.ne.s32.totalorder %s7595_s4, %s5106_s29  ;;  %p5110_p9 = scmp.lt.u32.totalorder %s5106_s29, %s7595_s4 }
  0x1a   :  { %p5112_p10 = pnand %p5110_p9, %p5107_p8 }
  0x1c   :  { %5115 = shalt.err (!%p5112_p10)
}
  0x1d   :  { %s5116_s1 = scalar_lea.vmem %s64_s24, 3072  ;;  %p5121_p12 = scmp.lt.s32.totalorder %s64_s24, %s64_s24 }
  0x1e   :  { %p5117_p11 = scmp.ne.s32.totalorder %s64_s24, %s5116_s1  ;;  %p5122_p13 = scmp.lt.s32.totalorder %s5116_s1, %s5116_s1 }
  0x20   :  { %p5123_p0 = por %p5122_p13, %p5121_p12 }
  0x22   :  { %p5124_p1 = pnand %p5123_p0, %p5117_p11 }
  0x24   :  { %5127 = shalt.err (!%p5124_p1)
}
  0x25   :  { %s5253_s10 = smov 192   ;;  %s5254_s14 = smov 12  }
  0x26   :  { %69 = dma.hbm_to_vmem [thread:$0]  %s7595_s4, 3072, %s64_s24, [#allocation12], %s5253_s10, %s5253_s10, %s5254_s14  }
  0x27   :  { %s5128_s21 = scalar_lea.hbm %s7591_s0, 4096 }
  0x28   :  { %p5129_p2 = scmp.ne.s32.totalorder %s7591_s0, %s5128_s21  ;;  %p5132_p3 = scmp.lt.u32.totalorder %s5128_s21, %s7591_s0 }
  0x2a   :  { %p5134_p4 = pnand %p5132_p3, %p5129_p2 }
  0x2c   :  { %5137 = shalt.err (!%p5134_p4)
}
  0x2d   :  { %s5138_s28 = scalar_lea.vmem %s26_s26, 4096  ;;  %p5143_p6 = scmp.lt.s32.totalorder %s26_s26, %s26_s26 }
  0x2e   :  { %p5139_p5 = scmp.ne.s32.totalorder %s26_s26, %s5138_s28  ;;  %p5144_p7 = scmp.lt.s32.totalorder %s5138_s28, %s5138_s28 }
  0x30   :  { %p5145_p8 = por %p5144_p7, %p5143_p6 }
  0x32   :  { %p5146_p9 = pnand %p5145_p8, %p5139_p5 }
  0x34   :  { %5149 = shalt.err (!%p5146_p9)
}
  0x35   :  { %31 = dma.hbm_to_vmem [thread:$0]  %s7591_s0, 4096, %s26_s26, [#allocation6], %s5249_s19, %s5249_s19, %s5250_s20  }
  0x36   :  { %s5255_s29 = smov [#allocation10]   ;;  %s5256_s11 = smov [#allocation13]  }
  0x37   :  { %s49_s30 = sshll.u32 %s5255_s29, 4  ;;  %s77_s12 = sshll.u32 %s5256_s11, 4  ;;  %s50_s30 = int_to_ptr.vmem [resolvable:$true] %s49_s30  ;;  %s78_s12 = int_to_ptr.vmem [resolvable:$true] %s77_s12 }
  0x38   :  { %s5150_s15 = scalar_lea.hbm %s7593_s2, 3072 }
  0x39   :  { %p5151_p10 = scmp.ne.s32.totalorder %s7593_s2, %s5150_s15  ;;  %p5154_p11 = scmp.lt.u32.totalorder %s5150_s15, %s7593_s2 }
  0x3b   :  { %p5156_p12 = pnand %p5154_p11, %p5151_p10 }
  0x3d   :  { %5159 = shalt.err (!%p5156_p12)
}
  0x3e   :  { %s5160_s0 = scalar_lea.vmem %s50_s30, 3072  ;;  %p5165_p0 = scmp.lt.s32.totalorder %s50_s30, %s50_s30 }
  0x3f   :  { %p5161_p13 = scmp.ne.s32.totalorder %s50_s30, %s5160_s0  ;;  %p5166_p1 = scmp.lt.s32.totalorder %s5160_s0, %s5160_s0 }
  0x41   :  { %p5167_p2 = por %p5166_p1, %p5165_p0 }
  0x43   :  { %p5168_p3 = pnand %p5167_p2, %p5161_p13 }
  0x45   :  { %5171 = shalt.err (!%p5168_p3)
}
  0x46   :  { %55 = dma.hbm_to_vmem [thread:$0]  %s7593_s2, 3072, %s50_s30, [#allocation9], %s5253_s10, %s5253_s10, %s5254_s14  }
  0x47   :  { %s5172_s27 = scalar_lea.hbm %s7597_s6, 1024 }
  0x48   :  { %p5173_p4 = scmp.ne.s32.totalorder %s7597_s6, %s5172_s27  ;;  %p5176_p5 = scmp.lt.u32.totalorder %s5172_s27, %s7597_s6 }
  0x4a   :  { %p5178_p6 = pnand %p5176_p5, %p5173_p4 }
  0x4c   :  { %5181 = shalt.err (!%p5178_p6)
}
  0x4d   :  { %s5182_s11 = scalar_lea.vmem %s78_s12, 1024  ;;  %p5187_p8 = scmp.lt.s32.totalorder %s78_s12, %s78_s12 }
  0x4e   :  { %p5183_p7 = scmp.ne.s32.totalorder %s78_s12, %s5182_s11  ;;  %p5188_p9 = scmp.lt.s32.totalorder %s5182_s11, %s5182_s11 }
  0x50   :  { %p5189_p10 = por %p5188_p9, %p5187_p8 }
  0x52   :  { %p5190_p11 = pnand %p5189_p10, %p5183_p7 }
  0x54   :  { %5193 = shalt.err (!%p5190_p11)
}
  0x55   :  { %s5257_s2 = smov 64   ;;  %s5258_s10 = smov 4  }
  0x56   :  { %83 = dma.hbm_to_vmem [thread:$0]  %s7597_s6, 1024, %s78_s12, [#allocation12], %s5257_s2, %s5257_s2, %s5258_s10  }
  0x57   :  { %5238 = dma.done.wait [#allocation6], 4096  }
  0x58   :  { %5239 = vsyncadd [#allocation6], 4294963200 }
  0x59   :  { %5240 = dma.done.wait [#allocation9], 3328  }
  0x5a   :  { %5241 = vsyncadd [#allocation9], 4294963968 }
  0x5b   :  { %5242 = dma.done.wait [#allocation12], 4096  }
  0x5c   :  { %5243 = vsyncadd [#allocation12], 4294963200  ;;  %v7601_v0 = vmov 0   ;;  %v4626_v1 = vld [vmem:[#allocation10 + $0x4] ss:$12 sps:$4 sm:$0xff]   ;;  %v103_v18 = vld [vmem:[#allocation5 + $0x8] sm:$0xff] }
  0x5d   :  { %359 = vmatprep.mubr.bf16.mxu0 %v7601_v0  ;;  %469 = vmatprep.mubr.bf16.mxu1 %v7601_v0  ;;  %v4628_v2 = vld [vmem:[#allocation10] ss:$12 sps:$4 sm:$0xff]   ;;  %v4629_v3 = vld [vmem:[#allocation10 + $0x1c] ss:$12 sps:$4 sm:$0xff]   ;;  %v4631_v4 = vld [vmem:[#allocation10 + $0x18] ss:$12 sps:$4 sm:$0xff]  }
  0x5e   :  { %327 = vmatprep.subr.bf16.mxu0 %v4626_v1  ;;  %4594 = vmatprep.subr.bf16.mxu1 %v4626_v1  ;;  %v4632_v5 = vld [vmem:[#allocation10 + $0x34] ss:$12 sps:$4 sm:$0xff]   ;;  %v4634_v6 = vld [vmem:[#allocation10 + $0x30] ss:$12 sps:$4 sm:$0xff]   ;;  %v4635_v7 = vld [vmem:[#allocation10 + $0x4c] ss:$12 sps:$4 sm:$0xff]  }
  0x5f   :  { %328 = vmatpush1.bf16.msra.mxu0 %v4628_v2  ;;  %4602 = vmatpush1.bf16.msra.mxu1 %v4628_v2  ;;  %v4637_v8 = vld [vmem:[#allocation10 + $0x48] ss:$12 sps:$4 sm:$0xff]   ;;  %v4638_v9 = vld [vmem:[#allocation10 + $0x64] ss:$12 sps:$4 sm:$0xff]   ;;  %v4640_v10 = vld [vmem:[#allocation10 + $0x60] ss:$12 sps:$4 sm:$0xff]  }
  0x60   :  { %329 = vmatprep.subr.bf16.mxu0 %v4629_v3  ;;  %4595 = vmatprep.subr.bf16.mxu1 %v4629_v3  ;;  %v4641_v11 = vld [vmem:[#allocation10 + $0x7c] ss:$12 sps:$4 sm:$0xff]   ;;  %v4643_v12 = vld [vmem:[#allocation10 + $0x78] ss:$12 sps:$4 sm:$0xff]   ;;  %v4644_v13 = vld [vmem:[#allocation10 + $0x94] ss:$12 sps:$4 sm:$0xff]  }
  0x61   :  { %v4646_v14 = vld [vmem:[#allocation10 + $0x90] ss:$12 sps:$4 sm:$0xff]   ;;  %v4647_v15 = vld [vmem:[#allocation10 + $0xac] ss:$12 sps:$4 sm:$0xff]   ;;  %v4649_v16 = vld [vmem:[#allocation10 + $0xa8] ss:$12 sps:$4 sm:$0xff]  }
  0x62   :  { %v102_v17 = vld [vmem:[#allocation5] sm:$0xff]  ;;  %v124_v19 = vld [vmem:[#allocation5 + $0xb0] sm:$0xff]  ;;  %v125_v20 = vld [vmem:[#allocation5 + $0xb8] sm:$0xff]  ;;  %vm5261_vm0 = vmmov 0  }
  0x63   :  { %330 = vmatpush1.bf16.msra.mxu0 %v4631_v4  ;;  %4603 = vmatpush1.bf16.msra.mxu1 %v4631_v4  ;;  %v4650_v21 = vld [vmem:[#allocation10 + $0x8] ss:$12 sps:$4 sm:$0xff]   ;;  %v5388_v22 = vpack.c.bf16 %v103_v18, %v102_v17  ;;  %v5390_v23 = vpack.c.bf16 %v125_v20, %v124_v19  ;;  %v5392_v24 = vld [vmem:[#allocation11 + $0x4] ss:$12 sps:$4 sm:$0xff]   ;;  %v4651_v25 = vld [vmem:[#allocation10 + $0x20] ss:$12 sps:$4 sm:$0xff]  }
  0x64   :  { %331 = vmatprep.subr.bf16.mxu0 %v4632_v5  ;;  %4596 = vmatprep.subr.bf16.mxu1 %v4632_v5  ;;  %v104_v26 = vld [vmem:[#allocation5 + $0x10] sm:$0xff]  ;;  %v105_v27 = vld [vmem:[#allocation5 + $0x18] sm:$0xff]  ;;  %v126_v28 = vld [vmem:[#allocation5 + $0xc0] sm:$0xff] }
  0x65   :  { %v127_v29 = vld [vmem:[#allocation5 + $0xc8] sm:$0xff]  ;;  %v5398_v31 = vld [vmem:[#allocation11] ss:$12 sps:$4 sm:$0xff]   ;;  %v5404_v33 = vpack.c.bf16 %v105_v27, %v104_v26  ;;  %v106_v37 = vld [vmem:[#allocation5 + $0x20] sm:$0xff]  ;;  %v7603_v27 = vmov 0.0  }
  0x66   :  { %v4652_v30 = vld [vmem:[#allocation10 + $0x38] ss:$12 sps:$4 sm:$0xff]   ;;  %v5401_v32 = vld [vmem:[#allocation11 + $0x1c] ss:$12 sps:$4 sm:$0xff]   ;;  %v5406_v34 = vpack.c.bf16 %v127_v29, %v126_v28  ;;  %v5415_v42 = vld [vmem:[#allocation11 + $0x34] ss:$12 sps:$4 sm:$0xff]  }
  0x67   :  { %332 = vmatpush1.bf16.msra.mxu0 %v4634_v6  ;;  %4604 = vmatpush1.bf16.msra.mxu1 %v4634_v6  ;;  %v5409_v35 = vld [vmem:[#allocation11 + $0x18] ss:$12 sps:$4 sm:$0xff]   ;;  %v4653_v36 = vld [vmem:[#allocation10 + $0x50] ss:$12 sps:$4 sm:$0xff]   ;;  %v129_v40 = vld [vmem:[#allocation5 + $0xd8] sm:$0xff] }
  0x68   :  { %333 = vmatprep.subr.bf16.mxu0 %v4635_v7  ;;  %4597 = vmatprep.subr.bf16.mxu1 %v4635_v7  ;;  %v107_v38 = vld [vmem:[#allocation5 + $0x28] sm:$0xff]  ;;  %v128_v39 = vld [vmem:[#allocation5 + $0xd0] sm:$0xff]  ;;  %v4654_v41 = vld [vmem:[#allocation10 + $0x68] ss:$12 sps:$4 sm:$0xff]  }
  0x69   :  { %v5418_v43 = vld [vmem:[#allocation11 + $0x30] ss:$12 sps:$4 sm:$0xff]   ;;  %v5420_v44 = vld [vmem:[#allocation11 + $0x4c] ss:$12 sps:$4 sm:$0xff]   ;;  %v5423_v45 = vpack.c.bf16 %v107_v38, %v106_v37  ;;  %v5425_v46 = vpack.c.bf16 %v129_v40, %v128_v39  ;;  %v108_v48 = vld [vmem:[#allocation5 + $0x30] sm:$0xff] }
  0x6a   :  { %v4655_v47 = vld [vmem:[#allocation10 + $0x80] ss:$12 sps:$4 sm:$0xff]   ;;  %v130_v50 = vld [vmem:[#allocation5 + $0xe0] sm:$0xff]  ;;  %v131_v51 = vld [vmem:[#allocation5 + $0xe8] sm:$0xff] }
  0x6b   :  { %334 = vmatpush1.bf16.msra.mxu0 %v4637_v8  ;;  %4605 = vmatpush1.bf16.msra.mxu1 %v4637_v8  ;;  %v109_v49 = vld [vmem:[#allocation5 + $0x38] sm:$0xff]  ;;  %v4656_v53 = vld [vmem:[#allocation10 + $0x98] ss:$12 sps:$4 sm:$0xff]   ;;  %v5438_v56 = vpack.c.bf16 %v131_v51, %v130_v50  ;;  %v4657_v58 = vld [vmem:[#allocation10 + $0xb0] ss:$12 sps:$4 sm:$0xff]  }
  0x6c   :  { %335 = vmatprep.subr.bf16.mxu0 %v4638_v9  ;;  %4598 = vmatprep.subr.bf16.mxu1 %v4638_v9  ;;  %v5429_v52 = vld [vmem:[#allocation11 + $0x48] ss:$12 sps:$4 sm:$0xff]   ;;  %v5434_v54 = vld [vmem:[#allocation11 + $0x64] ss:$12 sps:$4 sm:$0xff]   ;;  %v137_v55 = vpack.c.bf16 %v109_v49, %v108_v48  ;;  %v5441_v57 = vld [vmem:[#allocation11 + $0x60] ss:$12 sps:$4 sm:$0xff]  }
  0x6d   :  { %v110_v59 = vld [vmem:[#allocation5 + $0x40] sm:$0xff]  ;;  %v111_v60 = vld [vmem:[#allocation5 + $0x48] sm:$0xff]  ;;  %v132_v62 = vld [vmem:[#allocation5 + $0xf0] sm:$0xff] }
  0x6e   :  { %v5445_v61 = vld [vmem:[#allocation11 + $0x7c] ss:$12 sps:$4 sm:$0xff]   ;;  %v5449_v1 = vld [vmem:[#allocation11 + $0x78] ss:$12 sps:$4 sm:$0xff]   ;;  %v5451_v2 = vld [vmem:[#allocation11 + $0x94] ss:$12 sps:$4 sm:$0xff]   ;;  %v138_v3 = vpack.c.bf16 %v111_v60, %v110_v59 }
  0x6f   :  { %336 = vmatpush1.bf16.msra.mxu0 %v4640_v10  ;;  %4606 = vmatpush1.bf16.msra.mxu1 %v4640_v10  ;;  %v133_v63 = vld [vmem:[#allocation5 + $0xf8] sm:$0xff]  ;;  %v5458_v5 = vld [vmem:[#allocation11 + $0x90] ss:$12 sps:$4 sm:$0xff]   ;;  %v112_v8 = vld [vmem:[#allocation5 + $0x50] sm:$0xff] }
  0x70   :  { %337 = vmatprep.subr.bf16.mxu0 %v4641_v11  ;;  %4599 = vmatprep.subr.bf16.mxu1 %v4641_v11  ;;  %v5455_v4 = vpack.c.bf16 %v133_v63, %v132_v62  ;;  %v5463_v6 = vld [vmem:[#allocation11 + $0xac] ss:$12 sps:$4 sm:$0xff]   ;;  %v5466_v7 = vld [vmem:[#allocation11 + $0xa8] ss:$12 sps:$4 sm:$0xff]   ;;  %v120_v20 = vld [vmem:[#allocation5 + $0x90] sm:$0xff] }
  0x71   :  { %v113_v9 = vld [vmem:[#allocation5 + $0x58] sm:$0xff]  ;;  %v114_v11 = vld [vmem:[#allocation5 + $0x60] sm:$0xff]  ;;  %v119_v18 = vld [vmem:[#allocation5 + $0x88] sm:$0xff] }
  0x72   :  { %v139_v10 = vpack.c.bf16 %v113_v9, %v112_v8  ;;  %v118_v17 = vld [vmem:[#allocation5 + $0x80] sm:$0xff]  ;;  %v5504_v29 = vld [vmem:[#allocation8 + $0x8] sm:$0xff] }
  0x73   :  { %338 = vmatpush1.bf16.msra.mxu0 %v4643_v12  ;;  %4607 = vmatpush1.bf16.msra.mxu1 %v4643_v12  ;;  %v115_v12 = vld [vmem:[#allocation5 + $0x68] sm:$0xff]  ;;  %v142_v19 = vpack.c.bf16 %v119_v18, %v118_v17  ;;  %v5502_v28 = vld [vmem:[#allocation8] sm:$0xff] }
  0x74   :  { %339 = vmatprep.subr.bf16.mxu0 %v4644_v13  ;;  %4600 = vmatprep.subr.bf16.mxu1 %v4644_v13  ;;  %v140_v13 = vpack.c.bf16 %v115_v12, %v114_v11  ;;  %v5537_v37 = vld [vmem:[#allocation11 + $0xb0] ss:$12 sps:$4 sm:$0xff]  }
  0x75   :  { %v5583_v63 = vld [vmem:[%s7594_s3] sm:$0x7] }
  0x77   :  { %340 = vmatpush1.bf16.msra.mxu0 %v4646_v14  ;;  %4608 = vmatpush1.bf16.msra.mxu1 %v4646_v14  ;;  %v116_v14 = vld [vmem:[#allocation5 + $0x70] sm:$0xff] }
  0x78   :  { %341 = vmatprep.subr.bf16.mxu0 %v4647_v15  ;;  %4601 = vmatprep.subr.bf16.mxu1 %v4647_v15  ;;  %v117_v15 = vld [vmem:[#allocation5 + $0x78] sm:$0xff] }
  0x7b   :  { %342 = vmatpush1.bf16.msra.mxu0 %v4649_v16  ;;  %4609 = vmatpush1.bf16.msra.mxu1 %v4649_v16  ;;  %v141_v16 = vpack.c.bf16 %v117_v15, %v116_v14 }
  0x7c   :  { %4178 = vmatprep.subr.bf16.mxu1 %v4650_v21  ;;  %1163 = vmatprep.subr.bf16.mxu0 %v5392_v24 }
  0x7e   :  { %360 = vmatmul.mubr.bf16.vlgmr.msra.gmra.mrb[0].mxu0 %v5388_v22  ;;  %470 = vmatmul.mubr.bf16.vlgmr.msra.gmra.mrb[0].mxu1 %v5390_v23 }
  0x7f   :  { %4179 = vmatpush3.bf16.msra.mxu1 %v4650_v21  ;;  %369 = vmatprep.mubr.bf16.mxu0 %v7601_v0  ;;  %v121_v21 = vld [vmem:[#allocation5 + $0x98] sm:$0xff] }
  0x80   :  { %4180 = vmatprep.subr.bf16.mxu1 %v4651_v25  ;;  %479 = vmatprep.mubr.bf16.mxu1 %v7601_v0 }
  0x81   :  { %1164 = vmatpush1.bf16.msra.mxu0 %v5398_v31 }
  0x82   :  { %1165 = vmatprep.subr.bf16.mxu0 %v5401_v32 }
  0x83   :  { %4181 = vmatpush3.bf16.msra.mxu1 %v4651_v25  ;;  %v143_v25 = vpack.c.bf16 %v121_v21, %v120_v20 }
  0x84   :  { %4182 = vmatprep.subr.bf16.mxu1 %v4652_v30 }
  0x85   :  { %1166 = vmatpush1.bf16.msra.mxu0 %v5409_v35 }
  0x86   :  { %370 = vmatmul.mubr.bf16.gmra.mrb[4].mxu0 %v5404_v33  ;;  %480 = vmatmul.mubr.bf16.gmra.mrb[4].mxu1 %v5406_v34 }
  0x87   :  { %4183 = vmatpush3.bf16.msra.mxu1 %v4652_v30  ;;  %379 = vmatprep.mubr.bf16.mxu0 %v7601_v0  ;;  %v5508_v30 = vld [vmem:[#allocation11 + $0x8] ss:$12 sps:$4 sm:$0xff]  }
  0x88   :  { %489 = vmatprep.mubr.bf16.mxu1 %v7601_v0  ;;  %4184 = vmatprep.subr.bf16.mxu1 %v4653_v36 }
  0x89   :  { %1167 = vmatprep.subr.bf16.mxu0 %v5415_v42 }
  0x8a   :  { %1168 = vmatpush1.bf16.msra.mxu0 %v5418_v43 }
  0x8b   :  { %4185 = vmatpush3.bf16.msra.mxu1 %v4653_v36  ;;  %1169 = vmatprep.subr.bf16.mxu0 %v5420_v44  ;;  %v5533_v36 = vld [vmem:[#allocation11 + $0x98] ss:$12 sps:$4 sm:$0xff]  }
  0x8c   :  { %4186 = vmatprep.subr.bf16.mxu1 %v4654_v41 }
  0x8e   :  { %380 = vmatmul.mubr.bf16.gmra.mrb[8].mxu0 %v5423_v45  ;;  %490 = vmatmul.mubr.bf16.gmra.mrb[8].mxu1 %v5425_v46 }
  0x8f   :  { %4187 = vmatpush3.bf16.msra.mxu1 %v4654_v41  ;;  %389 = vmatprep.mubr.bf16.mxu0 %v7601_v0 }
  0x90   :  { %499 = vmatprep.mubr.bf16.mxu1 %v7601_v0  ;;  %4188 = vmatprep.subr.bf16.mxu1 %v4655_v47 }
  0x91   :  { %1170 = vmatpush1.bf16.msra.mxu0 %v5429_v52 }
  0x92   :  { %1171 = vmatprep.subr.bf16.mxu0 %v5434_v54 }
  0x93   :  { %4189 = vmatpush3.bf16.msra.mxu1 %v4655_v47 }
  0x94   :  { %4190 = vmatprep.subr.bf16.mxu1 %v4656_v53 }
  0x95   :  { %1172 = vmatpush1.bf16.msra.mxu0 %v5441_v57 }
  0x96   :  { %390 = vmatmul.mubr.bf16.gmra.mrb[12].mxu0 %v137_v55  ;;  %500 = vmatmul.mubr.bf16.gmra.mrb[12].mxu1 %v5438_v56 }
  0x97   :  { %399 = vmatprep.mubr.bf16.mxu0 %v7601_v0  ;;  %509 = vmatprep.mubr.bf16.mxu1 %v7601_v0 }
  0x98   :  { %4191 = vmatpush3.bf16.msra.mxu1 %v4656_v53  ;;  %1173 = vmatprep.subr.bf16.mxu0 %v5445_v61 }
  0x99   :  { %4192 = vmatprep.subr.bf16.mxu1 %v4657_v58  ;;  %1174 = vmatpush1.bf16.msra.mxu0 %v5449_v1 }
  0x9a   :  { %1175 = vmatprep.subr.bf16.mxu0 %v5451_v2 }
  0x9c   :  { %4193 = vmatpush3.bf16.msra.mxu1 %v4657_v58 }
  0x9d   :  { %1003 = vmatprep.subr.bf16.mxu1 %v5392_v24  ;;  %1176 = vmatpush1.bf16.msra.mxu0 %v5458_v5 }
  0x9e   :  { %400 = vmatmul.mubr.bf16.gmra.mrb[16].mxu0 %v138_v3  ;;  %510 = vmatmul.mubr.bf16.gmra.mrb[16].mxu1 %v5455_v4 }
  0x9f   :  { %4194 = vmatprep.mubr.bf16.mxu1 %v5388_v22  ;;  %409 = vmatprep.mubr.bf16.mxu0 %v7601_v0  ;;  %v122_v22 = vld [vmem:[#allocation5 + $0xa0] sm:$0xff] }
  0xa0   :  { %1177 = vmatprep.subr.bf16.mxu0 %v5463_v6 }
  0xa1   :  { %1178 = vmatpush1.bf16.msra.mxu0 %v5466_v7 }
  0xa2   :  { %1318 = vmatprep.subr.bf16.mxu0 %v5392_v24  ;;  %v123_v24 = vld [vmem:[#allocation5 + $0xa8] sm:$0xff] }
  0xa3   :  { %v144_v26 = vpack.c.bf16 %v123_v24, %v122_v22 }
  0xa6   :  { %4195 = vmatmul.mubr.bf16.vlgmr.msra.gmra.mrb[20].mxu1 %v5404_v33  ;;  %410 = vmatmul.mubr.bf16.gmra.mrb[20].mxu0 %v139_v10  ;;  %v5521_v33 = vld [vmem:[#allocation11 + $0x50] ss:$12 sps:$4 sm:$0xff]  }
  0xa7   :  { %1004 = vmatpush1.bf16.msra.mxu1 %v5398_v31  ;;  %4198 = vmatprep.mubr.bf16.mxu1 %v5423_v45  ;;  %v5511_v31 = vld [vmem:[#allocation11 + $0x20] ss:$12 sps:$4 sm:$0xff]  }
  0xa8   :  { %1005 = vmatprep.subr.bf16.mxu1 %v5401_v32  ;;  %419 = vmatprep.mubr.bf16.mxu0 %v7601_v0  ;;  %v5517_v32 = vld [vmem:[#allocation11 + $0x38] ss:$12 sps:$4 sm:$0xff]  }
  0xab   :  { %1006 = vmatpush1.bf16.msra.mxu1 %v5409_v35  ;;  %v5529_v35 = vld [vmem:[#allocation11 + $0x80] ss:$12 sps:$4 sm:$0xff]  }
  0xac   :  { %1007 = vmatprep.subr.bf16.mxu1 %v5415_v42 }
  0xae   :  { %4199 = vmatmul.mubr.bf16.gmra.mrb[24].mxu1 %v137_v55  ;;  %420 = vmatmul.mubr.bf16.gmra.mrb[24].mxu0 %v140_v13 }
  0xaf   :  { %4202 = vmatprep.mubr.bf16.mxu1 %v138_v3  ;;  %1008 = vmatpush1.bf16.msra.mxu1 %v5418_v43 }
  0xb0   :  { %1009 = vmatprep.subr.bf16.mxu1 %v5420_v44  ;;  %429 = vmatprep.mubr.bf16.mxu0 %v7601_v0  ;;  %v184_v44 = vlaneseq }
  0xb2   :  { %v5574_v47 = vand.u32 127, %v184_v44  ;;  %v5576_v48 = vshrl.u32 %v184_v44, 7 }
  0xb3   :  { %1010 = vmatpush1.bf16.msra.mxu1 %v5429_v52 }
  0xb4   :  { %1011 = vmatprep.subr.bf16.mxu1 %v5434_v54  ;;  %7737 = vst [vmem:[#allocation22_spill] sm:$0xff] %v5574_v47  ;;  %v812_v55 = vadd.s32 128, %v5574_v47  ;;  %v186_v59 = vsub.s32 0, %v5576_v48  ;;  %v190_v3 = vsub.s32 1, %v5576_v48  ;;  %vm850_vm1 = vcmp.lt.s32.totalorder %v5574_v47, 64 }
  0xb6   :  { %4203 = vmatmul.mubr.bf16.gmra.mrb[28].mxu1 %v139_v10  ;;  %430 = vmatmul.mubr.bf16.gmra.mrb[28].mxu0 %v141_v16  ;;  %v5587_v8 = vrot.slane %v5583_v63, %v186_v59  ;;  %v5590_v9 = vrot.slane %v5583_v63, %v190_v3 }
  0xb7   :  { %4206 = vmatprep.mubr.bf16.mxu1 %v140_v13  ;;  %1012 = vmatpush1.bf16.msra.mxu1 %v5441_v57 }
  0xb8   :  { %1013 = vmatprep.subr.bf16.mxu1 %v5445_v61  ;;  %439 = vmatprep.mubr.bf16.mxu0 %v7601_v0 }
  0xbb   :  { %1014 = vmatpush1.bf16.msra.mxu1 %v5449_v1 }
  0xbc   :  { %1015 = vmatprep.subr.bf16.mxu1 %v5451_v2 }
  0xbe   :  { %4207 = vmatmul.mubr.bf16.gmra.mrb[32].mxu1 %v141_v16  ;;  %440 = vmatmul.mubr.bf16.gmra.mrb[32].mxu0 %v142_v19 }
  0xbf   :  { %4210 = vmatprep.mubr.bf16.mxu1 %v142_v19  ;;  %1016 = vmatpush1.bf16.msra.mxu1 %v5458_v5 }
  0xc0   :  { %1017 = vmatprep.subr.bf16.mxu1 %v5463_v6  ;;  %449 = vmatprep.mubr.bf16.mxu0 %v7601_v0 }
  0xc3   :  { %1018 = vmatpush1.bf16.msra.mxu1 %v5466_v7 }
  0xc4   :  { %4226 = vmatprep.subr.bf16.mxu1 %v7603_v27 }
  0xc6   :  { %4211 = vmatmul.mubr.bf16.gmra.mrb[36].mxu1 %v143_v25  ;;  %450 = vmatmul.mubr.bf16.gmra.mrb[36].mxu0 %v143_v25 }
  0xc7   :  { %4214 = vmatprep.mubr.bf16.mxu1 %v144_v26  ;;  %459 = vmatprep.mubr.bf16.mxu0 %v7601_v0 }
  0xce   :  { %4215 = vmatmul.mubr.bf16.gmra.mrb[40].mxu1 %v5390_v23  ;;  %460 = vmatmul.mubr.bf16.gmra.mrb[40].mxu0 %v144_v26  ;;  %v874_v23 = vpack.c.bf16 %v5504_v29, %v5502_v28 }
  0xcf   :  { %4218 = vmatprep.mubr.bf16.mxu1 %v5406_v34  ;;  %1195 = vmatprep.mubr.bf16.mxu0 %v7601_v0  ;;  %v5525_v34 = vld [vmem:[#allocation11 + $0x68] ss:$12 sps:$4 sm:$0xff]  }
  0xd6   :  { %4219 = vmatmul.mubr.bf16.gmra.mrb[44].mxu1 %v5425_v46 }
  0xd7   :  { %4222 = vmatprep.mubr.bf16.mxu1 %v5438_v56 }
  0xde   :  { %4223 = vmatmul.mubr.bf16.gmra.mrb[48].mxu1 %v5455_v4  ;;  %v825_v4 = vand.u32 127, %v812_v55 }
  0xdf   :  { %1035 = vmatprep.mubr.bf16.mxu1 %v7601_v0 }
  0xe0   :  { %vm5595_vm2 = vcmp.lt.s32.totalorder %v825_v4, 64 }
  0xe6   :  { %1036 = vmatmul.mubr.bf16.vlgmr.msra.gmra.mrb[52].mxu1 %v874_v23 }
  0xe7   :  { %4227 = vmatpush3.bf16.msra.mxu1 %v5508_v30  ;;  %4242 = vmatprep.mubr.msk.bf16.mxu1 %vm5261_vm0, %v7603_v27 }
  0xe8   :  { %4228 = vmatprep.subr.bf16.mxu1 %v7603_v27 }
  0xeb   :  { %4229 = vmatpush3.bf16.msra.mxu1 %v5511_v31 }
  0xec   :  { %4230 = vmatprep.subr.bf16.mxu1 %v7603_v27 }
  0xef   :  { %4231 = vmatpush3.bf16.msra.mxu1 %v5517_v32 }
  0xf0   :  { %4232 = vmatprep.subr.bf16.mxu1 %v7603_v27 }
  0xf3   :  { %4233 = vmatpush3.bf16.msra.mxu1 %v5521_v33 }
  0xf4   :  { %4234 = vmatprep.subr.bf16.mxu1 %v7603_v27 }
  0xf7   :  { %4235 = vmatpush3.bf16.msra.mxu1 %v5525_v34 }
  0xf8   :  { %4236 = vmatprep.subr.bf16.mxu1 %v7603_v27 }
  0xfb   :  { %4237 = vmatpush3.bf16.msra.mxu1 %v5529_v35 }
  0xfc   :  { %4238 = vmatprep.subr.bf16.mxu1 %v7603_v27 }
  0xff   :  { %4239 = vmatpush3.bf16.msra.mxu1 %v5533_v36 }
 0x100   :  { %4240 = vmatprep.subr.bf16.mxu1 %v7603_v27 }
 0x103   :  { %4241 = vmatpush3.bf16.msra.mxu1 %v5537_v37 }
 0x104   :  { %4246 = vmatprep.subr.bf16.mxu1 %v7603_v27 }
 0x106   :  { %4243 = vmatmul.mubr.bf16.vlgmr.msra.gmra.mrb[56].mxu1 %v874_v23 }
 0x107   :  { %4247 = vmatpush3.bf16.msra.mxu1 %v5508_v30  ;;  %4262 = vmatprep.mubr.msk.bf16.mxu1 %vm5261_vm0, %v7603_v27 }
 0x108   :  { %4248 = vmatprep.subr.bf16.mxu1 %v7603_v27 }
 0x10b   :  { %4249 = vmatpush3.bf16.msra.mxu1 %v5511_v31 }
 0x10c   :  { %4250 = vmatprep.subr.bf16.mxu1 %v7603_v27 }
 0x10f   :  { %4251 = vmatpush3.bf16.msra.mxu1 %v5517_v32 }
 0x110   :  { %4252 = vmatprep.subr.bf16.mxu1 %v7603_v27 }
 0x113   :  { %4253 = vmatpush3.bf16.msra.mxu1 %v5521_v33 }
 0x114   :  { %4254 = vmatprep.subr.bf16.mxu1 %v7603_v27 }
 0x117   :  { %4255 = vmatpush3.bf16.msra.mxu1 %v5525_v34 }
 0x118   :  { %4256 = vmatprep.subr.bf16.mxu1 %v7603_v27 }
 0x11b   :  { %4257 = vmatpush3.bf16.msra.mxu1 %v5529_v35 }
 0x11c   :  { %4258 = vmatprep.subr.bf16.mxu1 %v7603_v27 }
 0x11f   :  { %4259 = vmatpush3.bf16.msra.mxu1 %v5533_v36 }
 0x120   :  { %4260 = vmatprep.subr.bf16.mxu1 %v7603_v27 }
 0x123   :  { %4261 = vmatpush3.bf16.msra.mxu1 %v5537_v37 }
 0x124   :  { %4266 = vmatprep.subr.bf16.mxu1 %v7603_v27 }
 0x151   :  { %v5560_v38 = vpop.f32.mrb[0].mxu1  ;;  %v361_v39 = vpop.f32.mrb[0].mxu0 }
 0x152   :  { %v5562_v40 = vpop.f32.mrb[1].mxu1  ;;  %v5564_v41 = vpop.f32.mrb[1].mxu0 }
 0x153   :  { %v5566_v42 = vpop.f32.mrb[2].mxu1  ;;  %v5568_v43 = vpop.f32.mrb[2].mxu0 }
 0x154   :  { %v5570_v45 = vpop.f32.mrb[3].mxu1  ;;  %v5572_v46 = vpop.f32.mrb[3].mxu0 }
 0x159   :  { %v481_v49 = vpop.f32.mrb[4].mxu1  ;;  %v371_v50 = vpop.f32.mrb[4].mxu0 }
 0x15a   :  { %v483_v51 = vpop.f32.mrb[5].mxu1  ;;  %v373_v53 = vpop.f32.mrb[5].mxu0 }
 0x15b   :  { %v485_v56 = vpop.f32.mrb[6].mxu1  ;;  %v375_v58 = vpop.f32.mrb[6].mxu0 }
 0x15c   :  { %v487_v60 = vpop.f32.mrb[7].mxu1  ;;  %v377_v62 = vpop.f32.mrb[7].mxu0 }
 0x161   :  { %v381_v10 = vpop.f32.mrb[8].mxu0  ;;  %v491_v11 = vpop.f32.mrb[8].mxu1 }
 0x162   :  { %v382_v12 = vadd.f32 %v381_v10, %v5587_v8  ;;  %v492_v13 = vadd.f32 %v491_v11, %v5587_v8  ;;  %v383_v14 = vpop.f32.mrb[9].mxu0  ;;  %v493_v15 = vpop.f32.mrb[9].mxu1 }
 0x163   :  { %v5600_v17 = vadd.f32 %v383_v14, %v5590_v9  ;;  %v5603_v18 = vadd.f32 %v493_v15, %v5590_v9  ;;  %v385_v19 = vpop.f32.mrb[10].mxu0  ;;  %v495_v20 = vpop.f32.mrb[10].mxu1  ;;  %v194_v14 = vsub.s32 2, %v5576_v48  ;;  %v5648_v15 = vadd.f32 %v361_v39, %v5587_v8 }
 0x164   :  { %v386_v21 = vadd.f32 %v385_v19, %v5587_v8  ;;  %v496_v22 = vadd.f32 %v495_v20, %v5587_v8  ;;  %v387_v24 = vpop.f32.mrb[11].mxu0  ;;  %v497_v25 = vpop.f32.mrb[11].mxu1  ;;  %v5609_v26 = vsel %vm850_vm1, %v382_v12, %v492_v13  ;;  %v5613_v23 = vsel %vm850_vm1, %v492_v13, %v382_v12 }
 0x165   :  { %7740 = vst [vmem:[#allocation23_spill] sm:$0xff] %v5600_v17  ;;  %7741 = vst [vmem:[#allocation24_spill] sm:$0xff] %v5603_v18  ;;  %v5616_v44 = vadd.f32 %v387_v24, %v5590_v9  ;;  %v5619_v55 = vadd.f32 %v497_v25, %v5590_v9  ;;  %v372_v13 = vadd.f32 %v371_v50, %v5587_v8 }
 0x166   :  { %7742 = vst [vmem:[#allocation25_spill] sm:$0xff] %v5609_v26  ;;  %7743 = vst [vmem:[#allocation26_spill] sm:$0xff] %v5613_v23  ;;  %v5631_v4 = vsel %vm850_vm1, %v386_v21, %v496_v22  ;;  %v5635_v10 = vsel %vm850_vm1, %v496_v22, %v386_v21  ;;  %v482_v19 = vadd.f32 %v481_v49, %v5587_v8 }
 0x167   :  { %7744 = vst [vmem:[#allocation27_spill] sm:$0xff] %v5616_v44  ;;  %7745 = vst [vmem:[#allocation28_spill] sm:$0xff] %v5619_v55  ;;  %v5652_v20 = vadd.f32 %v483_v51, %v5590_v9  ;;  %v5655_v21 = vadd.f32 %v373_v53, %v5590_v9  ;;  %v486_v25 = vadd.f32 %v485_v56, %v5587_v8 }
 0x168   :  { %7746 = vst [vmem:[#allocation29_spill] sm:$0xff] %v5631_v4  ;;  %7747 = vst [vmem:[#allocation30_spill] sm:$0xff] %v5635_v10  ;;  %v376_v12 = vadd.f32 %v375_v58, %v5587_v8  ;;  %v5662_v49 = vadd.f32 %v487_v60, %v5590_v9  ;;  %v5665_v51 = vadd.f32 %v377_v62, %v5590_v9 }
 0x169   :  { %7748 = vst [vmem:[#allocation31_spill] sm:$0xff] %v5652_v20  ;;  %7749 = vst [vmem:[#allocation32_spill] sm:$0xff] %v5655_v21  ;;  %v391_v22 = vpop.f32.mrb[12].mxu0  ;;  %v501_v24 = vpop.f32.mrb[12].mxu1 }
 0x16a   :  { %v392_v50 = vadd.f32 %v391_v22, %v5587_v8  ;;  %v502_v48 = vadd.f32 %v501_v24, %v5587_v8  ;;  %v393_v39 = vpop.f32.mrb[13].mxu0  ;;  %v503_v3 = vpop.f32.mrb[13].mxu1  ;;  %7750 = vst [vmem:[#allocation33_spill] sm:$0xff] %v5662_v49  ;;  %7751 = vst [vmem:[#allocation34_spill] sm:$0xff] %v5665_v51 }
 0x16b   :  { %v5668_v53 = vadd.f32 %v393_v39, %v5590_v9  ;;  %v5671_v11 = vadd.f32 %v503_v3, %v5590_v9  ;;  %v395_v56 = vpop.f32.mrb[14].mxu0  ;;  %v505_v58 = vpop.f32.mrb[14].mxu1 }
 0x16c   :  { %v396_v22 = vadd.f32 %v395_v56, %v5587_v8  ;;  %v506_v24 = vadd.f32 %v505_v58, %v5587_v8  ;;  %v397_v59 = vpop.f32.mrb[15].mxu0  ;;  %v507_v0 = vpop.f32.mrb[15].mxu1  ;;  %v5677_v60 = vsel %vm850_vm1, %v372_v13, %v502_v48  ;;  %v5681_v62 = vsel %vm850_vm1, %v392_v50, %v482_v19 }
 0x16d   :  { %7752 = vst [vmem:[#allocation35_spill] sm:$0xff] %v5668_v53  ;;  %7753 = vst [vmem:[#allocation36_spill] sm:$0xff] %v5671_v11  ;;  %v5684_v39 = vadd.f32 %v397_v59, %v5590_v9  ;;  %v5687_v3 = vadd.f32 %v507_v0, %v5590_v9  ;;  %v5707_v0 = vsel %vm850_vm1, %v482_v19, %v392_v50 }
 0x16e   :  { %7754 = vst [vmem:[#allocation37_spill] sm:$0xff] %v5677_v60  ;;  %7755 = vst [vmem:[#allocation38_spill] sm:$0xff] %v5681_v62  ;;  %v5699_v27 = vsel %vm850_vm1, %v376_v12, %v506_v24  ;;  %v5703_v59 = vsel %vm850_vm1, %v396_v22, %v486_v25  ;;  %v5723_v23 = vsel %vm850_vm1, %v486_v25, %v396_v22 }
 0x16f   :  { %7756 = vst [vmem:[#allocation39_spill] sm:$0xff] %v5684_v39  ;;  %7757 = vst [vmem:[#allocation40_spill] sm:$0xff] %v5687_v3  ;;  %v5731_v50 = vsel %vm850_vm1, %v502_v48, %v372_v13  ;;  %v5739_v10 = vsel %vm850_vm1, %v506_v24, %v376_v12  ;;  %v472_v22 = vadd.f32 %v5560_v38, %v5587_v8  ;;  %v813_v3 = vadd.s32 256, %v5574_v47 }
 0x170   :  { %7758 = vst [vmem:[#allocation41_spill] sm:$0xff] %v5699_v27  ;;  %7759 = vst [vmem:[#allocation42_spill] sm:$0xff] %v5703_v59  ;;  %v5749_v13 = vadd.f32 %v5562_v40, %v5590_v9  ;;  %v5753_v48 = vadd.f32 %v5564_v41, %v5590_v9  ;;  %v5756_v12 = vrot.slane %v5583_v63, %v194_v14 }
 0x171   :  { %7760 = vst [vmem:[#allocation43_spill] sm:$0xff] %v5707_v0  ;;  %7761 = vst [vmem:[#allocation44_spill] sm:$0xff] %v5723_v23  ;;  %v401_v56 = vpop.f32.mrb[16].mxu0  ;;  %v511_v19 = vpop.f32.mrb[16].mxu1  ;;  %v476_v24 = vadd.f32 %v5566_v42, %v5587_v8  ;;  %v366_v25 = vadd.f32 %v5568_v43, %v5587_v8  ;;  %v5766_v41 = vadd.f32 %v5570_v45, %v5590_v9 }
 0x172   :  { %7762 = vst [vmem:[#allocation45_spill] sm:$0xff] %v5731_v50  ;;  %7763 = vst [vmem:[#allocation46_spill] sm:$0xff] %v5739_v10  ;;  %v402_v38 = vadd.f32 %v401_v56, %v5587_v8  ;;  %v512_v40 = vadd.f32 %v511_v19, %v5587_v8  ;;  %v403_v58 = vpop.f32.mrb[17].mxu0  ;;  %v513_v10 = vpop.f32.mrb[17].mxu1  ;;  %v5770_v63 = vadd.f32 %v5572_v46, %v5590_v9 }
 0x173   :  { %7764 = vst [vmem:[#allocation47_spill] sm:$0xff] %v5749_v13  ;;  %7765 = vst [vmem:[#allocation48_spill] sm:$0xff] %v5753_v48  ;;  %v5773_v14 = vadd.f32 %v403_v58, %v5590_v9  ;;  %v5776_v42 = vadd.f32 %v513_v10, %v5590_v9  ;;  %v405_v43 = vpop.f32.mrb[18].mxu0  ;;  %v515_v56 = vpop.f32.mrb[18].mxu1 }
 0x174   :  { %7766 = vst [vmem:[#allocation49_spill] sm:$0xff] %v5766_v41  ;;  %7767 = vst [vmem:[#allocation50_spill] sm:$0xff] %v5770_v63  ;;  %v406_v19 = vadd.f32 %v405_v43, %v5587_v8  ;;  %v516_v50 = vadd.f32 %v515_v56, %v5587_v8  ;;  %v407_v23 = vpop.f32.mrb[19].mxu0  ;;  %v517_v0 = vpop.f32.mrb[19].mxu1  ;;  %v5783_v45 = vsel %vm850_vm1, %v5648_v15, %v512_v40 }
 0x175   :  { %7768 = vst [vmem:[#allocation51_spill] sm:$0xff] %v5773_v14  ;;  %7769 = vst [vmem:[#allocation52_spill] sm:$0xff] %v5776_v42  ;;  %v5787_v46 = vsel %vm850_vm1, %v402_v38, %v472_v22  ;;  %v5790_v10 = vadd.f32 %v407_v23, %v5590_v9  ;;  %v5793_v58 = vadd.f32 %v517_v0, %v5590_v9 }
 0x176   :  { %7770 = vst [vmem:[#allocation53_spill] sm:$0xff] %v5787_v46  ;;  %v5805_v49 = vsel %vm850_vm1, %v366_v25, %v516_v50  ;;  %v5809_v23 = vsel %vm850_vm1, %v406_v19, %v476_v24  ;;  %v5813_v0 = vsel %vm850_vm1, %v472_v22, %v402_v38  ;;  %v5838_v38 = vsel %vm850_vm1, %v512_v40, %v5648_v15 }
 0x177   :  { %7771 = vst [vmem:[#allocation54_spill] sm:$0xff] %v5790_v10  ;;  %7772 = vst [vmem:[#allocation55_spill] sm:$0xff] %v5793_v58  ;;  %v5846_v46 = vsel %vm850_vm1, %v516_v50, %v366_v25 }
 0x178   :  { %7773 = vst [vmem:[#allocation56_spill] sm:$0xff] %v5809_v23  ;;  %7774 = vst [vmem:[#allocation57_spill] sm:$0xff] %v5813_v0  ;;  %v5829_v23 = vsel %vm850_vm1, %v476_v24, %v406_v19 }
 0x179   :  { %7775 = vst [vmem:[#allocation58_spill] sm:$0xff] %v5829_v23  ;;  %7776 = vst [vmem:[#allocation59_spill] sm:$0xff] %v5838_v38  ;;  %v4196_v19 = vpop.f32.mrb[20].mxu1  ;;  %v5852_v22 = vpop.f32.mrb[20].mxu0 }
 0x17a   :  { %7777 = vst [vmem:[#allocation60_spill] sm:$0xff] %v5846_v46  ;;  %v5855_v15 = vadd.f32 %v4196_v19, %v5756_v12  ;;  %v5857_v40 = vpop.f32.mrb[21].mxu1  ;;  %v5859_v56 = vpop.f32.mrb[21].mxu0 }
 0x17b   :  { %v4197_v43 = vpop.f32.mrb[22].mxu1  ;;  %v5861_v38 = vpop.f32.mrb[22].mxu0 }
 0x17c   :  { %7778 = vst [vmem:[#allocation61_spill] sm:$0xff] %v5855_v15  ;;  %v5864_v50 = vadd.f32 %v4197_v43, %v5756_v12  ;;  %v5866_v25 = vpop.f32.mrb[23].mxu1  ;;  %v5868_v46 = vpop.f32.mrb[23].mxu0 }
 0x17e   :  { %7779 = vst [vmem:[#allocation62_spill] sm:$0xff] %v5864_v50 }
 0x181   :  { %v4200_v24 = vpop.f32.mrb[24].mxu1  ;;  %v5870_v23 = vpop.f32.mrb[24].mxu0 }
 0x182   :  { %v5873_v19 = vadd.f32 %v4200_v24, %v5756_v12  ;;  %v570_v0 = vpop.f32.mrb[25].mxu1  ;;  %v5875_v41 = vpop.f32.mrb[25].mxu0 }
 0x183   :  { %v5878_v10 = vadd.f32 %v570_v0, %v5756_v12  ;;  %v4201_v13 = vpop.f32.mrb[26].mxu1  ;;  %v5880_v14 = vpop.f32.mrb[26].mxu0 }
 0x184   :  { %7780 = vst [vmem:[#allocation63_spill] sm:$0xff] %v5873_v19  ;;  %v5883_v43 = vadd.f32 %v4201_v13, %v5756_v12  ;;  %v573_v39 = vpop.f32.mrb[27].mxu1  ;;  %v5885_v59 = vpop.f32.mrb[27].mxu0 }
 0x185   :  { %7781 = vst [vmem:[#allocation64_spill] sm:$0xff] %v5878_v10  ;;  %7783 = vst [vmem:[#allocation66_spill] sm:$0xff] %v5885_v59  ;;  %v5888_v20 = vadd.f32 %v573_v39, %v5756_v12 }
 0x186   :  { %7782 = vst [vmem:[#allocation65_spill] sm:$0xff] %v5883_v43 }
 0x187   :  { %7784 = vst [vmem:[#allocation67_spill] sm:$0xff] %v5888_v20 }
 0x189   :  { %v4204_v24 = vpop.f32.mrb[28].mxu1  ;;  %v5890_v53 = vpop.f32.mrb[28].mxu0 }
 0x18a   :  { %7785 = vst [vmem:[#allocation68_spill] sm:$0xff] %v5890_v53  ;;  %v5893_v62 = vadd.f32 %v4204_v24, %v5756_v12  ;;  %v586_v0 = vpop.f32.mrb[29].mxu1  ;;  %v5895_v55 = vpop.f32.mrb[29].mxu0 }
 0x18b   :  { %7787 = vst [vmem:[#allocation70_spill] sm:$0xff] %v5895_v55  ;;  %v5898_v44 = vadd.f32 %v586_v0, %v5756_v12  ;;  %v4205_v13 = vpop.f32.mrb[30].mxu1  ;;  %v5900_v4 = vpop.f32.mrb[30].mxu0 }
 0x18c   :  { %7786 = vst [vmem:[#allocation69_spill] sm:$0xff] %v5893_v62  ;;  %7789 = vst [vmem:[#allocation72_spill] sm:$0xff] %v5900_v4  ;;  %v5903_v18 = vadd.f32 %v4205_v13, %v5756_v12  ;;  %v589_v39 = vpop.f32.mrb[31].mxu1  ;;  %v5905_v17 = vpop.f32.mrb[31].mxu0 }
 0x18d   :  { %7788 = vst [vmem:[#allocation71_spill] sm:$0xff] %v5898_v44  ;;  %7791 = vst [vmem:[#allocation74_spill] sm:$0xff] %v5905_v17  ;;  %v5908_v26 = vadd.f32 %v589_v39, %v5756_v12 }
 0x18e   :  { %7790 = vst [vmem:[#allocation73_spill] sm:$0xff] %v5903_v18  ;;  %v6085_v18 = vadd.f32 %v5857_v40, %v5756_v12 }
 0x18f   :  { %7792 = vst [vmem:[#allocation75_spill] sm:$0xff] %v5908_v26 }
 0x190   :  { %7818 = vst [vmem:[#allocation99_spill] sm:$0xff] %v6085_v18 }
 0x191   :  { %v4208_v24 = vpop.f32.mrb[32].mxu1  ;;  %v5911_v51 = vpop.f32.mrb[32].mxu0 }
 0x192   :  { %7793 = vst [vmem:[#allocation76_spill] sm:$0xff] %v5911_v51  ;;  %v5914_v0 = vadd.f32 %v4208_v24, %v5756_v12  ;;  %v602_v27 = vpop.f32.mrb[33].mxu1  ;;  %v5916_v11 = vpop.f32.mrb[33].mxu0  ;;  %v832_v24 = vand.u32 127, %v813_v3 }
 0x193   :  { %7795 = vst [vmem:[#allocation78_spill] sm:$0xff] %v5916_v11  ;;  %v5919_v13 = vadd.f32 %v602_v27, %v5756_v12  ;;  %v4209_v21 = vpop.f32.mrb[34].mxu1  ;;  %v5921_v60 = vpop.f32.mrb[34].mxu0 }
 0x194   :  { %7794 = vst [vmem:[#allocation77_spill] sm:$0xff] %v5914_v0  ;;  %7797 = vst [vmem:[#allocation80_spill] sm:$0xff] %v5921_v60  ;;  %v5924_v39 = vadd.f32 %v4209_v21, %v5756_v12  ;;  %v605_v17 = vpop.f32.mrb[35].mxu1  ;;  %v5926_v4 = vpop.f32.mrb[35].mxu0  ;;  %vm5931_vm3 = vcmp.lt.s32.totalorder %v832_v24, 64 }
 0x195   :  { %7796 = vst [vmem:[#allocation79_spill] sm:$0xff] %v5919_v13  ;;  %7799 = vst [vmem:[#allocation82_spill] sm:$0xff] %v5926_v4  ;;  %v5929_v51 = vadd.f32 %v605_v17, %v5756_v12 }
 0x196   :  { %7798 = vst [vmem:[#allocation81_spill] sm:$0xff] %v5924_v39 }
 0x197   :  { %7800 = vst [vmem:[#allocation83_spill] sm:$0xff] %v5929_v51 }
 0x199   :  { %v4212_v55 = vpop.f32.mrb[36].mxu1  ;;  %v5935_v27 = vpop.f32.mrb[36].mxu0 }
 0x19a   :  { %7803 = vst [vmem:[#allocation84_spill] sm:$0xff] %v5935_v27  ;;  %v5938_v11 = vadd.f32 %v4212_v55, %v5756_v12  ;;  %v618_v60 = vpop.f32.mrb[37].mxu1  ;;  %v5940_v21 = vpop.f32.mrb[37].mxu0 }
 0x19b   :  { %7805 = vst [vmem:[#allocation86_spill] sm:$0xff] %v5940_v21  ;;  %v5943_v59 = vadd.f32 %v618_v60, %v5756_v12  ;;  %v4213_v4 = vpop.f32.mrb[38].mxu1  ;;  %v5945_v17 = vpop.f32.mrb[38].mxu0 }
 0x19c   :  { %7804 = vst [vmem:[#allocation85_spill] sm:$0xff] %v5938_v11  ;;  %7807 = vst [vmem:[#allocation88_spill] sm:$0xff] %v5945_v17  ;;  %v5956_v24 = vadd.f32 %v4213_v4, %v5756_v12  ;;  %v621_v21 = vpop.f32.mrb[39].mxu1  ;;  %v5958_v27 = vpop.f32.mrb[39].mxu0 }
 0x19d   :  { %7806 = vst [vmem:[#allocation87_spill] sm:$0xff] %v5943_v59  ;;  %v5969_v17 = vadd.f32 %v621_v21, %v5756_v12 }
 0x19e   :  { %7808 = vst [vmem:[#allocation89_spill] sm:$0xff] %v5956_v24 }
 0x19f   :  { %7809 = vst [vmem:[#allocation90_spill] sm:$0xff] %v5969_v17 }
 0x1a1   :  { %v4216_v3 = vpop.f32.mrb[40].mxu1  ;;  %v5987_v59 = vpop.f32.mrb[40].mxu0 }
 0x1a2   :  { %v5990_v4 = vadd.f32 %v4216_v3, %v5756_v12  ;;  %v634_v0 = vpop.f32.mrb[41].mxu1  ;;  %v5992_v11 = vpop.f32.mrb[41].mxu0 }
 0x1a3   :  { %v5995_v55 = vadd.f32 %v634_v0, %v5756_v12  ;;  %v4217_v24 = vpop.f32.mrb[42].mxu1  ;;  %v5997_v51 = vpop.f32.mrb[42].mxu0 }
 0x1a4   :  { %7810 = vst [vmem:[#allocation91_spill] sm:$0xff] %v5990_v4  ;;  %v6008_v60 = vadd.f32 %v4217_v24, %v5756_v12  ;;  %v637_v17 = vpop.f32.mrb[43].mxu1  ;;  %v6010_v39 = vpop.f32.mrb[43].mxu0 }
 0x1a5   :  { %7811 = vst [vmem:[#allocation92_spill] sm:$0xff] %v5995_v55  ;;  %v6021_v13 = vadd.f32 %v637_v17, %v5756_v12 }
 0x1a6   :  { %7812 = vst [vmem:[#allocation93_spill] sm:$0xff] %v6008_v60 }
 0x1a7   :  { %7813 = vst [vmem:[#allocation94_spill] sm:$0xff] %v6021_v13 }
 0x1a9   :  { %v4220_v21 = vpop.f32.mrb[44].mxu1 }
 0x1aa   :  { %v6040_v55 = vadd.f32 %v4220_v21, %v5756_v12  ;;  %v650_v24 = vpop.f32.mrb[45].mxu1 }
 0x1ab   :  { %v6043_v62 = vadd.f32 %v650_v24, %v5756_v12  ;;  %v4221_v4 = vpop.f32.mrb[46].mxu1  ;;  %v6095_v24 = vadd.f32 %v5866_v25, %v5756_v12 }
 0x1ac   :  { %7814 = vst [vmem:[#allocation95_spill] sm:$0xff] %v6040_v55  ;;  %v6054_v17 = vadd.f32 %v4221_v4, %v5756_v12  ;;  %v653_v21 = vpop.f32.mrb[47].mxu1 }
 0x1ad   :  { %7815 = vst [vmem:[#allocation96_spill] sm:$0xff] %v6043_v62  ;;  %v6065_v3 = vadd.f32 %v653_v21, %v5756_v12  ;;  %7821 = vst [vmem:[#allocation102_spill] sm:$0xff] %v6095_v24 }
 0x1ae   :  { %7816 = vst [vmem:[#allocation97_spill] sm:$0xff] %v6054_v17 }
 0x1af   :  { %7817 = vst [vmem:[#allocation98_spill] sm:$0xff] %v6065_v3 }
 0x1b1   :  { %v4224_v13 = vpop.f32.mrb[48].mxu1 }
 0x1b2   :  { %v6088_v4 = vadd.f32 %v4224_v13, %v5756_v12  ;;  %v666_v60 = vpop.f32.mrb[49].mxu1 }
 0x1b3   :  { %v6091_v0 = vadd.f32 %v666_v60, %v5756_v12  ;;  %v4225_v26 = vpop.f32.mrb[50].mxu1 }
 0x1b4   :  { %7819 = vst [vmem:[#allocation100_spill] sm:$0xff] %v6088_v4  ;;  %v870_v21 = vsel %vm5931_vm3, %v6085_v18, %v6088_v4  ;;  %v6106_v13 = vadd.f32 %v4225_v26, %v5756_v12  ;;  %v669_v60 = vpop.f32.mrb[51].mxu1  ;;  %v7824_v4 = vsel %vm5595_vm2, %v5753_v48, %v5776_v42 }
 0x1b5   :  { %7820 = vst [vmem:[#allocation101_spill] sm:$0xff] %v6091_v0  ;;  %v6117_v3 = vadd.f32 %v669_v60, %v5756_v12  ;;  %v7825_v12 = vsel %vm5595_vm2, %v5770_v63, %v5793_v58 }
 0x1b6   :  { %7822 = vst [vmem:[#allocation103_spill] sm:$0xff] %v6106_v13  ;;  %v873_v26 = vsel %vm5931_vm3, %v6095_v24, %v6106_v13 }
 0x1b7   :  { %7823 = vst [vmem:[#allocation104_spill] sm:$0xff] %v6117_v3 }
 0x1b9   :  { %v1037_v60 = vpop.f32.mrb[52].mxu1 }
 0x1ba   :  { %v1087_v44 = vadd.f32 %v1037_v60, %v5783_v45  ;;  %v1039_v18 = vpop.f32.mrb[53].mxu1 }
 0x1bb   :  { %v1101_v40 = vadd.f32 %v1039_v18, %v7824_v4  ;;  %v1041_v24 = vpop.f32.mrb[54].mxu1  ;;  %v6150_v4 = vld [vmem:[%s7596_s5] ss:$0 sm:$0xff] }
 0x1bc   :  { %v3912_v13 = vmul.f32 -1.442695, %v1087_v44  ;;  %v1088_v43 = vadd.f32 %v1041_v24, %v5805_v49  ;;  %v1043_v25 = vpop.f32.mrb[55].mxu1 }
 0x1bd   :  { %v1102_v62 = vadd.f32 %v1043_v25, %v7825_v12  ;;  %v3914_v45 = vmul.f32 -1.442695, %v1101_v40 }
 0x1be   :  { %v3913_v19 = vmul.f32 -1.442695, %v1088_v43  ;;  %4698 = vpow2.f32 %v3912_v13 }
 0x1bf   :  { %v3915_v60 = vmul.f32 -1.442695, %v1102_v62 }
 0x1c0   :  { %4700 = vpow2.f32 %v3913_v19 }
 0x1c1   :  { %4702 = vpow2.f32 %v3914_v45 }
 0x1c2   :  { %4704 = vpow2.f32 %v3915_v60 }
 0x1c8   :  { %v4699_v17 = vpop.eup %4698 }
 0x1c9   :  { %v1095_v18 = vadd.f32 1.0, %v4699_v17 }
 0x1ca   :  { %v4701_v48 = vpop.eup %4700 }
 0x1cb   :  { %v1096_v44 = vadd.f32 1.0, %v4701_v48  ;;  %4706 = vrcp.f32 %v1095_v18  ;;  %v4703_v49 = vpop.eup %4702 }
 0x1cc   :  { %v4705_v24 = vpop.eup %4704  ;;  %v1109_v43 = vadd.f32 1.0, %v4703_v49 }
 0x1cd   :  { %4708 = vrcp.f32 %v1096_v44  ;;  %v1110_v19 = vadd.f32 1.0, %v4705_v24 }
 0x1ce   :  { %4710 = vrcp.f32 %v1109_v43 }
 0x1cf   :  { %4712 = vrcp.f32 %v1110_v19 }
 0x1d5   :  { %v4707_v25 = vpop.eup %4706 }
 0x1d7   :  { %v4709_v60 = vpop.eup %4708 }
 0x1d8   :  { %v4711_v49 = vpop.eup %4710 }
 0x1d9   :  { %v1080_v13 = vpop.f32.mrb[56].mxu1  ;;  %v4713_v58 = vpop.eup %4712  ;;  %v1129_v24 = vsub.f32 1.0, %v4711_v49 }
 0x1da   :  { %v1121_v62 = vadd.f32 %v6150_v4, %v1080_v13  ;;  %v4244_v40 = vpop.f32.mrb[57].mxu1  ;;  %v1133_v13 = vmul.f32 %v4711_v49, %v5502_v28  ;;  %v6166_v28 = vld [vmem:[#allocation11 + $0x1c] ss:$12 sps:$4 sm:$0xff]   ;;  %v7833_v49 = vld [vmem:[#allocation84_spill] sm:$0xff] }
 0x1db   :  { %v1083_v12 = vpop.f32.mrb[58].mxu1  ;;  %v1130_v40 = vsub.f32 1.0, %v4713_v58 }
 0x1dc   :  { %v1123_v17 = vmul.f32 %v4707_v25, %v1121_v62  ;;  %v1122_v48 = vadd.f32 %v6150_v4, %v1083_v12  ;;  %v4245_v45 = vpop.f32.mrb[59].mxu1  ;;  %v1134_v62 = vmul.f32 %v4713_v58, %v5504_v29  ;;  %v7828_v29 = vmov 0.0   ;;  %v6177_v58 = vld [vmem:[#allocation11 + $0x34] ss:$12 sps:$4 sm:$0xff]  }
 0x1dd   :  { %v6271_v45 = vadd.f32 %v5875_v41, %v5590_v9  ;;  %v6289_v41 = vadd.f32 %v5958_v27, %v5590_v9 }
 0x1de   :  { %v1125_v18 = vadd.f32 %v1123_v17, %v870_v21  ;;  %v1124_v44 = vmul.f32 %v4709_v60, %v1122_v48  ;;  %v6185_v17 = vld [vmem:[#allocation11 + $0x4c] ss:$12 sps:$4 sm:$0xff]   ;;  %v422_v48 = vadd.f32 %v5870_v23, %v5587_v8  ;;  %v426_v60 = vadd.f32 %v5880_v14, %v5587_v8  ;;  %v7835_v23 = vld [vmem:[#allocation88_spill] sm:$0xff] }
 0x1e0   :  { %4714 = vtanh.f32 %v1125_v18  ;;  %v1126_v63 = vadd.f32 %v1124_v44, %v873_v26  ;;  %v6181_v26 = vld [vmem:[#allocation11 + $0x30] ss:$12 sps:$4 sm:$0xff]  }
 0x1e1   :  { %v7832_v18 = vld [vmem:[#allocation66_spill] sm:$0xff] }
 0x1e2   :  { %4716 = vtanh.f32 %v1126_v63  ;;  %v6162_v63 = vld [vmem:[#allocation11] ss:$12 sps:$4 sm:$0xff]   ;;  %v6277_v44 = vadd.f32 %v7832_v18, %v5590_v9 }
 0x1ea   :  { %v4715_v42 = vpop.eup %4714 }
 0x1eb   :  { %v1131_v20 = vmul.f32 %v4715_v42, %v1129_v24  ;;  %v6173_v42 = vld [vmem:[#allocation11 + $0x18] ss:$12 sps:$4 sm:$0xff]   ;;  %v452_v24 = vadd.f32 %v7833_v49, %v5587_v8 }
 0x1ec   :  { %v4717_v43 = vpop.eup %4716 }
 0x1ed   :  { %v6156_v25 = vadd.f32 %v1133_v13, %v1131_v20  ;;  %v1132_v12 = vmul.f32 %v4717_v43, %v1130_v40  ;;  %v7829_v20 = vmov 0   ;;  %v7834_v13 = vld [vmem:[#allocation86_spill] sm:$0xff]  ;;  %v456_v43 = vadd.f32 %v7835_v23, %v5587_v8 }
 0x1ee   :  { %v6283_v40 = vadd.f32 %v7834_v13, %v5590_v9  ;;  %v6293_v14 = vsel %vm850_vm1, %v422_v48, %v452_v24  ;;  %v6309_v27 = vsel %vm850_vm1, %v452_v24, %v422_v48  ;;  %v7839_v48 = vld [vmem:[#allocation70_spill] sm:$0xff]  ;;  %v7841_v24 = vld [vmem:[#allocation72_spill] sm:$0xff] }
 0x1ef   :  { %7826 = vst [vmem:[#allocation105_spill] sm:$0xff] %v6156_v25  ;;  %v6158_v19 = vadd.f32 %v1134_v62, %v1132_v12  ;;  %v6301_v12 = vsel %vm850_vm1, %v426_v60, %v456_v43  ;;  %7836 = vst [vmem:[#allocation66_spill] sm:$0xff] %v6309_v27  ;;  %v6327_v49 = vadd.f32 %v7839_v48, %v5590_v9  ;;  %v7842_v23 = vld [vmem:[#allocation74_spill] sm:$0xff]  ;;  %v7854_v62 = vld [vmem:[#allocation37_spill] sm:$0xff] }
 0x1f0   :  { %v436_v13 = vadd.f32 %v7841_v24, %v5587_v8  ;;  %v7848_v48 = vld [vmem:[#allocation82_spill] sm:$0xff] }
 0x1f1   :  { %7827 = vst [vmem:[#allocation106_spill] sm:$0xff] %v6158_v19  ;;  %v1162_v21 = vpack.c.bf16 %v6158_v19, %v6156_v25  ;;  %7840 = vst [vmem:[#allocation86_spill] sm:$0xff] %v6327_v49 }
 0x1f3   :  { %1196 = vmatmul.mubr.bf16.vlgmr.msra.gmra.mrb[44].mxu0 %v1162_v21  ;;  %4263 = vmatmul.mubr.bf16.vlgmr.msra.gmra.mrb[60].mxu1 %v1162_v21  ;;  %v6345_v21 = vadd.f32 %v7848_v48, %v5590_v9  ;;  %v7859_v48 = vld [vmem:[#allocation34_spill] sm:$0xff] }
 0x1f4   :  { %1319 = vmatpush1.bf16.msra.mxu0 %v6162_v63  ;;  %4267 = vmatpush3.bf16.msra.mxu1 %v5508_v30 }
 0x1f5   :  { %1320 = vmatprep.subr.bf16.mxu0 %v6166_v28  ;;  %4268 = vmatprep.subr.bf16.mxu1 %v7828_v29  ;;  %7849 = vst [vmem:[#allocation70_spill] sm:$0xff] %v6345_v21  ;;  %v7860_v21 = vld [vmem:[#allocation40_spill] sm:$0xff] }
 0x1f6   :  { %1350 = vmatprep.mubr.bf16.mxu0 %v7829_v20  ;;  %4282 = vmatprep.mubr.msk.bf16.mxu1 %vm5261_vm0, %v7828_v29 }
 0x1f8   :  { %1321 = vmatpush1.bf16.msra.mxu0 %v6173_v42  ;;  %4269 = vmatpush3.bf16.msra.mxu1 %v5511_v31 }
 0x1f9   :  { %1322 = vmatprep.subr.bf16.mxu0 %v6177_v58  ;;  %4270 = vmatprep.subr.bf16.mxu1 %v7828_v29 }
 0x1fc   :  { %1323 = vmatpush1.bf16.msra.mxu0 %v6181_v26  ;;  %4271 = vmatpush3.bf16.msra.mxu1 %v5517_v32 }
 0x1fd   :  { %1324 = vmatprep.subr.bf16.mxu0 %v6185_v17  ;;  %4272 = vmatprep.subr.bf16.mxu1 %v7828_v29 }
 0x200   :  { %1325 = vmatpush1.bf16.msra.mxu0 %v5429_v52  ;;  %4273 = vmatpush3.bf16.msra.mxu1 %v5521_v33  ;;  %v6207_v52 = vld [vmem:[#allocation11 + $0x4] ss:$12 sps:$4 sm:$0xff]  }
 0x201   :  { %1326 = vmatprep.subr.bf16.mxu0 %v5434_v54  ;;  %4274 = vmatprep.subr.bf16.mxu1 %v7828_v29  ;;  %v412_v54 = vadd.f32 %v5852_v22, %v5587_v8  ;;  %v7845_v22 = vld [vmem:[#allocation78_spill] sm:$0xff] }
 0x204   :  { %1327 = vmatpush1.bf16.msra.mxu0 %v5441_v57  ;;  %4275 = vmatpush3.bf16.msra.mxu1 %v5525_v34  ;;  %v6215_v57 = vadd.f32 %v5859_v56, %v5590_v9 }
 0x205   :  { %1328 = vmatprep.subr.bf16.mxu0 %v5445_v61  ;;  %4276 = vmatprep.subr.bf16.mxu1 %v7828_v29  ;;  %v416_v61 = vadd.f32 %v5861_v38, %v5587_v8 }
 0x208   :  { %1329 = vmatpush1.bf16.msra.mxu0 %v5449_v1  ;;  %4277 = vmatpush3.bf16.msra.mxu1 %v5529_v35  ;;  %v6221_v1 = vadd.f32 %v5868_v46, %v5590_v9 }
 0x209   :  { %1330 = vmatprep.subr.bf16.mxu0 %v5451_v2  ;;  %4278 = vmatprep.subr.bf16.mxu1 %v7828_v29  ;;  %v462_v2 = vadd.f32 %v5987_v59, %v5587_v8  ;;  %v7855_v59 = vld [vmem:[#allocation32_spill] sm:$0xff] }
 0x20b   :  { %v6237_v56 = vsel %vm850_vm1, %v412_v54, %v462_v2  ;;  %v6253_v46 = vsel %vm850_vm1, %v462_v2, %v412_v54  ;;  %v6339_v2 = vadd.f32 %v7845_v22, %v5590_v9 }
 0x20c   :  { %1331 = vmatpush1.bf16.msra.mxu0 %v5458_v5  ;;  %4279 = vmatpush3.bf16.msra.mxu1 %v5533_v36  ;;  %v6227_v5 = vadd.f32 %v5992_v11, %v5590_v9  ;;  %7830 = vst [vmem:[#allocation107_spill] sm:$0xff] %v6253_v46 }
 0x20d   :  { %1332 = vmatprep.subr.bf16.mxu0 %v5463_v6  ;;  %4280 = vmatprep.subr.bf16.mxu1 %v7828_v29  ;;  %v466_v6 = vadd.f32 %v5997_v51, %v5587_v8 }
 0x20f   :  { %v6245_v11 = vsel %vm850_vm1, %v416_v61, %v466_v6  ;;  %v6261_v38 = vsel %vm850_vm1, %v466_v6, %v416_v61  ;;  %v6317_v61 = vsel %vm850_vm1, %v456_v43, %v426_v60  ;;  %v7838_v6 = vld [vmem:[#allocation68_spill] sm:$0xff] }
 0x210   :  { %1333 = vmatpush1.bf16.msra.mxu0 %v5466_v7  ;;  %4281 = vmatpush3.bf16.msra.mxu1 %v5537_v37  ;;  %v6233_v7 = vadd.f32 %v6010_v39, %v5590_v9  ;;  %7831 = vst [vmem:[#allocation108_spill] sm:$0xff] %v6261_v38  ;;  %7837 = vst [vmem:[#allocation84_spill] sm:$0xff] %v6317_v61  ;;  %v432_v18 = vadd.f32 %v7838_v6, %v5587_v8  ;;  %v7844_v60 = vld [vmem:[#allocation76_spill] sm:$0xff]  ;;  %v7858_v61 = vld [vmem:[#allocation41_spill] sm:$0xff] }
 0x211   :  { %1473 = vmatprep.subr.bf16.mxu0 %v6207_v52  ;;  %4286 = vmatprep.subr.bf16.mxu1 %v7828_v29  ;;  %v6333_v39 = vadd.f32 %v7842_v23, %v5590_v9  ;;  %v442_v43 = vadd.f32 %v7844_v60, %v5587_v8  ;;  %7846 = vst [vmem:[#allocation68_spill] sm:$0xff] %v6339_v2  ;;  %v7847_v6 = vld [vmem:[#allocation80_spill] sm:$0xff]  ;;  %v7886_v2 = vld [vmem:[#allocation33_spill] sm:$0xff] }
 0x212   :  { %v446_v54 = vadd.f32 %v7847_v6, %v5587_v8  ;;  %v7856_v38 = vld [vmem:[#allocation36_spill] sm:$0xff] }
 0x213   :  { %7843 = vst [vmem:[#allocation88_spill] sm:$0xff] %v6333_v39  ;;  %v6349_v24 = vsel %vm850_vm1, %v432_v18, %v442_v43  ;;  %v6365_v9 = vsel %vm850_vm1, %v442_v43, %v432_v18  ;;  %v7857_v60 = vsel %vm5595_vm2, %v7855_v59, %v7856_v38 }
 0x214   :  { %7850 = vst [vmem:[#allocation72_spill] sm:$0xff] %v6349_v24  ;;  %v6357_v22 = vsel %vm850_vm1, %v436_v13, %v446_v54  ;;  %7852 = vst [vmem:[#allocation76_spill] sm:$0xff] %v6365_v9  ;;  %v6373_v6 = vsel %vm850_vm1, %v446_v54, %v436_v13 }
 0x215   :  { %7851 = vst [vmem:[#allocation74_spill] sm:$0xff] %v6357_v22  ;;  %7853 = vst [vmem:[#allocation78_spill] sm:$0xff] %v6373_v6 }
 0x2c6   :  { %v1197_v23 = vpop.f32.mrb[44].mxu0  ;;  %v1240_v8 = vpop.f32.mrb[60].mxu1 }
 0x2c7   :  { %v1247_v51 = vadd.f32 %v1197_v23, %v7854_v62  ;;  %v1199_v18 = vpop.f32.mrb[45].mxu0  ;;  %v4264_v43 = vpop.f32.mrb[61].mxu1  ;;  %v7861_v62 = vsel %vm5595_vm2, %v7859_v48, %v7860_v21  ;;  %v1275_v38 = vadd.f32 %v6150_v4, %v1240_v8  ;;  %v7863_v8 = vsel %vm5931_vm3, %v5864_v50, %v6117_v3 }
 0x2c8   :  { %v1261_v46 = vadd.f32 %v1199_v18, %v7857_v60  ;;  %v1201_v47 = vpop.f32.mrb[46].mxu0  ;;  %v1243_v54 = vpop.f32.mrb[62].mxu1 }
 0x2c9   :  { %v3917_v13 = vmul.f32 -1.442695, %v1247_v51  ;;  %v1248_v27 = vadd.f32 %v1201_v47, %v7858_v61  ;;  %v1203_v6 = vpop.f32.mrb[47].mxu0  ;;  %v4265_v9 = vpop.f32.mrb[63].mxu1 }
 0x2ca   :  { %v1262_v23 = vadd.f32 %v1203_v6, %v7861_v62  ;;  %v3919_v39 = vmul.f32 -1.442695, %v1261_v46  ;;  %v1276_v46 = vadd.f32 %v6150_v4, %v1243_v54 }
 0x2cb   :  { %4718 = vpow2.f32 %v3917_v13  ;;  %v3918_v43 = vmul.f32 -1.442695, %v1248_v27 }
 0x2cc   :  { %v3920_v22 = vmul.f32 -1.442695, %v1262_v23 }
 0x2cd   :  { %4720 = vpow2.f32 %v3918_v43 }
 0x2ce   :  { %4722 = vpow2.f32 %v3919_v39  ;;  %v7862_v39 = vsel %vm5931_vm3, %v5855_v15, %v6091_v0 }
 0x2cf   :  { %4724 = vpow2.f32 %v3920_v22 }
 0x2d5   :  { %v4719_v60 = vpop.eup %4718 }
 0x2d6   :  { %v1255_v18 = vadd.f32 1.0, %v4719_v60 }
 0x2d7   :  { %v4721_v51 = vpop.eup %4720 }
 0x2d8   :  { %4726 = vrcp.f32 %v1255_v18  ;;  %v1256_v47 = vadd.f32 1.0, %v4721_v51  ;;  %v4723_v61 = vpop.eup %4722 }
 0x2d9   :  { %v4725_v9 = vpop.eup %4724  ;;  %v1269_v59 = vadd.f32 1.0, %v4723_v61 }
 0x2da   :  { %4728 = vrcp.f32 %v1256_v47  ;;  %v1270_v48 = vadd.f32 1.0, %v4725_v9 }
 0x2db   :  { %4730 = vrcp.f32 %v1269_v59 }
 0x2dc   :  { %4732 = vrcp.f32 %v1270_v48 }
 0x2e2   :  { %v4727_v6 = vpop.eup %4726 }
 0x2e3   :  { %v1277_v13 = vmul.f32 %v4727_v6, %v1275_v38 }
 0x2e4   :  { %v4729_v27 = vpop.eup %4728 }
 0x2e5   :  { %v1279_v22 = vadd.f32 %v1277_v13, %v7862_v39  ;;  %v1278_v62 = vmul.f32 %v4729_v27, %v1276_v46  ;;  %v4731_v59 = vpop.eup %4730  ;;  %v6430_v46 = vld [vmem:[#allocation11 + $0x64] ss:$12 sps:$4 sm:$0xff]  }
 0x2e6   :  { %v4733_v38 = vpop.eup %4732  ;;  %v1283_v54 = vsub.f32 1.0, %v4731_v59  ;;  %v1287_v60 = vmul.f32 %v4731_v59, %v6156_v25  ;;  %v6442_v27 = vld [vmem:[#allocation11 + $0x78] ss:$12 sps:$4 sm:$0xff]   ;;  %v6450_v39 = vld [vmem:[#allocation11 + $0x90] ss:$12 sps:$4 sm:$0xff]  }
 0x2e7   :  { %4734 = vtanh.f32 %v1279_v22  ;;  %v1280_v23 = vadd.f32 %v1278_v62, %v7863_v8  ;;  %v1284_v18 = vsub.f32 1.0, %v4733_v38  ;;  %v1288_v61 = vmul.f32 %v4733_v38, %v6158_v19  ;;  %v6458_v22 = vld [vmem:[#allocation11 + $0xa8] ss:$12 sps:$4 sm:$0xff]   ;;  %v7867_v38 = vld [vmem:[#allocation23_spill] sm:$0xff]  ;;  %v7872_v25 = vld [vmem:[#allocation28_spill] sm:$0xff] }
 0x2e8   :  { %v7866_v8 = vld [vmem:[#allocation25_spill] sm:$0xff]  ;;  %v7871_v19 = vld [vmem:[#allocation27_spill] sm:$0xff] }
 0x2e9   :  { %4736 = vtanh.f32 %v1280_v23 }
 0x2f1   :  { %v4735_v43 = vpop.eup %4734 }
 0x2f2   :  { %v1285_v51 = vmul.f32 %v4735_v43, %v1283_v54  ;;  %v7868_v54 = vld [vmem:[#allocation24_spill] sm:$0xff] }
 0x2f3   :  { %v4737_v47 = vpop.eup %4736  ;;  %v7869_v43 = vsel %vm5595_vm2, %v7867_v38, %v7868_v54  ;;  %v7885_v54 = vld [vmem:[#allocation39_spill] sm:$0xff] }
 0x2f4   :  { %v1286_v48 = vmul.f32 %v4737_v47, %v1284_v18  ;;  %v6405_v9 = vadd.f32 %v1287_v60, %v1285_v51 }
 0x2f6   :  { %7864 = vst [vmem:[#allocation80_spill] sm:$0xff] %v6405_v9  ;;  %v6407_v6 = vadd.f32 %v1288_v61, %v1286_v48 }
 0x2f8   :  { %7865 = vst [vmem:[#allocation82_spill] sm:$0xff] %v6407_v6  ;;  %v1317_v13 = vpack.c.bf16 %v6407_v6, %v6405_v9 }
 0x2fa   :  { %1351 = vmatmul.mubr.bf16.vlgmr.msra.gmra.mrb[48].mxu0 %v1317_v13  ;;  %4283 = vmatmul.mubr.bf16.vlgmr.msra.gmra.mrb[64].mxu1 %v1317_v13 }
 0x2fb   :  { %1474 = vmatpush1.bf16.msra.mxu0 %v6162_v63  ;;  %4287 = vmatpush3.bf16.msra.mxu1 %v5508_v30  ;;  %v6426_v30 = vld [vmem:[#allocation11 + $0x48] ss:$12 sps:$4 sm:$0xff]  }
 0x2fc   :  { %1475 = vmatprep.subr.bf16.mxu0 %v6166_v28  ;;  %4288 = vmatprep.subr.bf16.mxu1 %v7828_v29 }
 0x2fd   :  { %1505 = vmatprep.mubr.bf16.mxu0 %v7829_v20  ;;  %4302 = vmatprep.mubr.msk.bf16.mxu1 %vm5261_vm0, %v7828_v29 }
 0x2ff   :  { %1476 = vmatpush1.bf16.msra.mxu0 %v6173_v42  ;;  %4289 = vmatpush3.bf16.msra.mxu1 %v5511_v31  ;;  %v6434_v31 = vld [vmem:[#allocation11 + $0x60] ss:$12 sps:$4 sm:$0xff]   ;;  %v8036_v53 = vld [vmem:[#allocation82_spill] sm:$0xff] }
 0x300   :  { %1477 = vmatprep.subr.bf16.mxu0 %v6177_v58  ;;  %4290 = vmatprep.subr.bf16.mxu1 %v7828_v29 }
 0x303   :  { %1478 = vmatpush1.bf16.msra.mxu0 %v6181_v26  ;;  %4291 = vmatpush3.bf16.msra.mxu1 %v5517_v32  ;;  %v6438_v32 = vld [vmem:[#allocation11 + $0x7c] ss:$12 sps:$4 sm:$0xff]  }
 0x304   :  { %1479 = vmatprep.subr.bf16.mxu0 %v6185_v17  ;;  %4292 = vmatprep.subr.bf16.mxu1 %v7828_v29 }
 0x307   :  { %1480 = vmatpush1.bf16.msra.mxu0 %v6426_v30  ;;  %4293 = vmatpush3.bf16.msra.mxu1 %v5521_v33  ;;  %v6446_v33 = vld [vmem:[#allocation11 + $0x94] ss:$12 sps:$4 sm:$0xff]  }
 0x308   :  { %1481 = vmatprep.subr.bf16.mxu0 %v6430_v46  ;;  %4294 = vmatprep.subr.bf16.mxu1 %v7828_v29 }
 0x30b   :  { %1482 = vmatpush1.bf16.msra.mxu0 %v6434_v31  ;;  %4295 = vmatpush3.bf16.msra.mxu1 %v5525_v34  ;;  %v6454_v34 = vld [vmem:[#allocation11 + $0xac] ss:$12 sps:$4 sm:$0xff]  }
 0x30c   :  { %1483 = vmatprep.subr.bf16.mxu0 %v6438_v32  ;;  %4296 = vmatprep.subr.bf16.mxu1 %v7828_v29 }
 0x30f   :  { %1484 = vmatpush1.bf16.msra.mxu0 %v6442_v27  ;;  %4297 = vmatpush3.bf16.msra.mxu1 %v5529_v35 }
 0x310   :  { %1485 = vmatprep.subr.bf16.mxu0 %v6446_v33  ;;  %4298 = vmatprep.subr.bf16.mxu1 %v7828_v29 }
 0x313   :  { %1486 = vmatpush1.bf16.msra.mxu0 %v6450_v39  ;;  %4299 = vmatpush3.bf16.msra.mxu1 %v5533_v36 }
 0x314   :  { %1487 = vmatprep.subr.bf16.mxu0 %v6454_v34  ;;  %4300 = vmatprep.subr.bf16.mxu1 %v7828_v29 }
 0x317   :  { %1488 = vmatpush1.bf16.msra.mxu0 %v6458_v22  ;;  %4301 = vmatpush3.bf16.msra.mxu1 %v5537_v37  ;;  %v7870_v37 = vld [vmem:[#allocation29_spill] sm:$0xff] }
 0x318   :  { %1628 = vmatprep.subr.bf16.mxu0 %v6207_v52  ;;  %4306 = vmatprep.subr.bf16.mxu1 %v7828_v29 }
 0x3cd   :  { %v1352_v35 = vpop.f32.mrb[48].mxu0  ;;  %v1395_v62 = vpop.f32.mrb[64].mxu1 }
 0x3ce   :  { %v1402_v36 = vadd.f32 %v1352_v35, %v7866_v8  ;;  %v1354_v23 = vpop.f32.mrb[49].mxu0  ;;  %v4284_v59 = vpop.f32.mrb[65].mxu1  ;;  %v7873_v35 = vsel %vm5595_vm2, %v7871_v19, %v7872_v25  ;;  %v1430_v0 = vadd.f32 %v6150_v4, %v1395_v62  ;;  %v7876_v62 = vld [vmem:[#allocation97_spill] sm:$0xff] }
 0x3cf   :  { %v1416_v60 = vadd.f32 %v1354_v23, %v7869_v43  ;;  %v1356_v18 = vpop.f32.mrb[50].mxu0  ;;  %v1398_v51 = vpop.f32.mrb[66].mxu1 }
 0x3d0   :  { %v3921_v47 = vmul.f32 -1.442695, %v1402_v36  ;;  %v1403_v61 = vadd.f32 %v1356_v18, %v7870_v37  ;;  %v1358_v48 = vpop.f32.mrb[51].mxu0  ;;  %v4285_v13 = vpop.f32.mrb[67].mxu1 }
 0x3d1   :  { %v1417_v8 = vadd.f32 %v1358_v48, %v7873_v35  ;;  %v3923_v50 = vmul.f32 -1.442695, %v1416_v60  ;;  %v1431_v60 = vadd.f32 %v6150_v4, %v1398_v51 }
 0x3d2   :  { %4738 = vpow2.f32 %v3921_v47  ;;  %v3922_v59 = vmul.f32 -1.442695, %v1403_v61 }
 0x3d3   :  { %v3924_v3 = vmul.f32 -1.442695, %v1417_v8  ;;  %v7875_v8 = vld [vmem:[#allocation67_spill] sm:$0xff] }
 0x3d4   :  { %4740 = vpow2.f32 %v3922_v59  ;;  %v7877_v59 = vsel %vm5931_vm3, %v7875_v8, %v7876_v62 }
 0x3d5   :  { %4742 = vpow2.f32 %v3923_v50  ;;  %v7874_v50 = vsel %vm5931_vm3, %v5878_v10, %v6040_v55  ;;  %v7884_v55 = vld [vmem:[#allocation42_spill] sm:$0xff] }
 0x3d6   :  { %4744 = vpow2.f32 %v3924_v3 }
 0x3dc   :  { %v4739_v23 = vpop.eup %4738 }
 0x3dd   :  { %v1410_v43 = vadd.f32 1.0, %v4739_v23 }
 0x3de   :  { %v4741_v36 = vpop.eup %4740 }
 0x3df   :  { %4746 = vrcp.f32 %v1410_v43  ;;  %v1411_v18 = vadd.f32 1.0, %v4741_v36  ;;  %v4743_v37 = vpop.eup %4742 }
 0x3e0   :  { %v4745_v13 = vpop.eup %4744  ;;  %v1424_v15 = vadd.f32 1.0, %v4743_v37 }
 0x3e1   :  { %4748 = vrcp.f32 %v1411_v18  ;;  %v1425_v21 = vadd.f32 1.0, %v4745_v13 }
 0x3e2   :  { %4750 = vrcp.f32 %v1424_v15 }
 0x3e3   :  { %4752 = vrcp.f32 %v1425_v21 }
 0x3e9   :  { %v4747_v48 = vpop.eup %4746 }
 0x3ea   :  { %v1432_v47 = vmul.f32 %v4747_v48, %v1430_v0 }
 0x3eb   :  { %v4749_v61 = vpop.eup %4748 }
 0x3ec   :  { %v1434_v3 = vadd.f32 %v1432_v47, %v7874_v50  ;;  %v1433_v35 = vmul.f32 %v4749_v61, %v1431_v60  ;;  %v4751_v15 = vpop.eup %4750  ;;  %v6497_v50 = vld [vmem:[#allocation11 + $0x8] ss:$12 sps:$4 sm:$0xff]  }
 0x3ed   :  { %v4753_v0 = vpop.eup %4752  ;;  %v1438_v51 = vsub.f32 1.0, %v4751_v15  ;;  %v1442_v36 = vmul.f32 %v4751_v15, %v6405_v9  ;;  %v6530_v15 = vld [vmem:[#allocation11 + $0x80] ss:$12 sps:$4 sm:$0xff]  }
 0x3ee   :  { %4754 = vtanh.f32 %v1434_v3  ;;  %v1435_v23 = vadd.f32 %v1433_v35, %v7877_v59  ;;  %v1439_v18 = vsub.f32 1.0, %v4753_v0  ;;  %v1443_v48 = vmul.f32 %v4753_v0, %v6407_v6  ;;  %v6506_v3 = vld [vmem:[#allocation11 + $0x20] ss:$12 sps:$4 sm:$0xff]   ;;  %v6512_v35 = vld [vmem:[#allocation11 + $0x38] ss:$12 sps:$4 sm:$0xff]  }
 0x3ef   :  { %v6518_v59 = vld [vmem:[#allocation11 + $0x50] ss:$12 sps:$4 sm:$0xff]   ;;  %v6536_v0 = vld [vmem:[#allocation11 + $0x98] ss:$12 sps:$4 sm:$0xff]  }
 0x3f0   :  { %4756 = vtanh.f32 %v1435_v23  ;;  %v6524_v23 = vld [vmem:[#allocation11 + $0x68] ss:$12 sps:$4 sm:$0xff]  }
 0x3f8   :  { %v4755_v43 = vpop.eup %4754 }
 0x3f9   :  { %v1440_v37 = vmul.f32 %v4755_v43, %v1438_v51  ;;  %v6542_v51 = vld [vmem:[#allocation11 + $0xb0] ss:$12 sps:$4 sm:$0xff]  }
 0x3fa   :  { %v4757_v13 = vpop.eup %4756 }
 0x3fb   :  { %v1441_v21 = vmul.f32 %v4757_v13, %v1439_v18  ;;  %v6490_v47 = vadd.f32 %v1442_v36, %v1440_v37  ;;  %v7880_v18 = vld [vmem:[#allocation38_spill] sm:$0xff] }
 0x3fd   :  { %7878 = vst [vmem:[#allocation37_spill] sm:$0xff] %v6490_v47  ;;  %v6492_v60 = vadd.f32 %v1443_v48, %v1441_v21  ;;  %v7881_v21 = vld [vmem:[#allocation35_spill] sm:$0xff] }
 0x3ff   :  { %7879 = vst [vmem:[#allocation41_spill] sm:$0xff] %v6492_v60  ;;  %v1472_v61 = vpack.c.bf16 %v6492_v60, %v6490_v47 }
 0x401   :  { %1506 = vmatmul.mubr.bf16.vlgmr.msra.gmra.mrb[52].mxu0 %v1472_v61  ;;  %4303 = vmatmul.mubr.bf16.vlgmr.msra.gmra.mrb[68].mxu1 %v1472_v61  ;;  %v7882_v61 = vld [vmem:[#allocation31_spill] sm:$0xff] }
 0x402   :  { %1629 = vmatpush1.bf16.msra.mxu0 %v6162_v63  ;;  %4307 = vmatpush3.bf16.msra.mxu1 %v6497_v50  ;;  %v7883_v9 = vsel %vm5595_vm2, %v7881_v21, %v7882_v61 }
 0x403   :  { %1630 = vmatprep.subr.bf16.mxu0 %v6166_v28  ;;  %4308 = vmatprep.subr.bf16.mxu1 %v7828_v29 }
 0x404   :  { %1660 = vmatprep.mubr.bf16.mxu0 %v7829_v20  ;;  %4322 = vmatprep.mubr.msk.bf16.mxu1 %vm5261_vm0, %v7828_v29 }
 0x406   :  { %1631 = vmatpush1.bf16.msra.mxu0 %v6173_v42  ;;  %4309 = vmatpush3.bf16.msra.mxu1 %v6506_v3 }
 0x407   :  { %1632 = vmatprep.subr.bf16.mxu0 %v6177_v58  ;;  %4310 = vmatprep.subr.bf16.mxu1 %v7828_v29 }
 0x40a   :  { %1633 = vmatpush1.bf16.msra.mxu0 %v6181_v26  ;;  %4311 = vmatpush3.bf16.msra.mxu1 %v6512_v35 }
 0x40b   :  { %1634 = vmatprep.subr.bf16.mxu0 %v6185_v17  ;;  %4312 = vmatprep.subr.bf16.mxu1 %v7828_v29 }
 0x40e   :  { %1635 = vmatpush1.bf16.msra.mxu0 %v6426_v30  ;;  %4313 = vmatpush3.bf16.msra.mxu1 %v6518_v59 }
 0x40f   :  { %1636 = vmatprep.subr.bf16.mxu0 %v6430_v46  ;;  %4314 = vmatprep.subr.bf16.mxu1 %v7828_v29 }
 0x412   :  { %1637 = vmatpush1.bf16.msra.mxu0 %v6434_v31  ;;  %4315 = vmatpush3.bf16.msra.mxu1 %v6524_v23 }
 0x413   :  { %1638 = vmatprep.subr.bf16.mxu0 %v6438_v32  ;;  %4316 = vmatprep.subr.bf16.mxu1 %v7828_v29 }
 0x416   :  { %1639 = vmatpush1.bf16.msra.mxu0 %v6442_v27  ;;  %4317 = vmatpush3.bf16.msra.mxu1 %v6530_v15 }
 0x417   :  { %1640 = vmatprep.subr.bf16.mxu0 %v6446_v33  ;;  %4318 = vmatprep.subr.bf16.mxu1 %v7828_v29 }
 0x41a   :  { %1641 = vmatpush1.bf16.msra.mxu0 %v6450_v39  ;;  %4319 = vmatpush3.bf16.msra.mxu1 %v6536_v0 }
 0x41b   :  { %1642 = vmatprep.subr.bf16.mxu0 %v6454_v34  ;;  %4320 = vmatprep.subr.bf16.mxu1 %v7828_v29 }
 0x41e   :  { %1643 = vmatpush1.bf16.msra.mxu0 %v6458_v22  ;;  %4321 = vmatpush3.bf16.msra.mxu1 %v6542_v51 }
 0x41f   :  { %1783 = vmatprep.subr.bf16.mxu0 %v6207_v52  ;;  %4326 = vmatprep.subr.bf16.mxu1 %v7828_v29 }
 0x4d4   :  { %v1507_v43 = vpop.f32.mrb[52].mxu0  ;;  %v1550_v36 = vpop.f32.mrb[68].mxu1 }
 0x4d5   :  { %v1557_v37 = vadd.f32 %v1507_v43, %v7880_v18  ;;  %v1509_v13 = vpop.f32.mrb[53].mxu0  ;;  %v4304_v48 = vpop.f32.mrb[69].mxu1  ;;  %v7887_v43 = vsel %vm5595_vm2, %v7885_v54, %v7886_v2  ;;  %v1585_v61 = vadd.f32 %v6150_v4, %v1550_v36  ;;  %v7892_v36 = vld [vmem:[#allocation98_spill] sm:$0xff] }
 0x4d6   :  { %v1571_v6 = vadd.f32 %v1509_v13, %v7883_v9  ;;  %v1511_v8 = vpop.f32.mrb[54].mxu0  ;;  %v1553_v62 = vpop.f32.mrb[70].mxu1 }
 0x4d7   :  { %v3925_v10 = vmul.f32 -1.442695, %v1557_v37  ;;  %v1558_v19 = vadd.f32 %v1511_v8, %v7884_v55  ;;  %v1513_v25 = vpop.f32.mrb[55].mxu0  ;;  %v4305_v38 = vpop.f32.mrb[71].mxu1 }
 0x4d8   :  { %v1572_v18 = vadd.f32 %v1513_v25, %v7887_v43  ;;  %v3927_v49 = vmul.f32 -1.442695, %v1571_v6 }
 0x4d9   :  { %4758 = vpow2.f32 %v3925_v10  ;;  %v3926_v48 = vmul.f32 -1.442695, %v1558_v19  ;;  %v1586_v19 = vadd.f32 %v6150_v4, %v1553_v62 }
 0x4da   :  { %v3928_v24 = vmul.f32 -1.442695, %v1572_v18 }
 0x4db   :  { %4760 = vpow2.f32 %v3926_v48 }
 0x4dc   :  { %4762 = vpow2.f32 %v3927_v49  ;;  %v7888_v49 = vld [vmem:[#allocation63_spill] sm:$0xff] }
 0x4dd   :  { %4764 = vpow2.f32 %v3928_v24  ;;  %v7889_v24 = vld [vmem:[#allocation96_spill] sm:$0xff] }
 0x4de   :  { %v7890_v43 = vsel %vm5931_vm3, %v7888_v49, %v7889_v24 }
 0x4e3   :  { %v4759_v9 = vpop.eup %4758 }
 0x4e4   :  { %v1565_v13 = vadd.f32 1.0, %v4759_v9  ;;  %v7891_v9 = vld [vmem:[#allocation65_spill] sm:$0xff] }
 0x4e5   :  { %v4761_v37 = vpop.eup %4760 }
 0x4e6   :  { %4766 = vrcp.f32 %v1565_v13  ;;  %v1566_v55 = vadd.f32 1.0, %v4761_v37  ;;  %v4763_v38 = vpop.eup %4762  ;;  %v7893_v13 = vsel %vm5931_vm3, %v7891_v9, %v7892_v36  ;;  %v7901_v9 = vld [vmem:[#allocation54_spill] sm:$0xff]  ;;  %v7902_v36 = vld [vmem:[#allocation49_spill] sm:$0xff] }
 0x4e7   :  { %v4765_v8 = vpop.eup %4764  ;;  %v1579_v21 = vadd.f32 1.0, %v4763_v38 }
 0x4e8   :  { %4768 = vrcp.f32 %v1566_v55  ;;  %v1580_v54 = vadd.f32 1.0, %v4765_v8 }
 0x4e9   :  { %4770 = vrcp.f32 %v1579_v21 }
 0x4ea   :  { %4772 = vrcp.f32 %v1580_v54 }
 0x4f0   :  { %v4767_v25 = vpop.eup %4766 }
 0x4f1   :  { %v1587_v10 = vmul.f32 %v4767_v25, %v1585_v61 }
 0x4f2   :  { %v4769_v6 = vpop.eup %4768 }
 0x4f3   :  { %v1589_v18 = vadd.f32 %v1587_v10, %v7890_v43  ;;  %v1588_v48 = vmul.f32 %v4769_v6, %v1586_v19  ;;  %v4771_v21 = vpop.eup %4770 }
 0x4f4   :  { %v4773_v61 = vpop.eup %4772  ;;  %v1593_v62 = vsub.f32 1.0, %v4771_v21  ;;  %v1597_v38 = vmul.f32 %v4771_v21, %v6490_v47 }
 0x4f5   :  { %4774 = vtanh.f32 %v1589_v18  ;;  %v1590_v37 = vadd.f32 %v1588_v48, %v7893_v13  ;;  %v1594_v8 = vsub.f32 1.0, %v4773_v61  ;;  %v1598_v10 = vmul.f32 %v4773_v61, %v6492_v60  ;;  %v7896_v48 = vld [vmem:[#allocation53_spill] sm:$0xff]  ;;  %v7897_v61 = vld [vmem:[#allocation51_spill] sm:$0xff] }
 0x4f7   :  { %4776 = vtanh.f32 %v1590_v37 }
 0x4ff   :  { %v4775_v55 = vpop.eup %4774 }
 0x500   :  { %v1595_v25 = vmul.f32 %v4775_v55, %v1593_v62  ;;  %v7898_v62 = vld [vmem:[#allocation47_spill] sm:$0xff] }
 0x501   :  { %v4777_v49 = vpop.eup %4776  ;;  %v7899_v55 = vsel %vm5595_vm2, %v7897_v61, %v7898_v62 }
 0x502   :  { %v1596_v54 = vmul.f32 %v4777_v49, %v1594_v8  ;;  %v6573_v19 = vadd.f32 %v1597_v38, %v1595_v25 }
 0x504   :  { %7894 = vst [vmem:[#allocation25_spill] sm:$0xff] %v6573_v19  ;;  %v6575_v6 = vadd.f32 %v1598_v10, %v1596_v54  ;;  %v7900_v54 = vld [vmem:[#allocation56_spill] sm:$0xff] }
 0x506   :  { %7895 = vst [vmem:[#allocation29_spill] sm:$0xff] %v6575_v6  ;;  %v1627_v43 = vpack.c.bf16 %v6575_v6, %v6573_v19 }
 0x508   :  { %1661 = vmatmul.mubr.bf16.vlgmr.msra.gmra.mrb[56].mxu0 %v1627_v43  ;;  %4323 = vmatmul.mubr.bf16.vlgmr.msra.gmra.mrb[72].mxu1 %v1627_v43 }
 0x509   :  { %1784 = vmatpush1.bf16.msra.mxu0 %v6162_v63  ;;  %4327 = vmatpush3.bf16.msra.mxu1 %v6497_v50 }
 0x50a   :  { %1785 = vmatprep.subr.bf16.mxu0 %v6166_v28  ;;  %4328 = vmatprep.subr.bf16.mxu1 %v7828_v29 }
 0x50b   :  { %1815 = vmatprep.mubr.bf16.mxu0 %v7829_v20  ;;  %4342 = vmatprep.mubr.msk.bf16.mxu1 %vm5261_vm0, %v7828_v29 }
 0x50d   :  { %1786 = vmatpush1.bf16.msra.mxu0 %v6173_v42  ;;  %4329 = vmatpush3.bf16.msra.mxu1 %v6506_v3 }
 0x50e   :  { %1787 = vmatprep.subr.bf16.mxu0 %v6177_v58  ;;  %4330 = vmatprep.subr.bf16.mxu1 %v7828_v29 }
 0x511   :  { %1788 = vmatpush1.bf16.msra.mxu0 %v6181_v26  ;;  %4331 = vmatpush3.bf16.msra.mxu1 %v6512_v35 }
 0x512   :  { %1789 = vmatprep.subr.bf16.mxu0 %v6185_v17  ;;  %4332 = vmatprep.subr.bf16.mxu1 %v7828_v29 }
 0x515   :  { %1790 = vmatpush1.bf16.msra.mxu0 %v6426_v30  ;;  %4333 = vmatpush3.bf16.msra.mxu1 %v6518_v59 }
 0x516   :  { %1791 = vmatprep.subr.bf16.mxu0 %v6430_v46  ;;  %4334 = vmatprep.subr.bf16.mxu1 %v7828_v29 }
 0x519   :  { %1792 = vmatpush1.bf16.msra.mxu0 %v6434_v31  ;;  %4335 = vmatpush3.bf16.msra.mxu1 %v6524_v23 }
 0x51a   :  { %1793 = vmatprep.subr.bf16.mxu0 %v6438_v32  ;;  %4336 = vmatprep.subr.bf16.mxu1 %v7828_v29 }
 0x51d   :  { %1794 = vmatpush1.bf16.msra.mxu0 %v6442_v27  ;;  %4337 = vmatpush3.bf16.msra.mxu1 %v6530_v15 }
 0x51e   :  { %1795 = vmatprep.subr.bf16.mxu0 %v6446_v33  ;;  %4338 = vmatprep.subr.bf16.mxu1 %v7828_v29 }
 0x521   :  { %1796 = vmatpush1.bf16.msra.mxu0 %v6450_v39  ;;  %4339 = vmatpush3.bf16.msra.mxu1 %v6536_v0 }
 0x522   :  { %1797 = vmatprep.subr.bf16.mxu0 %v6454_v34  ;;  %4340 = vmatprep.subr.bf16.mxu1 %v7828_v29 }
 0x525   :  { %1798 = vmatpush1.bf16.msra.mxu0 %v6458_v22  ;;  %4341 = vmatpush3.bf16.msra.mxu1 %v6542_v51 }
 0x526   :  { %1938 = vmatprep.subr.bf16.mxu0 %v6207_v52  ;;  %4346 = vmatprep.subr.bf16.mxu1 %v7828_v29 }
 0x5db   :  { %v1662_v49 = vpop.f32.mrb[56].mxu0  ;;  %v1705_v18 = vpop.f32.mrb[72].mxu1 }
 0x5dc   :  { %v1712_v13 = vadd.f32 %v1662_v49, %v7896_v48  ;;  %v1664_v37 = vpop.f32.mrb[57].mxu0  ;;  %v4324_v21 = vpop.f32.mrb[73].mxu1  ;;  %v7903_v49 = vsel %vm5595_vm2, %v7901_v9, %v7902_v36  ;;  %v1740_v62 = vadd.f32 %v6150_v4, %v1705_v18  ;;  %v7908_v18 = vld [vmem:[#allocation93_spill] sm:$0xff] }
 0x5dd   :  { %v1726_v38 = vadd.f32 %v1664_v37, %v7899_v55  ;;  %v1666_v8 = vpop.f32.mrb[58].mxu0  ;;  %v1708_v25 = vpop.f32.mrb[74].mxu1 }
 0x5de   :  { %v3929_v10 = vmul.f32 -1.442695, %v1712_v13  ;;  %v1713_v43 = vadd.f32 %v1666_v8, %v7900_v54  ;;  %v1668_v47 = vpop.f32.mrb[59].mxu0  ;;  %v4325_v60 = vpop.f32.mrb[75].mxu1 }
 0x5df   :  { %v1727_v48 = vadd.f32 %v1668_v47, %v7903_v49  ;;  %v3931_v24 = vmul.f32 -1.442695, %v1726_v38  ;;  %v1741_v38 = vadd.f32 %v6150_v4, %v1708_v25 }
 0x5e0   :  { %4778 = vpow2.f32 %v3929_v10  ;;  %v3930_v21 = vmul.f32 -1.442695, %v1713_v43 }
 0x5e1   :  { %v3932_v2 = vmul.f32 -1.442695, %v1727_v48 }
 0x5e2   :  { %4780 = vpow2.f32 %v3930_v21 }
 0x5e3   :  { %4782 = vpow2.f32 %v3931_v24  ;;  %v7905_v24 = vld [vmem:[#allocation91_spill] sm:$0xff] }
 0x5e4   :  { %4784 = vpow2.f32 %v3932_v2  ;;  %v7904_v2 = vld [vmem:[#allocation71_spill] sm:$0xff] }
 0x5e5   :  { %v7906_v49 = vsel %vm5931_vm3, %v7904_v2, %v7905_v24 }
 0x5ea   :  { %v4779_v37 = vpop.eup %4778 }
 0x5eb   :  { %v1720_v55 = vadd.f32 1.0, %v4779_v37  ;;  %v7907_v37 = vld [vmem:[#allocation75_spill] sm:$0xff] }
 0x5ec   :  { %v4781_v13 = vpop.eup %4780 }
 0x5ed   :  { %4786 = vrcp.f32 %v1720_v55  ;;  %v1721_v8 = vadd.f32 1.0, %v4781_v13  ;;  %v4783_v60 = vpop.eup %4782  ;;  %v7909_v55 = vsel %vm5931_vm3, %v7907_v37, %v7908_v18 }
 0x5ee   :  { %v4785_v54 = vpop.eup %4784  ;;  %v1734_v61 = vadd.f32 1.0, %v4783_v60 }
 0x5ef   :  { %4788 = vrcp.f32 %v1721_v8  ;;  %v1735_v9 = vadd.f32 1.0, %v4785_v54 }
 0x5f0   :  { %4790 = vrcp.f32 %v1734_v61 }
 0x5f1   :  { %4792 = vrcp.f32 %v1735_v9 }
 0x5f7   :  { %v4787_v47 = vpop.eup %4786 }
 0x5f8   :  { %v1742_v10 = vmul.f32 %v4787_v47, %v1740_v62 }
 0x5f9   :  { %v4789_v43 = vpop.eup %4788 }
 0x5fa   :  { %v1744_v48 = vadd.f32 %v1742_v10, %v7906_v49  ;;  %v1743_v21 = vmul.f32 %v4789_v43, %v1741_v38  ;;  %v4791_v61 = vpop.eup %4790 }
 0x5fb   :  { %v4793_v62 = vpop.eup %4792  ;;  %v1748_v25 = vsub.f32 1.0, %v4791_v61  ;;  %v1752_v60 = vmul.f32 %v4791_v61, %v6573_v19  ;;  %v7912_v61 = vsel %vm5595_vm2, %v6215_v57, %v6227_v5 }
 0x5fc   :  { %4794 = vtanh.f32 %v1744_v48  ;;  %v1745_v13 = vadd.f32 %v1743_v21, %v7909_v55  ;;  %v1749_v54 = vsub.f32 1.0, %v4793_v62  ;;  %v1753_v10 = vmul.f32 %v4793_v62, %v6575_v6 }
 0x5fe   :  { %4796 = vtanh.f32 %v1745_v13 }
 0x606   :  { %v4795_v8 = vpop.eup %4794 }
 0x607   :  { %v1750_v47 = vmul.f32 %v4795_v8, %v1748_v25 }
 0x608   :  { %v4797_v2 = vpop.eup %4796 }
 0x609   :  { %v1751_v9 = vmul.f32 %v4797_v2, %v1749_v54  ;;  %v6640_v38 = vadd.f32 %v1752_v60, %v1750_v47 }
 0x60b   :  { %7910 = vst [vmem:[#allocation38_spill] sm:$0xff] %v6640_v38  ;;  %v6642_v43 = vadd.f32 %v1753_v10, %v1751_v9 }
 0x60d   :  { %7911 = vst [vmem:[#allocation42_spill] sm:$0xff] %v6642_v43  ;;  %v1782_v49 = vpack.c.bf16 %v6642_v43, %v6640_v38 }
 0x60f   :  { %1816 = vmatmul.mubr.bf16.vlgmr.msra.gmra.mrb[60].mxu0 %v1782_v49  ;;  %4343 = vmatmul.mubr.bf16.vlgmr.msra.gmra.mrb[76].mxu1 %v1782_v49 }
 0x610   :  { %1939 = vmatpush1.bf16.msra.mxu0 %v6162_v63  ;;  %4347 = vmatpush3.bf16.msra.mxu1 %v6497_v50 }
 0x611   :  { %1940 = vmatprep.subr.bf16.mxu0 %v6166_v28  ;;  %4348 = vmatprep.subr.bf16.mxu1 %v7828_v29 }
 0x612   :  { %1970 = vmatprep.mubr.bf16.mxu0 %v7829_v20  ;;  %4362 = vmatprep.mubr.msk.bf16.mxu1 %vm5261_vm0, %v7828_v29 }
 0x614   :  { %1941 = vmatpush1.bf16.msra.mxu0 %v6173_v42  ;;  %4349 = vmatpush3.bf16.msra.mxu1 %v6506_v3 }
 0x615   :  { %1942 = vmatprep.subr.bf16.mxu0 %v6177_v58  ;;  %4350 = vmatprep.subr.bf16.mxu1 %v7828_v29 }
 0x618   :  { %1943 = vmatpush1.bf16.msra.mxu0 %v6181_v26  ;;  %4351 = vmatpush3.bf16.msra.mxu1 %v6512_v35 }
 0x619   :  { %1944 = vmatprep.subr.bf16.mxu0 %v6185_v17  ;;  %4352 = vmatprep.subr.bf16.mxu1 %v7828_v29 }
 0x61c   :  { %1945 = vmatpush1.bf16.msra.mxu0 %v6426_v30  ;;  %4353 = vmatpush3.bf16.msra.mxu1 %v6518_v59 }
 0x61d   :  { %1946 = vmatprep.subr.bf16.mxu0 %v6430_v46  ;;  %4354 = vmatprep.subr.bf16.mxu1 %v7828_v29 }
 0x620   :  { %1947 = vmatpush1.bf16.msra.mxu0 %v6434_v31  ;;  %4355 = vmatpush3.bf16.msra.mxu1 %v6524_v23 }
 0x621   :  { %1948 = vmatprep.subr.bf16.mxu0 %v6438_v32  ;;  %4356 = vmatprep.subr.bf16.mxu1 %v7828_v29 }
 0x624   :  { %1949 = vmatpush1.bf16.msra.mxu0 %v6442_v27  ;;  %4357 = vmatpush3.bf16.msra.mxu1 %v6530_v15 }
 0x625   :  { %1950 = vmatprep.subr.bf16.mxu0 %v6446_v33  ;;  %4358 = vmatprep.subr.bf16.mxu1 %v7828_v29 }
 0x628   :  { %1951 = vmatpush1.bf16.msra.mxu0 %v6450_v39  ;;  %4359 = vmatpush3.bf16.msra.mxu1 %v6536_v0 }
 0x629   :  { %1952 = vmatprep.subr.bf16.mxu0 %v6454_v34  ;;  %4360 = vmatprep.subr.bf16.mxu1 %v7828_v29 }
 0x62c   :  { %1953 = vmatpush1.bf16.msra.mxu0 %v6458_v22  ;;  %4361 = vmatpush3.bf16.msra.mxu1 %v6542_v51 }
 0x62d   :  { %2093 = vmatprep.subr.bf16.mxu0 %v6207_v52  ;;  %4366 = vmatprep.subr.bf16.mxu1 %v7828_v29 }
 0x6e2   :  { %v1817_v2 = vpop.f32.mrb[60].mxu0  ;;  %v1860_v48 = vpop.f32.mrb[76].mxu1 }
 0x6e3   :  { %v1867_v21 = vadd.f32 %v1817_v2, %v6237_v56  ;;  %v1819_v55 = vpop.f32.mrb[61].mxu0  ;;  %v4344_v13 = vpop.f32.mrb[77].mxu1  ;;  %v7913_v56 = vsel %vm5595_vm2, %v6221_v1, %v6233_v7  ;;  %v1895_v6 = vadd.f32 %v6150_v4, %v1860_v48  ;;  %v7917_v4 = vld [vmem:[#allocation73_spill] sm:$0xff] }
 0x6e4   :  { %v1881_v62 = vadd.f32 %v1819_v55, %v7912_v61  ;;  %v1821_v25 = vpop.f32.mrb[62].mxu0  ;;  %v1863_v8 = vpop.f32.mrb[78].mxu1 }
 0x6e5   :  { %v3933_v60 = vmul.f32 -1.442695, %v1867_v21  ;;  %v1868_v54 = vadd.f32 %v1821_v25, %v6245_v11  ;;  %v1823_v47 = vpop.f32.mrb[63].mxu0  ;;  %v4345_v10 = vpop.f32.mrb[79].mxu1 }
 0x6e6   :  { %v1882_v9 = vadd.f32 %v1823_v47, %v7913_v56  ;;  %v3935_v2 = vmul.f32 -1.442695, %v1881_v62  ;;  %v6697_v62 = vld [vmem:[%s7596_s5] ss:$0 sm:$0xff] }
 0x6e7   :  { %4798 = vpow2.f32 %v3933_v60  ;;  %v3934_v49 = vmul.f32 -1.442695, %v1868_v54  ;;  %v1896_v54 = vadd.f32 %v6697_v62, %v1863_v8 }
 0x6e8   :  { %v3936_v13 = vmul.f32 -1.442695, %v1882_v9  ;;  %v7914_v9 = vld [vmem:[#allocation69_spill] sm:$0xff] }
 0x6e9   :  { %4800 = vpow2.f32 %v3934_v49  ;;  %v7915_v49 = vld [vmem:[#allocation92_spill] sm:$0xff] }
 0x6ea   :  { %4802 = vpow2.f32 %v3935_v2  ;;  %v7916_v2 = vsel %vm5931_vm3, %v7914_v9, %v7915_v49 }
 0x6eb   :  { %4804 = vpow2.f32 %v3936_v13 }
 0x6f1   :  { %v4799_v55 = vpop.eup %4798 }
 0x6f2   :  { %v1875_v61 = vadd.f32 1.0, %v4799_v55 }
 0x6f3   :  { %v4801_v21 = vpop.eup %4800 }
 0x6f4   :  { %4806 = vrcp.f32 %v1875_v61  ;;  %v1876_v11 = vadd.f32 1.0, %v4801_v21  ;;  %v4803_v25 = vpop.eup %4802 }
 0x6f5   :  { %v4805_v10 = vpop.eup %4804  ;;  %v1889_v19 = vadd.f32 1.0, %v4803_v25 }
 0x6f6   :  { %4808 = vrcp.f32 %v1876_v11  ;;  %v1890_v37 = vadd.f32 1.0, %v4805_v10 }
 0x6f7   :  { %4810 = vrcp.f32 %v1889_v19  ;;  %v7918_v19 = vld [vmem:[#allocation94_spill] sm:$0xff] }
 0x6f8   :  { %4812 = vrcp.f32 %v1890_v37 }
 0x6fe   :  { %v4807_v47 = vpop.eup %4806 }
 0x6ff   :  { %v1897_v60 = vmul.f32 %v4807_v47, %v1895_v6  ;;  %v7919_v6 = vsel %vm5931_vm3, %v7917_v4, %v7918_v19 }
 0x700   :  { %v4809_v56 = vpop.eup %4808 }
 0x701   :  { %v1899_v13 = vadd.f32 %v1897_v60, %v7916_v2  ;;  %v1898_v55 = vmul.f32 %v4809_v56, %v1896_v54  ;;  %v4811_v61 = vpop.eup %4810 }
 0x702   :  { %v4813_v21 = vpop.eup %4812  ;;  %v1903_v8 = vsub.f32 1.0, %v4811_v61  ;;  %v1907_v25 = vmul.f32 %v4811_v61, %v6640_v38 }
 0x703   :  { %4814 = vtanh.f32 %v1899_v13  ;;  %v1900_v48 = vadd.f32 %v1898_v55, %v7919_v6  ;;  %v1904_v10 = vsub.f32 1.0, %v4813_v21  ;;  %v1908_v60 = vmul.f32 %v4813_v21, %v6642_v43 }
 0x705   :  { %4816 = vtanh.f32 %v1900_v48 }
 0x70d   :  { %v4815_v11 = vpop.eup %4814 }
 0x70e   :  { %v1905_v47 = vmul.f32 %v4815_v11, %v1903_v8 }
 0x70f   :  { %v4817_v18 = vpop.eup %4816 }
 0x710   :  { %v1906_v37 = vmul.f32 %v4817_v18, %v1904_v10  ;;  %v6712_v54 = vadd.f32 %v1907_v25, %v1905_v47 }
 0x712   :  { %7920 = vst [vmem:[#allocation53_spill] sm:$0xff] %v6712_v54  ;;  %v6714_v56 = vadd.f32 %v1908_v60, %v1906_v37 }
 0x714   :  { %7921 = vst [vmem:[#allocation56_spill] sm:$0xff] %v6714_v56  ;;  %v1937_v2 = vpack.c.bf16 %v6714_v56, %v6712_v54 }
 0x716   :  { %1971 = vmatmul.mubr.bf16.vlgmr.msra.gmra.mrb[64].mxu0 %v1937_v2  ;;  %4363 = vmatmul.mubr.bf16.vlgmr.msra.gmra.mrb[80].mxu1 %v1937_v2 }
 0x717   :  { %2094 = vmatpush1.bf16.msra.mxu0 %v6162_v63  ;;  %4367 = vmatpush3.bf16.msra.mxu1 %v6497_v50 }
 0x718   :  { %2095 = vmatprep.subr.bf16.mxu0 %v6166_v28  ;;  %4368 = vmatprep.subr.bf16.mxu1 %v7828_v29 }
 0x719   :  { %2125 = vmatprep.mubr.bf16.mxu0 %v7829_v20  ;;  %4382 = vmatprep.mubr.msk.bf16.mxu1 %vm5261_vm0, %v7828_v29 }
 0x71b   :  { %2096 = vmatpush1.bf16.msra.mxu0 %v6173_v42  ;;  %4369 = vmatpush3.bf16.msra.mxu1 %v6506_v3 }
 0x71c   :  { %2097 = vmatprep.subr.bf16.mxu0 %v6177_v58  ;;  %4370 = vmatprep.subr.bf16.mxu1 %v7828_v29 }
 0x71f   :  { %2098 = vmatpush1.bf16.msra.mxu0 %v6181_v26  ;;  %4371 = vmatpush3.bf16.msra.mxu1 %v6512_v35 }
 0x720   :  { %2099 = vmatprep.subr.bf16.mxu0 %v6185_v17  ;;  %4372 = vmatprep.subr.bf16.mxu1 %v7828_v29  ;;  %v7922_v17 = vsel %vm5595_vm2, %v6271_v45, %v6283_v40 }
 0x723   :  { %2100 = vmatpush1.bf16.msra.mxu0 %v6426_v30  ;;  %4373 = vmatpush3.bf16.msra.mxu1 %v6518_v59 }
 0x724   :  { %2101 = vmatprep.subr.bf16.mxu0 %v6430_v46  ;;  %4374 = vmatprep.subr.bf16.mxu1 %v7828_v29 }
 0x727   :  { %2102 = vmatpush1.bf16.msra.mxu0 %v6434_v31  ;;  %4375 = vmatpush3.bf16.msra.mxu1 %v6524_v23 }
 0x728   :  { %2103 = vmatprep.subr.bf16.mxu0 %v6438_v32  ;;  %4376 = vmatprep.subr.bf16.mxu1 %v7828_v29 }
 0x72b   :  { %2104 = vmatpush1.bf16.msra.mxu0 %v6442_v27  ;;  %4377 = vmatpush3.bf16.msra.mxu1 %v6530_v15 }
 0x72c   :  { %2105 = vmatprep.subr.bf16.mxu0 %v6446_v33  ;;  %4378 = vmatprep.subr.bf16.mxu1 %v7828_v29 }
 0x72f   :  { %2106 = vmatpush1.bf16.msra.mxu0 %v6450_v39  ;;  %4379 = vmatpush3.bf16.msra.mxu1 %v6536_v0 }
 0x730   :  { %2107 = vmatprep.subr.bf16.mxu0 %v6454_v34  ;;  %4380 = vmatprep.subr.bf16.mxu1 %v7828_v29 }
 0x733   :  { %2108 = vmatpush1.bf16.msra.mxu0 %v6458_v22  ;;  %4381 = vmatpush3.bf16.msra.mxu1 %v6542_v51 }
 0x734   :  { %2246 = vmatprep.subr.bf16.mxu0 %v6207_v52  ;;  %4386 = vmatprep.subr.bf16.mxu1 %v7828_v29 }
 0x7e9   :  { %v1972_v63 = vpop.f32.mrb[64].mxu0  ;;  %v2015_v28 = vpop.f32.mrb[80].mxu1 }
 0x7ea   :  { %v2022_v42 = vadd.f32 %v1972_v63, %v6293_v14  ;;  %v1974_v58 = vpop.f32.mrb[65].mxu0  ;;  %v4364_v26 = vpop.f32.mrb[81].mxu1  ;;  %v7923_v14 = vsel %vm5595_vm2, %v6277_v44, %v6289_v41 }
 0x7eb   :  { %v2036_v18 = vadd.f32 %v1974_v58, %v7922_v17  ;;  %v1976_v13 = vpop.f32.mrb[66].mxu0  ;;  %v2018_v55 = vpop.f32.mrb[82].mxu1 }
 0x7ec   :  { %v3937_v6 = vmul.f32 -1.442695, %v2022_v42  ;;  %v2023_v48 = vadd.f32 %v1976_v13, %v6301_v12  ;;  %v1978_v52 = vpop.f32.mrb[67].mxu0  ;;  %v4365_v61 = vpop.f32.mrb[83].mxu1  ;;  %v2050_v42 = vadd.f32 %v6697_v62, %v2015_v28  ;;  %v7928_v28 = vld [vmem:[#allocation89_spill] sm:$0xff] }
 0x7ed   :  { %v2037_v21 = vadd.f32 %v1978_v52, %v7923_v14  ;;  %v3939_v11 = vmul.f32 -1.442695, %v2036_v18  ;;  %v2051_v18 = vadd.f32 %v6697_v62, %v2018_v55 }
 0x7ee   :  { %4818 = vpow2.f32 %v3937_v6  ;;  %v3938_v8 = vmul.f32 -1.442695, %v2023_v48  ;;  %v7924_v6 = vld [vmem:[#allocation79_spill] sm:$0xff]  ;;  %v7925_v48 = vld [vmem:[#allocation85_spill] sm:$0xff] }
 0x7ef   :  { %v3940_v25 = vmul.f32 -1.442695, %v2037_v21  ;;  %v7926_v52 = vsel %vm5931_vm3, %v7924_v6, %v7925_v48  ;;  %v7927_v21 = vld [vmem:[#allocation83_spill] sm:$0xff] }
 0x7f0   :  { %4820 = vpow2.f32 %v3938_v8  ;;  %v7929_v8 = vsel %vm5931_vm3, %v7927_v21, %v7928_v28 }
 0x7f1   :  { %4822 = vpow2.f32 %v3939_v11 }
 0x7f2   :  { %4824 = vpow2.f32 %v3940_v25 }
 0x7f8   :  { %v4819_v10 = vpop.eup %4818 }
 0x7f9   :  { %v2030_v47 = vadd.f32 1.0, %v4819_v10 }
 0x7fa   :  { %v4821_v60 = vpop.eup %4820 }
 0x7fb   :  { %4826 = vrcp.f32 %v2030_v47  ;;  %v2031_v12 = vadd.f32 1.0, %v4821_v60  ;;  %v4823_v37 = vpop.eup %4822 }
 0x7fc   :  { %v4825_v2 = vpop.eup %4824  ;;  %v2044_v63 = vadd.f32 1.0, %v4823_v37 }
 0x7fd   :  { %4828 = vrcp.f32 %v2031_v12  ;;  %v2045_v58 = vadd.f32 1.0, %v4825_v2 }
 0x7fe   :  { %4830 = vrcp.f32 %v2044_v63 }
 0x7ff   :  { %4832 = vrcp.f32 %v2045_v58 }
 0x805   :  { %v4827_v26 = vpop.eup %4826 }
 0x806   :  { %v2052_v17 = vmul.f32 %v4827_v26, %v2050_v42 }
 0x807   :  { %v4829_v13 = vpop.eup %4828 }
 0x808   :  { %v2054_v61 = vadd.f32 %v2052_v17, %v7926_v52  ;;  %v2053_v14 = vmul.f32 %v4829_v13, %v2051_v18  ;;  %v4831_v25 = vpop.eup %4830  ;;  %v6785_v18 = vld [vmem:[#allocation11] ss:$12 sps:$4 sm:$0xff]   ;;  %v6789_v13 = vld [vmem:[#allocation11 + $0x1c] ss:$12 sps:$4 sm:$0xff]   ;;  %v6796_v52 = vld [vmem:[#allocation11 + $0x18] ss:$12 sps:$4 sm:$0xff]  }
 0x809   :  { %v4833_v10 = vpop.eup %4832  ;;  %v2058_v55 = vsub.f32 1.0, %v4831_v25  ;;  %v2062_v60 = vmul.f32 %v4831_v25, %v6712_v54 }
 0x80a   :  { %4834 = vtanh.f32 %v2054_v61  ;;  %v2055_v11 = vadd.f32 %v2053_v14, %v7929_v8  ;;  %v2059_v12 = vsub.f32 1.0, %v4833_v10  ;;  %v2063_v63 = vmul.f32 %v4833_v10, %v6714_v56  ;;  %v6800_v61 = vld [vmem:[#allocation11 + $0x34] ss:$12 sps:$4 sm:$0xff]   ;;  %v6804_v14 = vld [vmem:[#allocation11 + $0x30] ss:$12 sps:$4 sm:$0xff]  }
 0x80b   :  { %v6808_v8 = vld [vmem:[#allocation11 + $0x4c] ss:$12 sps:$4 sm:$0xff]  }
 0x80c   :  { %4836 = vtanh.f32 %v2055_v11  ;;  %v7934_v11 = vld [vmem:[#allocation68_spill] sm:$0xff] }
 0x814   :  { %v4835_v47 = vpop.eup %4834 }
 0x815   :  { %v2060_v37 = vmul.f32 %v4835_v47, %v2058_v55 }
 0x816   :  { %v4837_v2 = vpop.eup %4836 }
 0x817   :  { %v2061_v42 = vmul.f32 %v4837_v2, %v2059_v12  ;;  %v6779_v58 = vadd.f32 %v2062_v60, %v2060_v37  ;;  %v7936_v60 = vld [vmem:[#allocation74_spill] sm:$0xff] }
 0x819   :  { %7930 = vst [vmem:[#allocation69_spill] sm:$0xff] %v6779_v58  ;;  %v6781_v26 = vadd.f32 %v2063_v63, %v2061_v42  ;;  %v7937_v63 = vld [vmem:[#allocation88_spill] sm:$0xff]  ;;  %v7938_v42 = vld [vmem:[#allocation70_spill] sm:$0xff] }
 0x81b   :  { %7931 = vst [vmem:[#allocation92_spill] sm:$0xff] %v6781_v26  ;;  %v2092_v17 = vpack.c.bf16 %v6781_v26, %v6779_v58 }
 0x81d   :  { %2126 = vmatmul.mubr.bf16.vlgmr.msra.gmra.mrb[68].mxu0 %v2092_v17  ;;  %4383 = vmatmul.mubr.bf16.vlgmr.msra.gmra.mrb[84].mxu1 %v2092_v17  ;;  %v7939_v17 = vsel %vm5595_vm2, %v7937_v63, %v7938_v42 }
 0x81e   :  { %2247 = vmatpush1.bf16.msra.mxu0 %v6785_v18  ;;  %4387 = vmatpush3.bf16.msra.mxu1 %v6497_v50 }
 0x81f   :  { %2248 = vmatprep.subr.bf16.mxu0 %v6789_v13  ;;  %4388 = vmatprep.subr.bf16.mxu1 %v7828_v29 }
 0x820   :  { %2278 = vmatprep.mubr.bf16.mxu0 %v7829_v20  ;;  %4402 = vmatprep.mubr.msk.bf16.mxu1 %vm5261_vm0, %v7828_v29 }
 0x822   :  { %2249 = vmatpush1.bf16.msra.mxu0 %v6796_v52  ;;  %4389 = vmatpush3.bf16.msra.mxu1 %v6506_v3 }
 0x823   :  { %2250 = vmatprep.subr.bf16.mxu0 %v6800_v61  ;;  %4390 = vmatprep.subr.bf16.mxu1 %v7828_v29 }
 0x826   :  { %2251 = vmatpush1.bf16.msra.mxu0 %v6804_v14  ;;  %4391 = vmatpush3.bf16.msra.mxu1 %v6512_v35 }
 0x827   :  { %2252 = vmatprep.subr.bf16.mxu0 %v6808_v8  ;;  %4392 = vmatprep.subr.bf16.mxu1 %v7828_v29 }
 0x82a   :  { %2253 = vmatpush1.bf16.msra.mxu0 %v6426_v30  ;;  %4393 = vmatpush3.bf16.msra.mxu1 %v6518_v59  ;;  %v6830_v30 = vld [vmem:[#allocation11 + $0x4] ss:$12 sps:$4 sm:$0xff]  }
 0x82b   :  { %2254 = vmatprep.subr.bf16.mxu0 %v6430_v46  ;;  %4394 = vmatprep.subr.bf16.mxu1 %v7828_v29 }
 0x82e   :  { %2255 = vmatpush1.bf16.msra.mxu0 %v6434_v31  ;;  %4395 = vmatpush3.bf16.msra.mxu1 %v6524_v23 }
 0x82f   :  { %2256 = vmatprep.subr.bf16.mxu0 %v6438_v32  ;;  %4396 = vmatprep.subr.bf16.mxu1 %v7828_v29  ;;  %v7932_v32 = vld [vmem:[#allocation72_spill] sm:$0xff] }
 0x832   :  { %2257 = vmatpush1.bf16.msra.mxu0 %v6442_v27  ;;  %4397 = vmatpush3.bf16.msra.mxu1 %v6530_v15 }
 0x833   :  { %2258 = vmatprep.subr.bf16.mxu0 %v6446_v33  ;;  %4398 = vmatprep.subr.bf16.mxu1 %v7828_v29 }
 0x836   :  { %2259 = vmatpush1.bf16.msra.mxu0 %v6450_v39  ;;  %4399 = vmatpush3.bf16.msra.mxu1 %v6536_v0 }
 0x837   :  { %2260 = vmatprep.subr.bf16.mxu0 %v6454_v34  ;;  %4400 = vmatprep.subr.bf16.mxu1 %v7828_v29  ;;  %v7933_v34 = vld [vmem:[#allocation86_spill] sm:$0xff] }
 0x838   :  { %v7935_v25 = vsel %vm5595_vm2, %v7933_v34, %v7934_v11 }
 0x83a   :  { %2261 = vmatpush1.bf16.msra.mxu0 %v6458_v22  ;;  %4401 = vmatpush3.bf16.msra.mxu1 %v6542_v51 }
 0x83b   :  { %2399 = vmatprep.subr.bf16.mxu0 %v6830_v30  ;;  %4406 = vmatprep.subr.bf16.mxu1 %v7828_v29 }
 0x8f0   :  { %v2127_v46 = vpop.f32.mrb[68].mxu0  ;;  %v2170_v31 = vpop.f32.mrb[84].mxu1 }
 0x8f1   :  { %v2177_v27 = vadd.f32 %v2127_v46, %v7932_v32  ;;  %v2129_v33 = vpop.f32.mrb[69].mxu0  ;;  %v4384_v39 = vpop.f32.mrb[85].mxu1  ;;  %v2205_v38 = vadd.f32 %v6697_v62, %v2170_v31  ;;  %v7944_v31 = vld [vmem:[#allocation90_spill] sm:$0xff] }
 0x8f2   :  { %v2191_v22 = vadd.f32 %v2129_v33, %v7935_v25  ;;  %v2131_v10 = vpop.f32.mrb[70].mxu0  ;;  %v2173_v55 = vpop.f32.mrb[86].mxu1 }
 0x8f3   :  { %v3941_v47 = vmul.f32 -1.442695, %v2177_v27  ;;  %v2178_v12 = vadd.f32 %v2131_v10, %v7936_v60  ;;  %v2133_v37 = vpop.f32.mrb[71].mxu0  ;;  %v4385_v2 = vpop.f32.mrb[87].mxu1 }
 0x8f4   :  { %v2192_v46 = vadd.f32 %v2133_v37, %v7939_v17  ;;  %v3943_v39 = vmul.f32 -1.442695, %v2191_v22  ;;  %v2206_v22 = vadd.f32 %v6697_v62, %v2173_v55  ;;  %v7941_v17 = vld [vmem:[#allocation87_spill] sm:$0xff] }
 0x8f5   :  { %4838 = vpow2.f32 %v3941_v47  ;;  %v3942_v32 = vmul.f32 -1.442695, %v2178_v12 }
 0x8f6   :  { %v3944_v54 = vmul.f32 -1.442695, %v2192_v46 }
 0x8f7   :  { %4840 = vpow2.f32 %v3942_v32 }
 0x8f8   :  { %4842 = vpow2.f32 %v3943_v39 }
 0x8f9   :  { %4844 = vpow2.f32 %v3944_v54  ;;  %v7940_v54 = vld [vmem:[#allocation77_spill] sm:$0xff] }
 0x8fa   :  { %v7942_v46 = vsel %vm5931_vm3, %v7940_v54, %v7941_v17 }
 0x8ff   :  { %v4839_v33 = vpop.eup %4838 }
 0x900   :  { %v2185_v25 = vadd.f32 1.0, %v4839_v33  ;;  %v7943_v33 = vld [vmem:[#allocation81_spill] sm:$0xff] }
 0x901   :  { %v4841_v27 = vpop.eup %4840 }
 0x902   :  { %4846 = vrcp.f32 %v2185_v25  ;;  %v2186_v10 = vadd.f32 1.0, %v4841_v27  ;;  %v4843_v60 = vpop.eup %4842  ;;  %v7945_v25 = vsel %vm5931_vm3, %v7943_v33, %v7944_v31 }
 0x903   :  { %v4845_v2 = vpop.eup %4844  ;;  %v2199_v56 = vadd.f32 1.0, %v4843_v60 }
 0x904   :  { %4848 = vrcp.f32 %v2186_v10  ;;  %v2200_v43 = vadd.f32 1.0, %v4845_v2 }
 0x905   :  { %4850 = vrcp.f32 %v2199_v56 }
 0x906   :  { %4852 = vrcp.f32 %v2200_v43 }
 0x90c   :  { %v4847_v37 = vpop.eup %4846 }
 0x90d   :  { %v2207_v47 = vmul.f32 %v4847_v37, %v2205_v38 }
 0x90e   :  { %v4849_v12 = vpop.eup %4848 }
 0x90f   :  { %v2209_v32 = vadd.f32 %v2207_v47, %v7942_v46  ;;  %v2208_v39 = vmul.f32 %v4849_v12, %v2206_v22  ;;  %v4851_v38 = vpop.eup %4850 }
 0x910   :  { %v4853_v56 = vpop.eup %4852  ;;  %v2213_v55 = vsub.f32 1.0, %v4851_v38  ;;  %v2217_v60 = vmul.f32 %v4851_v38, %v6779_v58  ;;  %v7948_v38 = vld [vmem:[#allocation76_spill] sm:$0xff] }
 0x911   :  { %4854 = vtanh.f32 %v2209_v32  ;;  %v2210_v27 = vadd.f32 %v2208_v39, %v7945_v25  ;;  %v2214_v2 = vsub.f32 1.0, %v4853_v56  ;;  %v2218_v47 = vmul.f32 %v4853_v56, %v6781_v26  ;;  %v6897_v32 = vld [vmem:[#allocation11 + $0x78] ss:$12 sps:$4 sm:$0xff]   ;;  %v6905_v39 = vld [vmem:[#allocation11 + $0x90] ss:$12 sps:$4 sm:$0xff]  }
 0x912   :  { %v6913_v25 = vld [vmem:[#allocation11 + $0xa8] ss:$12 sps:$4 sm:$0xff]  }
 0x913   :  { %4856 = vtanh.f32 %v2210_v27 }
 0x91b   :  { %v4855_v10 = vpop.eup %4854 }
 0x91c   :  { %v2215_v37 = vmul.f32 %v4855_v10, %v2213_v55  ;;  %v7949_v10 = vsel %vm5595_vm2, %v7934_v11, %v7933_v34 }
 0x91d   :  { %v4857_v24 = vpop.eup %4856 }
 0x91e   :  { %v2216_v43 = vmul.f32 %v4857_v24, %v2214_v2  ;;  %v6860_v22 = vadd.f32 %v2217_v60, %v2215_v37  ;;  %v6885_v24 = vld [vmem:[#allocation11 + $0x64] ss:$12 sps:$4 sm:$0xff]  }
 0x920   :  { %7946 = vst [vmem:[#allocation73_spill] sm:$0xff] %v6860_v22  ;;  %v6862_v12 = vadd.f32 %v2218_v47, %v2216_v43 }
 0x922   :  { %7947 = vst [vmem:[#allocation94_spill] sm:$0xff] %v6862_v12  ;;  %v2245_v46 = vpack.c.bf16 %v6862_v12, %v6860_v22 }
 0x924   :  { %2279 = vmatmul.mubr.bf16.vlgmr.msra.gmra.mrb[72].mxu0 %v2245_v46  ;;  %4403 = vmatmul.mubr.bf16.vlgmr.msra.gmra.mrb[88].mxu1 %v2245_v46 }
 0x925   :  { %2400 = vmatpush1.bf16.msra.mxu0 %v6785_v18  ;;  %4407 = vmatpush3.bf16.msra.mxu1 %v6497_v50  ;;  %v6881_v50 = vld [vmem:[#allocation11 + $0x48] ss:$12 sps:$4 sm:$0xff]  }
 0x926   :  { %2401 = vmatprep.subr.bf16.mxu0 %v6789_v13  ;;  %4408 = vmatprep.subr.bf16.mxu1 %v7828_v29 }
 0x927   :  { %2431 = vmatprep.mubr.bf16.mxu0 %v7829_v20  ;;  %4422 = vmatprep.mubr.msk.bf16.mxu1 %vm5261_vm0, %v7828_v29 }
 0x929   :  { %2402 = vmatpush1.bf16.msra.mxu0 %v6796_v52  ;;  %4409 = vmatpush3.bf16.msra.mxu1 %v6506_v3  ;;  %v6889_v3 = vld [vmem:[#allocation11 + $0x60] ss:$12 sps:$4 sm:$0xff]  }
 0x92a   :  { %2403 = vmatprep.subr.bf16.mxu0 %v6800_v61  ;;  %4410 = vmatprep.subr.bf16.mxu1 %v7828_v29 }
 0x92d   :  { %2404 = vmatpush1.bf16.msra.mxu0 %v6804_v14  ;;  %4411 = vmatpush3.bf16.msra.mxu1 %v6512_v35  ;;  %v6893_v35 = vld [vmem:[#allocation11 + $0x7c] ss:$12 sps:$4 sm:$0xff]  }
 0x92e   :  { %2405 = vmatprep.subr.bf16.mxu0 %v6808_v8  ;;  %4412 = vmatprep.subr.bf16.mxu1 %v7828_v29 }
 0x931   :  { %2406 = vmatpush1.bf16.msra.mxu0 %v6881_v50  ;;  %4413 = vmatpush3.bf16.msra.mxu1 %v6518_v59  ;;  %v6901_v59 = vld [vmem:[#allocation11 + $0x94] ss:$12 sps:$4 sm:$0xff]  }
 0x932   :  { %2407 = vmatprep.subr.bf16.mxu0 %v6885_v24  ;;  %4414 = vmatprep.subr.bf16.mxu1 %v7828_v29 }
 0x935   :  { %2408 = vmatpush1.bf16.msra.mxu0 %v6889_v3  ;;  %4415 = vmatpush3.bf16.msra.mxu1 %v6524_v23  ;;  %v6909_v23 = vld [vmem:[#allocation11 + $0xac] ss:$12 sps:$4 sm:$0xff]  }
 0x936   :  { %2409 = vmatprep.subr.bf16.mxu0 %v6893_v35  ;;  %4416 = vmatprep.subr.bf16.mxu1 %v7828_v29 }
 0x939   :  { %2410 = vmatpush1.bf16.msra.mxu0 %v6897_v32  ;;  %4417 = vmatpush3.bf16.msra.mxu1 %v6530_v15 }
 0x93a   :  { %2411 = vmatprep.subr.bf16.mxu0 %v6901_v59  ;;  %4418 = vmatprep.subr.bf16.mxu1 %v7828_v29 }
 0x93d   :  { %2412 = vmatpush1.bf16.msra.mxu0 %v6905_v39  ;;  %4419 = vmatpush3.bf16.msra.mxu1 %v6536_v0 }
 0x93e   :  { %2413 = vmatprep.subr.bf16.mxu0 %v6909_v23  ;;  %4420 = vmatprep.subr.bf16.mxu1 %v7828_v29 }
 0x941   :  { %2414 = vmatpush1.bf16.msra.mxu0 %v6913_v25  ;;  %4421 = vmatpush3.bf16.msra.mxu1 %v6542_v51  ;;  %v7950_v51 = vld [vmem:[#allocation78_spill] sm:$0xff] }
 0x942   :  { %2552 = vmatprep.subr.bf16.mxu0 %v6830_v30  ;;  %4426 = vmatprep.subr.bf16.mxu1 %v7828_v29 }
 0x9f7   :  { %v2280_v15 = vpop.f32.mrb[72].mxu0  ;;  %v2323_v27 = vpop.f32.mrb[88].mxu1 }
 0x9f8   :  { %v2330_v0 = vadd.f32 %v2280_v15, %v7948_v38  ;;  %v2282_v56 = vpop.f32.mrb[73].mxu0  ;;  %v4404_v55 = vpop.f32.mrb[89].mxu1  ;;  %v7951_v15 = vsel %vm5595_vm2, %v7938_v42, %v7937_v63 }
 0x9f9   :  { %v2344_v60 = vadd.f32 %v2282_v56, %v7949_v10  ;;  %v2284_v2 = vpop.f32.mrb[74].mxu0  ;;  %v2326_v37 = vpop.f32.mrb[90].mxu1 }
 0x9fa   :  { %v3945_v47 = vmul.f32 -1.442695, %v2330_v0  ;;  %v2331_v43 = vadd.f32 %v2284_v2, %v7950_v51  ;;  %v2286_v46 = vpop.f32.mrb[75].mxu0  ;;  %v4405_v58 = vpop.f32.mrb[91].mxu1  ;;  %v2358_v51 = vadd.f32 %v6697_v62, %v2323_v27  ;;  %v7953_v27 = vsel %vm5931_vm3, %v7944_v31, %v7943_v33  ;;  %v6952_v31 = vld [vmem:[#allocation11 + $0x8] ss:$12 sps:$4 sm:$0xff]  }
 0x9fb   :  { %v2345_v38 = vadd.f32 %v2286_v46, %v7951_v15  ;;  %v3947_v26 = vmul.f32 -1.442695, %v2344_v60  ;;  %v2359_v60 = vadd.f32 %v6697_v62, %v2326_v37 }
 0x9fc   :  { %4858 = vpow2.f32 %v3945_v47  ;;  %v3946_v55 = vmul.f32 -1.442695, %v2331_v43 }
 0x9fd   :  { %v3948_v36 = vmul.f32 -1.442695, %v2345_v38 }
 0x9fe   :  { %4860 = vpow2.f32 %v3946_v55 }
 0x9ff   :  { %4862 = vpow2.f32 %v3947_v26 }
 0xa00   :  { %4864 = vpow2.f32 %v3948_v36  ;;  %v7952_v36 = vsel %vm5931_vm3, %v7941_v17, %v7940_v54 }
 0xa06   :  { %v4859_v34 = vpop.eup %4858 }
 0xa07   :  { %v2338_v11 = vadd.f32 1.0, %v4859_v34 }
 0xa08   :  { %v4861_v0 = vpop.eup %4860 }
 0xa09   :  { %4866 = vrcp.f32 %v2338_v11  ;;  %v2339_v56 = vadd.f32 1.0, %v4861_v0  ;;  %v4863_v58 = vpop.eup %4862 }
 0xa0a   :  { %v4865_v10 = vpop.eup %4864  ;;  %v2352_v2 = vadd.f32 1.0, %v4863_v58 }
 0xa0b   :  { %4868 = vrcp.f32 %v2339_v56  ;;  %v2353_v63 = vadd.f32 1.0, %v4865_v10 }
 0xa0c   :  { %4870 = vrcp.f32 %v2352_v2 }
 0xa0d   :  { %4872 = vrcp.f32 %v2353_v63  ;;  %v6967_v63 = vld [vmem:[#allocation11 + $0x38] ss:$12 sps:$4 sm:$0xff]  }
 0xa13   :  { %v4867_v42 = vpop.eup %4866 }
 0xa14   :  { %v2360_v47 = vmul.f32 %v4867_v42, %v2358_v51  ;;  %v6961_v51 = vld [vmem:[#allocation11 + $0x20] ss:$12 sps:$4 sm:$0xff]   ;;  %v6973_v42 = vld [vmem:[#allocation11 + $0x50] ss:$12 sps:$4 sm:$0xff]  }
 0xa15   :  { %v4869_v43 = vpop.eup %4868 }
 0xa16   :  { %v2362_v26 = vadd.f32 %v2360_v47, %v7952_v36  ;;  %v2361_v46 = vmul.f32 %v4869_v43, %v2359_v60  ;;  %v4871_v38 = vpop.eup %4870  ;;  %v6979_v47 = vld [vmem:[#allocation11 + $0x68] ss:$12 sps:$4 sm:$0xff]   ;;  %v6985_v60 = vld [vmem:[#allocation11 + $0x80] ss:$12 sps:$4 sm:$0xff]   ;;  %v6991_v43 = vld [vmem:[#allocation11 + $0x98] ss:$12 sps:$4 sm:$0xff]  }
 0xa17   :  { %v4873_v55 = vpop.eup %4872  ;;  %v2366_v37 = vsub.f32 1.0, %v4871_v38  ;;  %v2370_v11 = vmul.f32 %v4871_v38, %v6860_v22  ;;  %v6997_v36 = vld [vmem:[#allocation11 + $0xb0] ss:$12 sps:$4 sm:$0xff]  }
 0xa18   :  { %4874 = vtanh.f32 %v2362_v26  ;;  %v2363_v15 = vadd.f32 %v2361_v46, %v7953_v27  ;;  %v2367_v0 = vsub.f32 1.0, %v4873_v55  ;;  %v2371_v17 = vmul.f32 %v4873_v55, %v6862_v12  ;;  %v7954_v27 = vld [vmem:[#allocation66_spill] sm:$0xff] }
 0xa1a   :  { %4876 = vtanh.f32 %v2363_v15 }
 0xa22   :  { %v4875_v34 = vpop.eup %4874 }
 0xa23   :  { %v2368_v56 = vmul.f32 %v4875_v34, %v2366_v37  ;;  %v7955_v37 = vsel %vm5595_vm2, %v6283_v40, %v6271_v45 }
 0xa24   :  { %v4877_v54 = vpop.eup %4876 }
 0xa25   :  { %v2369_v58 = vmul.f32 %v4877_v54, %v2367_v0  ;;  %v6945_v10 = vadd.f32 %v2370_v11, %v2368_v56  ;;  %v7956_v54 = vld [vmem:[#allocation84_spill] sm:$0xff] }
 0xa27   :  { %v6947_v2 = vadd.f32 %v2371_v17, %v2369_v58 }
 0xa29   :  { %v2398_v33 = vpack.c.bf16 %v6947_v2, %v6945_v10 }
 0xa2b   :  { %2432 = vmatmul.mubr.bf16.vlgmr.msra.gmra.mrb[76].mxu0 %v2398_v33  ;;  %4423 = vmatmul.mubr.bf16.vlgmr.msra.gmra.mrb[92].mxu1 %v2398_v33 }
 0xa2c   :  { %2553 = vmatpush1.bf16.msra.mxu0 %v6785_v18  ;;  %4427 = vmatpush3.bf16.msra.mxu1 %v6952_v31 }
 0xa2d   :  { %2554 = vmatprep.subr.bf16.mxu0 %v6789_v13  ;;  %4428 = vmatprep.subr.bf16.mxu1 %v7828_v29 }
 0xa2e   :  { %2584 = vmatprep.mubr.bf16.mxu0 %v7829_v20  ;;  %4442 = vmatprep.mubr.msk.bf16.mxu1 %vm5261_vm0, %v7828_v29 }
 0xa30   :  { %2555 = vmatpush1.bf16.msra.mxu0 %v6796_v52  ;;  %4429 = vmatpush3.bf16.msra.mxu1 %v6961_v51 }
 0xa31   :  { %2556 = vmatprep.subr.bf16.mxu0 %v6800_v61  ;;  %4430 = vmatprep.subr.bf16.mxu1 %v7828_v29 }
 0xa34   :  { %2557 = vmatpush1.bf16.msra.mxu0 %v6804_v14  ;;  %4431 = vmatpush3.bf16.msra.mxu1 %v6967_v63 }
 0xa35   :  { %2558 = vmatprep.subr.bf16.mxu0 %v6808_v8  ;;  %4432 = vmatprep.subr.bf16.mxu1 %v7828_v29 }
 0xa38   :  { %2559 = vmatpush1.bf16.msra.mxu0 %v6881_v50  ;;  %4433 = vmatpush3.bf16.msra.mxu1 %v6973_v42 }
 0xa39   :  { %2560 = vmatprep.subr.bf16.mxu0 %v6885_v24  ;;  %4434 = vmatprep.subr.bf16.mxu1 %v7828_v29 }
 0xa3c   :  { %2561 = vmatpush1.bf16.msra.mxu0 %v6889_v3  ;;  %4435 = vmatpush3.bf16.msra.mxu1 %v6979_v47 }
 0xa3d   :  { %2562 = vmatprep.subr.bf16.mxu0 %v6893_v35  ;;  %4436 = vmatprep.subr.bf16.mxu1 %v7828_v29 }
 0xa40   :  { %2563 = vmatpush1.bf16.msra.mxu0 %v6897_v32  ;;  %4437 = vmatpush3.bf16.msra.mxu1 %v6985_v60 }
 0xa41   :  { %2564 = vmatprep.subr.bf16.mxu0 %v6901_v59  ;;  %4438 = vmatprep.subr.bf16.mxu1 %v7828_v29 }
 0xa44   :  { %2565 = vmatpush1.bf16.msra.mxu0 %v6905_v39  ;;  %4439 = vmatpush3.bf16.msra.mxu1 %v6991_v43 }
 0xa45   :  { %2566 = vmatprep.subr.bf16.mxu0 %v6909_v23  ;;  %4440 = vmatprep.subr.bf16.mxu1 %v7828_v29 }
 0xa48   :  { %2567 = vmatpush1.bf16.msra.mxu0 %v6913_v25  ;;  %4441 = vmatpush3.bf16.msra.mxu1 %v6997_v36 }
 0xa49   :  { %2705 = vmatprep.subr.bf16.mxu0 %v6830_v30  ;;  %4446 = vmatprep.subr.bf16.mxu1 %v7828_v29 }
 0xafe   :  { %v2433_v26 = vpop.f32.mrb[76].mxu0  ;;  %v2476_v46 = vpop.f32.mrb[92].mxu1 }
 0xaff   :  { %v2483_v15 = vadd.f32 %v2433_v26, %v7954_v27  ;;  %v2435_v38 = vpop.f32.mrb[77].mxu0  ;;  %v4424_v55 = vpop.f32.mrb[93].mxu1  ;;  %v7957_v26 = vsel %vm5595_vm2, %v6289_v41, %v6277_v44 }
 0xb00   :  { %v2497_v34 = vadd.f32 %v2435_v38, %v7955_v37  ;;  %v2437_v11 = vpop.f32.mrb[78].mxu0  ;;  %v2479_v0 = vpop.f32.mrb[94].mxu1 }
 0xb01   :  { %v3949_v56 = vmul.f32 -1.442695, %v2483_v15  ;;  %v2484_v17 = vadd.f32 %v2437_v11, %v7956_v54  ;;  %v2439_v58 = vpop.f32.mrb[79].mxu0  ;;  %v4425_v33 = vpop.f32.mrb[95].mxu1 }
 0xb02   :  { %v2498_v27 = vadd.f32 %v2439_v58, %v7957_v26  ;;  %v3951_v22 = vmul.f32 -1.442695, %v2497_v34  ;;  %v2511_v33 = vadd.f32 %v6697_v62, %v2476_v46  ;;  %v2512_v34 = vadd.f32 %v6697_v62, %v2479_v0 }
 0xb03   :  { %4878 = vpow2.f32 %v3949_v56  ;;  %v3950_v55 = vmul.f32 -1.442695, %v2484_v17  ;;  %v7959_v46 = vsel %vm5931_vm3, %v7928_v28, %v7927_v21 }
 0xb04   :  { %v3952_v12 = vmul.f32 -1.442695, %v2498_v27 }
 0xb05   :  { %4880 = vpow2.f32 %v3950_v55 }
 0xb06   :  { %4882 = vpow2.f32 %v3951_v22  ;;  %v7958_v22 = vsel %vm5931_vm3, %v7925_v48, %v7924_v6 }
 0xb07   :  { %4884 = vpow2.f32 %v3952_v12 }
 0xb0d   :  { %v4879_v45 = vpop.eup %4878 }
 0xb0e   :  { %v2491_v40 = vadd.f32 1.0, %v4879_v45 }
 0xb0f   :  { %v4881_v15 = vpop.eup %4880 }
 0xb10   :  { %4886 = vrcp.f32 %v2491_v40  ;;  %v2492_v38 = vadd.f32 1.0, %v4881_v15  ;;  %v4883_v37 = vpop.eup %4882 }
 0xb11   :  { %v4885_v11 = vpop.eup %4884  ;;  %v2505_v54 = vadd.f32 1.0, %v4883_v37 }
 0xb12   :  { %4888 = vrcp.f32 %v2492_v38  ;;  %v2506_v44 = vadd.f32 1.0, %v4885_v11 }
 0xb13   :  { %4890 = vrcp.f32 %v2505_v54 }
 0xb14   :  { %4892 = vrcp.f32 %v2506_v44  ;;  %v7960_v44 = vld [vmem:[#allocation107_spill] sm:$0xff] }
 0xb1a   :  { %v4887_v41 = vpop.eup %4886 }
 0xb1b   :  { %v2513_v56 = vmul.f32 %v4887_v41, %v2511_v33 }
 0xb1c   :  { %v4889_v17 = vpop.eup %4888 }
 0xb1d   :  { %v2515_v12 = vadd.f32 %v2513_v56, %v7958_v22  ;;  %v2514_v58 = vmul.f32 %v4889_v17, %v2512_v34  ;;  %v4891_v27 = vpop.eup %4890  ;;  %v7961_v17 = vsel %vm5595_vm2, %v6227_v5, %v6215_v57 }
 0xb1e   :  { %v4893_v55 = vpop.eup %4892  ;;  %v2519_v0 = vsub.f32 1.0, %v4891_v27  ;;  %v2523_v40 = vmul.f32 %v4891_v27, %v6945_v10 }
 0xb1f   :  { %4894 = vtanh.f32 %v2515_v12  ;;  %v2516_v26 = vadd.f32 %v2514_v58, %v7959_v46  ;;  %v2520_v15 = vsub.f32 1.0, %v4893_v55  ;;  %v2524_v48 = vmul.f32 %v4893_v55, %v6947_v2 }
 0xb21   :  { %4896 = vtanh.f32 %v2516_v26  ;;  %v7962_v26 = vld [vmem:[#allocation108_spill] sm:$0xff] }
 0xb29   :  { %v4895_v45 = vpop.eup %4894 }
 0xb2a   :  { %v2521_v38 = vmul.f32 %v4895_v45, %v2519_v0  ;;  %v7963_v45 = vsel %vm5595_vm2, %v6233_v7, %v6221_v1 }
 0xb2b   :  { %v4897_v6 = vpop.eup %4896 }
 0xb2c   :  { %v2522_v37 = vmul.f32 %v4897_v6, %v2520_v15  ;;  %v7028_v11 = vadd.f32 %v2523_v40, %v2521_v38 }
 0xb2e   :  { %v7030_v54 = vadd.f32 %v2524_v48, %v2522_v37 }
 0xb30   :  { %v2551_v21 = vpack.c.bf16 %v7030_v54, %v7028_v11 }
 0xb32   :  { %2585 = vmatmul.mubr.bf16.vlgmr.msra.gmra.mrb[80].mxu0 %v2551_v21  ;;  %4443 = vmatmul.mubr.bf16.vlgmr.msra.gmra.mrb[96].mxu1 %v2551_v21 }
 0xb33   :  { %2706 = vmatpush1.bf16.msra.mxu0 %v6785_v18  ;;  %4447 = vmatpush3.bf16.msra.mxu1 %v6952_v31 }
 0xb34   :  { %2707 = vmatprep.subr.bf16.mxu0 %v6789_v13  ;;  %4448 = vmatprep.subr.bf16.mxu1 %v7828_v29 }
 0xb35   :  { %2737 = vmatprep.mubr.bf16.mxu0 %v7829_v20  ;;  %4462 = vmatprep.mubr.msk.bf16.mxu1 %vm5261_vm0, %v7828_v29 }
 0xb37   :  { %2708 = vmatpush1.bf16.msra.mxu0 %v6796_v52  ;;  %4449 = vmatpush3.bf16.msra.mxu1 %v6961_v51 }
 0xb38   :  { %2709 = vmatprep.subr.bf16.mxu0 %v6800_v61  ;;  %4450 = vmatprep.subr.bf16.mxu1 %v7828_v29 }
 0xb3b   :  { %2710 = vmatpush1.bf16.msra.mxu0 %v6804_v14  ;;  %4451 = vmatpush3.bf16.msra.mxu1 %v6967_v63 }
 0xb3c   :  { %2711 = vmatprep.subr.bf16.mxu0 %v6808_v8  ;;  %4452 = vmatprep.subr.bf16.mxu1 %v7828_v29 }
 0xb3f   :  { %2712 = vmatpush1.bf16.msra.mxu0 %v6881_v50  ;;  %4453 = vmatpush3.bf16.msra.mxu1 %v6973_v42 }
 0xb40   :  { %2713 = vmatprep.subr.bf16.mxu0 %v6885_v24  ;;  %4454 = vmatprep.subr.bf16.mxu1 %v7828_v29 }
 0xb43   :  { %2714 = vmatpush1.bf16.msra.mxu0 %v6889_v3  ;;  %4455 = vmatpush3.bf16.msra.mxu1 %v6979_v47 }
 0xb44   :  { %2715 = vmatprep.subr.bf16.mxu0 %v6893_v35  ;;  %4456 = vmatprep.subr.bf16.mxu1 %v7828_v29 }
 0xb47   :  { %2716 = vmatpush1.bf16.msra.mxu0 %v6897_v32  ;;  %4457 = vmatpush3.bf16.msra.mxu1 %v6985_v60 }
 0xb48   :  { %2717 = vmatprep.subr.bf16.mxu0 %v6901_v59  ;;  %4458 = vmatprep.subr.bf16.mxu1 %v7828_v29 }
 0xb4b   :  { %2718 = vmatpush1.bf16.msra.mxu0 %v6905_v39  ;;  %4459 = vmatpush3.bf16.msra.mxu1 %v6991_v43 }
 0xb4c   :  { %2719 = vmatprep.subr.bf16.mxu0 %v6909_v23  ;;  %4460 = vmatprep.subr.bf16.mxu1 %v7828_v29 }
 0xb4f   :  { %2720 = vmatpush1.bf16.msra.mxu0 %v6913_v25  ;;  %4461 = vmatpush3.bf16.msra.mxu1 %v6997_v36 }
 0xb50   :  { %2858 = vmatprep.subr.bf16.mxu0 %v6830_v30  ;;  %4466 = vmatprep.subr.bf16.mxu1 %v7828_v29 }
 0xc05   :  { %v2586_v28 = vpop.f32.mrb[80].mxu0  ;;  %v2629_v33 = vpop.f32.mrb[96].mxu1 }
 0xc06   :  { %v2636_v41 = vadd.f32 %v2586_v28, %v7960_v44  ;;  %v2588_v56 = vpop.f32.mrb[81].mxu0  ;;  %v4444_v34 = vpop.f32.mrb[97].mxu1 }
 0xc07   :  { %v2650_v22 = vadd.f32 %v2588_v56, %v7961_v17  ;;  %v2590_v12 = vpop.f32.mrb[82].mxu0  ;;  %v2632_v58 = vpop.f32.mrb[98].mxu1 }
 0xc08   :  { %v3953_v46 = vmul.f32 -1.442695, %v2636_v41  ;;  %v2637_v27 = vadd.f32 %v2590_v12, %v7962_v26  ;;  %v2592_v55 = vpop.f32.mrb[83].mxu0  ;;  %v4445_v0 = vpop.f32.mrb[99].mxu1  ;;  %v2664_v41 = vadd.f32 %v6697_v62, %v2629_v33  ;;  %v2665_v34 = vadd.f32 %v6697_v62, %v2632_v58 }
 0xc09   :  { %v2651_v40 = vadd.f32 %v2592_v55, %v7963_v45  ;;  %v3955_v38 = vmul.f32 -1.442695, %v2650_v22  ;;  %v7964_v22 = vsel %vm5931_vm3, %v7915_v49, %v7914_v9  ;;  %v7965_v33 = vsel %vm5931_vm3, %v7918_v19, %v7917_v4 }
 0xc0a   :  { %4898 = vpow2.f32 %v3953_v46  ;;  %v3954_v15 = vmul.f32 -1.442695, %v2637_v27 }
 0xc0b   :  { %v3956_v6 = vmul.f32 -1.442695, %v2651_v40 }
 0xc0c   :  { %4900 = vpow2.f32 %v3954_v15 }
 0xc0d   :  { %4902 = vpow2.f32 %v3955_v38 }
 0xc0e   :  { %4904 = vpow2.f32 %v3956_v6 }
 0xc14   :  { %v4899_v57 = vpop.eup %4898 }
 0xc15   :  { %v2644_v5 = vadd.f32 1.0, %v4899_v57 }
 0xc16   :  { %v4901_v48 = vpop.eup %4900 }
 0xc17   :  { %4906 = vrcp.f32 %v2644_v5  ;;  %v2645_v37 = vadd.f32 1.0, %v4901_v48  ;;  %v4903_v21 = vpop.eup %4902  ;;  %v7966_v5 = vld [vmem:[#allocation57_spill] sm:$0xff] }
 0xc18   :  { %v4905_v28 = vpop.eup %4904  ;;  %v2658_v44 = vadd.f32 1.0, %v4903_v21 }
 0xc19   :  { %4908 = vrcp.f32 %v2645_v37  ;;  %v2659_v1 = vadd.f32 1.0, %v4905_v28  ;;  %v7967_v28 = vld [vmem:[#allocation47_spill] sm:$0xff] }
 0xc1a   :  { %4910 = vrcp.f32 %v2658_v44  ;;  %v7968_v44 = vld [vmem:[#allocation51_spill] sm:$0xff] }
 0xc1b   :  { %4912 = vrcp.f32 %v2659_v1 }
 0xc21   :  { %v4907_v7 = vpop.eup %4906 }
 0xc22   :  { %v2666_v56 = vmul.f32 %v4907_v7, %v2664_v41  ;;  %v7969_v41 = vsel %vm5595_vm2, %v7967_v28, %v7968_v44 }
 0xc23   :  { %v4909_v17 = vpop.eup %4908 }
 0xc24   :  { %v2668_v12 = vadd.f32 %v2666_v56, %v7964_v22  ;;  %v2667_v46 = vmul.f32 %v4909_v17, %v2665_v34  ;;  %v4911_v27 = vpop.eup %4910  ;;  %v7970_v17 = vld [vmem:[#allocation58_spill] sm:$0xff] }
 0xc25   :  { %v4913_v55 = vpop.eup %4912  ;;  %v2672_v62 = vsub.f32 1.0, %v4911_v27  ;;  %v2676_v0 = vmul.f32 %v4911_v27, %v7028_v11 }
 0xc26   :  { %4914 = vtanh.f32 %v2668_v12  ;;  %v2669_v26 = vadd.f32 %v2667_v46, %v7965_v33  ;;  %v2673_v45 = vsub.f32 1.0, %v4913_v55  ;;  %v2677_v49 = vmul.f32 %v4913_v55, %v7030_v54  ;;  %v7971_v33 = vld [vmem:[#allocation49_spill] sm:$0xff] }
 0xc28   :  { %4916 = vtanh.f32 %v2669_v26  ;;  %v7972_v26 = vld [vmem:[#allocation54_spill] sm:$0xff] }
 0xc29   :  { %v7973_v27 = vsel %vm5595_vm2, %v7971_v33, %v7972_v26 }
 0xc30   :  { %v4915_v58 = vpop.eup %4914 }
 0xc31   :  { %v2674_v40 = vmul.f32 %v4915_v58, %v2672_v62 }
 0xc32   :  { %v4917_v9 = vpop.eup %4916 }
 0xc33   :  { %v2675_v15 = vmul.f32 %v4917_v9, %v2673_v45  ;;  %v7095_v38 = vadd.f32 %v2676_v0, %v2674_v40 }
 0xc35   :  { %v7097_v6 = vadd.f32 %v2677_v49, %v2675_v15 }
 0xc37   :  { %v2704_v4 = vpack.c.bf16 %v7097_v6, %v7095_v38 }
 0xc39   :  { %2738 = vmatmul.mubr.bf16.vlgmr.msra.gmra.mrb[84].mxu0 %v2704_v4  ;;  %4463 = vmatmul.mubr.bf16.vlgmr.msra.gmra.mrb[100].mxu1 %v2704_v4 }
 0xc3a   :  { %2859 = vmatpush1.bf16.msra.mxu0 %v6785_v18  ;;  %4467 = vmatpush3.bf16.msra.mxu1 %v6952_v31 }
 0xc3b   :  { %2860 = vmatprep.subr.bf16.mxu0 %v6789_v13  ;;  %4468 = vmatprep.subr.bf16.mxu1 %v7828_v29 }
 0xc3c   :  { %2890 = vmatprep.mubr.bf16.mxu0 %v7829_v20  ;;  %4482 = vmatprep.mubr.msk.bf16.mxu1 %vm5261_vm0, %v7828_v29 }
 0xc3e   :  { %2861 = vmatpush1.bf16.msra.mxu0 %v6796_v52  ;;  %4469 = vmatpush3.bf16.msra.mxu1 %v6961_v51 }
 0xc3f   :  { %2862 = vmatprep.subr.bf16.mxu0 %v6800_v61  ;;  %4470 = vmatprep.subr.bf16.mxu1 %v7828_v29 }
 0xc42   :  { %2863 = vmatpush1.bf16.msra.mxu0 %v6804_v14  ;;  %4471 = vmatpush3.bf16.msra.mxu1 %v6967_v63 }
 0xc43   :  { %2864 = vmatprep.subr.bf16.mxu0 %v6808_v8  ;;  %4472 = vmatprep.subr.bf16.mxu1 %v7828_v29 }
 0xc46   :  { %2865 = vmatpush1.bf16.msra.mxu0 %v6881_v50  ;;  %4473 = vmatpush3.bf16.msra.mxu1 %v6973_v42 }
 0xc47   :  { %2866 = vmatprep.subr.bf16.mxu0 %v6885_v24  ;;  %4474 = vmatprep.subr.bf16.mxu1 %v7828_v29 }
 0xc4a   :  { %2867 = vmatpush1.bf16.msra.mxu0 %v6889_v3  ;;  %4475 = vmatpush3.bf16.msra.mxu1 %v6979_v47 }
 0xc4b   :  { %2868 = vmatprep.subr.bf16.mxu0 %v6893_v35  ;;  %4476 = vmatprep.subr.bf16.mxu1 %v7828_v29 }
 0xc4e   :  { %2869 = vmatpush1.bf16.msra.mxu0 %v6897_v32  ;;  %4477 = vmatpush3.bf16.msra.mxu1 %v6985_v60 }
 0xc4f   :  { %2870 = vmatprep.subr.bf16.mxu0 %v6901_v59  ;;  %4478 = vmatprep.subr.bf16.mxu1 %v7828_v29 }
 0xc52   :  { %2871 = vmatpush1.bf16.msra.mxu0 %v6905_v39  ;;  %4479 = vmatpush3.bf16.msra.mxu1 %v6991_v43 }
 0xc53   :  { %2872 = vmatprep.subr.bf16.mxu0 %v6909_v23  ;;  %4480 = vmatprep.subr.bf16.mxu1 %v7828_v29 }
 0xc56   :  { %2873 = vmatpush1.bf16.msra.mxu0 %v6913_v25  ;;  %4481 = vmatpush3.bf16.msra.mxu1 %v6997_v36 }
 0xc57   :  { %3011 = vmatprep.subr.bf16.mxu0 %v6830_v30  ;;  %4486 = vmatprep.subr.bf16.mxu1 %v7828_v29 }
 0xd0c   :  { %v2739_v19 = vpop.f32.mrb[84].mxu0  ;;  %v2782_v57 = vpop.f32.mrb[100].mxu1 }
 0xd0d   :  { %v2789_v48 = vadd.f32 %v2739_v19, %v7966_v5  ;;  %v2741_v37 = vpop.f32.mrb[85].mxu0  ;;  %v4464_v21 = vpop.f32.mrb[101].mxu1  ;;  %v7151_v5 = vld [vmem:[%s7596_s5] ss:$0 sm:$0xff]  ;;  %s5262_s5 = smov [#allocation15]  }
 0xd0e   :  { %v2803_v1 = vadd.f32 %v2741_v37, %v7969_v41  ;;  %v2743_v7 = vpop.f32.mrb[86].mxu0  ;;  %v2785_v56 = vpop.f32.mrb[102].mxu1  ;;  %s3846_s18 = sshll.u32 %s5262_s5, 4  ;;  %s3847_s18 = int_to_ptr.vmem [resolvable:$true] %s3846_s18 }
 0xd0f   :  { %v3957_v34 = vmul.f32 -1.442695, %v2789_v48  ;;  %v2790_v22 = vadd.f32 %v2743_v7, %v7970_v17  ;;  %v2745_v12 = vpop.f32.mrb[87].mxu0  ;;  %v4465_v46 = vpop.f32.mrb[103].mxu1  ;;  %v2817_v48 = vadd.f32 %v7151_v5, %v2782_v57  ;;  %v2818_v44 = vadd.f32 %v7151_v5, %v2785_v56  ;;  %v7975_v7 = vld [vmem:[#allocation71_spill] sm:$0xff]  ;;  %s5194_s21 = scalar_lea.vmem %s3847_s18, 256  ;;  %p5199_p13 = scmp.lt.s32.totalorder %s3847_s18, %s3847_s18 }
 0xd10   :  { %v2804_v55 = vadd.f32 %v2745_v12, %v7973_v27  ;;  %v3959_v58 = vmul.f32 -1.442695, %v2803_v1  ;;  %v7974_v1 = vld [vmem:[#allocation91_spill] sm:$0xff]  ;;  %v7977_v12 = vld [vmem:[#allocation93_spill] sm:$0xff]  ;;  %p5195_p12 = scmp.ne.s32.totalorder %s3847_s18, %s5194_s21  ;;  %p5200_p0 = scmp.lt.s32.totalorder %s5194_s21, %s5194_s21 }
 0xd11   :  { %4918 = vpow2.f32 %v3957_v34  ;;  %v3958_v62 = vmul.f32 -1.442695, %v2790_v22  ;;  %v7976_v34 = vsel %vm5931_vm3, %v7974_v1, %v7975_v7  ;;  %v7978_v57 = vld [vmem:[#allocation75_spill] sm:$0xff]  ;;  %v7984_v1 = vld [vmem:[#allocation44_spill] sm:$0xff] }
 0xd12   :  { %v3960_v0 = vmul.f32 -1.442695, %v2804_v55  ;;  %v7979_v46 = vsel %vm5931_vm3, %v7977_v12, %v7978_v57  ;;  %p5201_p1 = por %p5200_p0, %p5199_p13 }
 0xd13   :  { %4920 = vpow2.f32 %v3958_v62 }
 0xd14   :  { %4922 = vpow2.f32 %v3959_v58  ;;  %p5202_p2 = pnand %p5201_p1, %p5195_p12 }
 0xd15   :  { %4924 = vpow2.f32 %v3960_v0 }
 0xd1b   :  { %v4919_v45 = vpop.eup %4918 }
 0xd1c   :  { %v2797_v40 = vadd.f32 1.0, %v4919_v45 }
 0xd1d   :  { %v4921_v9 = vpop.eup %4920 }
 0xd1e   :  { %4926 = vrcp.f32 %v2797_v40  ;;  %v2798_v49 = vadd.f32 1.0, %v4921_v9  ;;  %v4923_v15 = vpop.eup %4922 }
 0xd1f   :  { %v4925_v4 = vpop.eup %4924  ;;  %v2811_v19 = vadd.f32 1.0, %v4923_v15 }
 0xd20   :  { %4928 = vrcp.f32 %v2798_v49  ;;  %v2812_v37 = vadd.f32 1.0, %v4925_v4 }
 0xd21   :  { %4930 = vrcp.f32 %v2811_v19  ;;  %v7981_v19 = vld [vmem:[#allocation31_spill] sm:$0xff] }
 0xd22   :  { %4932 = vrcp.f32 %v2812_v37 }
 0xd28   :  { %v4927_v21 = vpop.eup %4926 }
 0xd29   :  { %v2819_v28 = vmul.f32 %v4927_v21, %v2817_v48  ;;  %v7982_v48 = vld [vmem:[#allocation35_spill] sm:$0xff] }
 0xd2a   :  { %v4929_v41 = vpop.eup %4928  ;;  %v7983_v37 = vsel %vm5595_vm2, %v7981_v19, %v7982_v48 }
 0xd2b   :  { %v2821_v17 = vadd.f32 %v2819_v28, %v7976_v34  ;;  %v2820_v22 = vmul.f32 %v4929_v41, %v2818_v44  ;;  %v4931_v26 = vpop.eup %4930 }
 0xd2c   :  { %v4933_v27 = vpop.eup %4932  ;;  %v2825_v56 = vsub.f32 1.0, %v4931_v26  ;;  %v2829_v62 = vmul.f32 %v4931_v26, %v7095_v38 }
 0xd2d   :  { %4934 = vtanh.f32 %v2821_v17  ;;  %v2822_v33 = vadd.f32 %v2820_v22, %v7979_v46  ;;  %v2826_v58 = vsub.f32 1.0, %v4933_v27  ;;  %v2830_v40 = vmul.f32 %v4933_v27, %v7097_v6  ;;  %v7985_v17 = vld [vmem:[#allocation33_spill] sm:$0xff]  ;;  %v7986_v22 = vld [vmem:[#allocation39_spill] sm:$0xff] }
 0xd2e   :  { %v7987_v12 = vsel %vm5595_vm2, %v7985_v17, %v7986_v22 }
 0xd2f   :  { %4936 = vtanh.f32 %v2822_v33 }
 0xd37   :  { %v4935_v55 = vpop.eup %4934 }
 0xd38   :  { %v2827_v0 = vmul.f32 %v4935_v55, %v2825_v56 }
 0xd39   :  { %v4937_v45 = vpop.eup %4936 }
 0xd3a   :  { %v2828_v9 = vmul.f32 %v4937_v45, %v2826_v58  ;;  %v7167_v49 = vadd.f32 %v2829_v62, %v2827_v0 }
 0xd3c   :  { %v7169_v15 = vadd.f32 %v2830_v40, %v2828_v9 }
 0xd3e   :  { %v2857_v4 = vpack.c.bf16 %v7169_v15, %v7167_v49 }
 0xd40   :  { %2891 = vmatmul.mubr.bf16.vlgmr.msra.gmra.mrb[88].mxu0 %v2857_v4  ;;  %4483 = vmatmul.mubr.bf16.vlgmr.msra.gmra.mrb[104].mxu1 %v2857_v4 }
 0xd41   :  { %3012 = vmatpush1.bf16.msra.mxu0 %v6785_v18  ;;  %4487 = vmatpush3.bf16.msra.mxu1 %v6952_v31 }
 0xd42   :  { %3013 = vmatprep.subr.bf16.mxu0 %v6789_v13  ;;  %4488 = vmatprep.subr.bf16.mxu1 %v7828_v29 }
 0xd43   :  { %3043 = vmatprep.mubr.bf16.mxu0 %v7829_v20  ;;  %4502 = vmatprep.mubr.msk.bf16.mxu1 %vm5261_vm0, %v7828_v29 }
 0xd45   :  { %3014 = vmatpush1.bf16.msra.mxu0 %v6796_v52  ;;  %4489 = vmatpush3.bf16.msra.mxu1 %v6961_v51  ;;  %v7980_v52 = vld [vmem:[#allocation43_spill] sm:$0xff] }
 0xd46   :  { %3015 = vmatprep.subr.bf16.mxu0 %v6800_v61  ;;  %4490 = vmatprep.subr.bf16.mxu1 %v7828_v29 }
 0xd49   :  { %3016 = vmatpush1.bf16.msra.mxu0 %v6804_v14  ;;  %4491 = vmatpush3.bf16.msra.mxu1 %v6967_v63 }
 0xd4a   :  { %3017 = vmatprep.subr.bf16.mxu0 %v6808_v8  ;;  %4492 = vmatprep.subr.bf16.mxu1 %v7828_v29 }
 0xd4d   :  { %3018 = vmatpush1.bf16.msra.mxu0 %v6881_v50  ;;  %4493 = vmatpush3.bf16.msra.mxu1 %v6973_v42 }
 0xd4e   :  { %3019 = vmatprep.subr.bf16.mxu0 %v6885_v24  ;;  %4494 = vmatprep.subr.bf16.mxu1 %v7828_v29 }
 0xd51   :  { %3020 = vmatpush1.bf16.msra.mxu0 %v6889_v3  ;;  %4495 = vmatpush3.bf16.msra.mxu1 %v6979_v47 }
 0xd52   :  { %3021 = vmatprep.subr.bf16.mxu0 %v6893_v35  ;;  %4496 = vmatprep.subr.bf16.mxu1 %v7828_v29 }
 0xd55   :  { %3022 = vmatpush1.bf16.msra.mxu0 %v6897_v32  ;;  %4497 = vmatpush3.bf16.msra.mxu1 %v6985_v60 }
 0xd56   :  { %3023 = vmatprep.subr.bf16.mxu0 %v6901_v59  ;;  %4498 = vmatprep.subr.bf16.mxu1 %v7828_v29 }
 0xd59   :  { %3024 = vmatpush1.bf16.msra.mxu0 %v6905_v39  ;;  %4499 = vmatpush3.bf16.msra.mxu1 %v6991_v43 }
 0xd5a   :  { %3025 = vmatprep.subr.bf16.mxu0 %v6909_v23  ;;  %4500 = vmatprep.subr.bf16.mxu1 %v7828_v29 }
 0xd5d   :  { %3026 = vmatpush1.bf16.msra.mxu0 %v6913_v25  ;;  %4501 = vmatpush3.bf16.msra.mxu1 %v6997_v36 }
 0xd5e   :  { %3164 = vmatprep.subr.bf16.mxu0 %v6830_v30  ;;  %4506 = vmatprep.subr.bf16.mxu1 %v7828_v29 }
 0xe13   :  { %v2892_v18 = vpop.f32.mrb[88].mxu0  ;;  %v2935_v13 = vpop.f32.mrb[104].mxu1 }
 0xe14   :  { %v2942_v61 = vadd.f32 %v2892_v18, %v7980_v52  ;;  %v2894_v14 = vpop.f32.mrb[89].mxu0  ;;  %v4484_v8 = vpop.f32.mrb[105].mxu1  ;;  %v2970_v40 = vadd.f32 %v7151_v5, %v2935_v13  ;;  %v7992_v13 = vld [vmem:[#allocation65_spill] sm:$0xff] }
 0xe15   :  { %v2956_v21 = vadd.f32 %v2894_v14, %v7983_v37  ;;  %v2896_v28 = vpop.f32.mrb[90].mxu0  ;;  %v2938_v44 = vpop.f32.mrb[106].mxu1  ;;  %v7988_v14 = vld [vmem:[#allocation96_spill] sm:$0xff]  ;;  %v7989_v8 = vld [vmem:[#allocation63_spill] sm:$0xff] }
 0xe16   :  { %v3961_v41 = vmul.f32 -1.442695, %v2942_v61  ;;  %v2943_v7 = vadd.f32 %v2896_v28, %v7984_v1  ;;  %v2898_v30 = vpop.f32.mrb[91].mxu0  ;;  %v4485_v34 = vpop.f32.mrb[107].mxu1  ;;  %v2971_v52 = vadd.f32 %v7151_v5, %v2938_v44  ;;  %v7990_v19 = vsel %vm5931_vm3, %v7988_v14, %v7989_v8 }
 0xe17   :  { %v2957_v57 = vadd.f32 %v2898_v30, %v7987_v12  ;;  %v3963_v33 = vmul.f32 -1.442695, %v2956_v21  ;;  %v7991_v21 = vld [vmem:[#allocation98_spill] sm:$0xff] }
 0xe18   :  { %4938 = vpow2.f32 %v3961_v41  ;;  %v3962_v46 = vmul.f32 -1.442695, %v2943_v7  ;;  %v7993_v28 = vsel %vm5931_vm3, %v7991_v21, %v7992_v13 }
 0xe19   :  { %v3964_v26 = vmul.f32 -1.442695, %v2957_v57 }
 0xe1a   :  { %4940 = vpow2.f32 %v3962_v46 }
 0xe1b   :  { %4942 = vpow2.f32 %v3963_v33 }
 0xe1c   :  { %4944 = vpow2.f32 %v3964_v26 }
 0xe22   :  { %v4939_v27 = vpop.eup %4938 }
 0xe23   :  { %v2950_v56 = vadd.f32 1.0, %v4939_v27 }
 0xe24   :  { %v4941_v55 = vpop.eup %4940 }
 0xe25   :  { %4946 = vrcp.f32 %v2950_v56  ;;  %v2951_v62 = vadd.f32 1.0, %v4941_v55  ;;  %v4943_v58 = vpop.eup %4942  ;;  %v7240_v56 = vld [vmem:[#allocation11] ss:$12 sps:$4 sm:$0xff]   ;;  %v7244_v55 = vld [vmem:[#allocation11 + $0x1c] ss:$12 sps:$4 sm:$0xff]  }
 0xe26   :  { %v4945_v0 = vpop.eup %4944  ;;  %v2964_v45 = vadd.f32 1.0, %v4943_v58  ;;  %v7255_v58 = vld [vmem:[#allocation11 + $0x34] ss:$12 sps:$4 sm:$0xff]  }
 0xe27   :  { %4948 = vrcp.f32 %v2951_v62  ;;  %v2965_v9 = vadd.f32 1.0, %v4945_v0  ;;  %v7251_v62 = vld [vmem:[#allocation11 + $0x18] ss:$12 sps:$4 sm:$0xff]   ;;  %v7259_v0 = vld [vmem:[#allocation11 + $0x30] ss:$12 sps:$4 sm:$0xff]  }
 0xe28   :  { %4950 = vrcp.f32 %v2964_v45  ;;  %v7263_v45 = vld [vmem:[#allocation11 + $0x4c] ss:$12 sps:$4 sm:$0xff]  }
 0xe29   :  { %4952 = vrcp.f32 %v2965_v9 }
 0xe2f   :  { %v4947_v4 = vpop.eup %4946 }
 0xe30   :  { %v2972_v18 = vmul.f32 %v4947_v4, %v2970_v40  ;;  %v7995_v40 = vld [vmem:[#allocation24_spill] sm:$0xff] }
 0xe31   :  { %v4949_v61 = vpop.eup %4948 }
 0xe32   :  { %v2974_v48 = vadd.f32 %v2972_v18, %v7990_v19  ;;  %v2973_v37 = vmul.f32 %v4949_v61, %v2971_v52  ;;  %v4951_v1 = vpop.eup %4950  ;;  %v7998_v61 = vld [vmem:[#allocation30_spill] sm:$0xff] }
 0xe33   :  { %v4953_v7 = vpop.eup %4952  ;;  %v2978_v44 = vsub.f32 1.0, %v4951_v1  ;;  %v2982_v34 = vmul.f32 %v4951_v1, %v7167_v49 }
 0xe34   :  { %4954 = vtanh.f32 %v2974_v48  ;;  %v2975_v41 = vadd.f32 %v2973_v37, %v7993_v28  ;;  %v2979_v17 = vsub.f32 1.0, %v4953_v7  ;;  %v2983_v57 = vmul.f32 %v4953_v7, %v7169_v15  ;;  %v7999_v48 = vld [vmem:[#allocation28_spill] sm:$0xff]  ;;  %v8000_v37 = vld [vmem:[#allocation27_spill] sm:$0xff] }
 0xe35   :  { %v8001_v21 = vsel %vm5595_vm2, %v7999_v48, %v8000_v37 }
 0xe36   :  { %4956 = vtanh.f32 %v2975_v41 }
 0xe3e   :  { %v4955_v30 = vpop.eup %4954 }
 0xe3f   :  { %v2980_v22 = vmul.f32 %v4955_v30, %v2978_v44 }
 0xe40   :  { %v4957_v12 = vpop.eup %4956 }
 0xe41   :  { %v2981_v46 = vmul.f32 %v4957_v12, %v2979_v17  ;;  %v7234_v33 = vadd.f32 %v2982_v34, %v2980_v22 }
 0xe43   :  { %v7236_v26 = vadd.f32 %v2983_v57, %v2981_v46 }
 0xe45   :  { %v3010_v27 = vpack.c.bf16 %v7236_v26, %v7234_v33 }
 0xe47   :  { %3044 = vmatmul.mubr.bf16.vlgmr.msra.gmra.mrb[92].mxu0 %v3010_v27  ;;  %4503 = vmatmul.mubr.bf16.vlgmr.msra.gmra.mrb[108].mxu1 %v3010_v27 }
 0xe48   :  { %3165 = vmatpush1.bf16.msra.mxu0 %v7240_v56  ;;  %4507 = vmatpush3.bf16.msra.mxu1 %v6952_v31 }
 0xe49   :  { %3166 = vmatprep.subr.bf16.mxu0 %v7244_v55  ;;  %4508 = vmatprep.subr.bf16.mxu1 %v7828_v29 }
 0xe4a   :  { %3196 = vmatprep.mubr.bf16.mxu0 %v7829_v20  ;;  %4522 = vmatprep.mubr.msk.bf16.mxu1 %vm5261_vm0, %v7828_v29 }
 0xe4c   :  { %3167 = vmatpush1.bf16.msra.mxu0 %v7251_v62  ;;  %4509 = vmatpush3.bf16.msra.mxu1 %v6961_v51 }
 0xe4d   :  { %3168 = vmatprep.subr.bf16.mxu0 %v7255_v58  ;;  %4510 = vmatprep.subr.bf16.mxu1 %v7828_v29 }
 0xe50   :  { %3169 = vmatpush1.bf16.msra.mxu0 %v7259_v0  ;;  %4511 = vmatpush3.bf16.msra.mxu1 %v6967_v63 }
 0xe51   :  { %3170 = vmatprep.subr.bf16.mxu0 %v7263_v45  ;;  %4512 = vmatprep.subr.bf16.mxu1 %v7828_v29 }
 0xe54   :  { %3171 = vmatpush1.bf16.msra.mxu0 %v6881_v50  ;;  %4513 = vmatpush3.bf16.msra.mxu1 %v6973_v42  ;;  %v5074_v50 = vld [vmem:[#allocation11 + $0x4] ss:$12 sps:$4 sm:$0xff]  }
 0xe55   :  { %3172 = vmatprep.subr.bf16.mxu0 %v6885_v24  ;;  %4514 = vmatprep.subr.bf16.mxu1 %v7828_v29 }
 0xe58   :  { %3173 = vmatpush1.bf16.msra.mxu0 %v6889_v3  ;;  %4515 = vmatpush3.bf16.msra.mxu1 %v6979_v47 }
 0xe59   :  { %3174 = vmatprep.subr.bf16.mxu0 %v6893_v35  ;;  %4516 = vmatprep.subr.bf16.mxu1 %v7828_v29  ;;  %v7994_v35 = vld [vmem:[#allocation26_spill] sm:$0xff] }
 0xe5c   :  { %3175 = vmatpush1.bf16.msra.mxu0 %v6897_v32  ;;  %4517 = vmatpush3.bf16.msra.mxu1 %v6985_v60 }
 0xe5d   :  { %3176 = vmatprep.subr.bf16.mxu0 %v6901_v59  ;;  %4518 = vmatprep.subr.bf16.mxu1 %v7828_v29 }
 0xe60   :  { %3177 = vmatpush1.bf16.msra.mxu0 %v6905_v39  ;;  %4519 = vmatpush3.bf16.msra.mxu1 %v6991_v43 }
 0xe61   :  { %3178 = vmatprep.subr.bf16.mxu0 %v6909_v23  ;;  %4520 = vmatprep.subr.bf16.mxu1 %v7828_v29  ;;  %v7996_v23 = vld [vmem:[#allocation23_spill] sm:$0xff] }
 0xe62   :  { %v7997_v9 = vsel %vm5595_vm2, %v7995_v40, %v7996_v23 }
 0xe64   :  { %3179 = vmatpush1.bf16.msra.mxu0 %v6913_v25  ;;  %4521 = vmatpush3.bf16.msra.mxu1 %v6997_v36 }
 0xe65   :  { %3317 = vmatprep.subr.bf16.mxu0 %v5074_v50  ;;  %4526 = vmatprep.subr.bf16.mxu1 %v7828_v29 }
 0xf1a   :  { %v3045_v24 = vpop.f32.mrb[92].mxu0  ;;  %v3088_v3 = vpop.f32.mrb[108].mxu1 }
 0xf1b   :  { %v3095_v32 = vadd.f32 %v3045_v24, %v7994_v35  ;;  %v3047_v59 = vpop.f32.mrb[93].mxu0  ;;  %v4504_v39 = vpop.f32.mrb[109].mxu1  ;;  %v3123_v57 = vadd.f32 %v7151_v5, %v3088_v3  ;;  %v8006_v3 = vld [vmem:[#allocation67_spill] sm:$0xff] }
 0xf1c   :  { %v3109_v4 = vadd.f32 %v3047_v59, %v7997_v9  ;;  %v3049_v18 = vpop.f32.mrb[94].mxu0  ;;  %v3091_v25 = vpop.f32.mrb[110].mxu1  ;;  %v8003_v59 = vld [vmem:[#allocation64_spill] sm:$0xff]  ;;  %v8005_v9 = vld [vmem:[#allocation97_spill] sm:$0xff] }
 0xf1d   :  { %v3965_v52 = vmul.f32 -1.442695, %v3095_v32  ;;  %v3096_v14 = vadd.f32 %v3049_v18, %v7998_v61  ;;  %v3051_v8 = vpop.f32.mrb[95].mxu0  ;;  %v4505_v19 = vpop.f32.mrb[111].mxu1  ;;  %v3124_v24 = vadd.f32 %v7151_v5, %v3091_v25  ;;  %v8002_v32 = vld [vmem:[#allocation95_spill] sm:$0xff] }
 0xf1e   :  { %v3110_v13 = vadd.f32 %v3051_v8, %v8001_v21  ;;  %v3967_v41 = vmul.f32 -1.442695, %v3109_v4  ;;  %v8004_v39 = vsel %vm5931_vm3, %v8002_v32, %v8003_v59  ;;  %v8007_v4 = vsel %vm5931_vm3, %v8005_v9, %v8006_v3 }
 0xf1f   :  { %4958 = vpow2.f32 %v3965_v52  ;;  %v3966_v28 = vmul.f32 -1.442695, %v3096_v14 }
 0xf20   :  { %v3968_v1 = vmul.f32 -1.442695, %v3110_v13 }
 0xf21   :  { %4960 = vpow2.f32 %v3966_v28 }
 0xf22   :  { %4962 = vpow2.f32 %v3967_v41 }
 0xf23   :  { %4964 = vpow2.f32 %v3968_v1 }
 0xf29   :  { %v4959_v7 = vpop.eup %4958 }
 0xf2a   :  { %v3103_v44 = vadd.f32 1.0, %v4959_v7 }
 0xf2b   :  { %v4961_v30 = vpop.eup %4960 }
 0xf2c   :  { %4966 = vrcp.f32 %v3103_v44  ;;  %v3104_v34 = vadd.f32 1.0, %v4961_v30  ;;  %v4963_v17 = vpop.eup %4962  ;;  %v8009_v30 = vld [vmem:[#allocation36_spill] sm:$0xff] }
 0xf2d   :  { %v4965_v22 = vpop.eup %4964  ;;  %v3117_v12 = vadd.f32 1.0, %v4963_v17 }
 0xf2e   :  { %4968 = vrcp.f32 %v3104_v34  ;;  %v3118_v46 = vadd.f32 1.0, %v4965_v22  ;;  %v8010_v34 = vld [vmem:[#allocation32_spill] sm:$0xff] }
 0xf2f   :  { %4970 = vrcp.f32 %v3117_v12  ;;  %v8011_v17 = vsel %vm5595_vm2, %v8009_v30, %v8010_v34 }
 0xf30   :  { %4972 = vrcp.f32 %v3118_v46 }
 0xf36   :  { %v4967_v27 = vpop.eup %4966 }
 0xf37   :  { %v3125_v50 = vmul.f32 %v4967_v27, %v3123_v57 }
 0xf38   :  { %v4969_v35 = vpop.eup %4968 }
 0xf39   :  { %v3127_v40 = vadd.f32 %v3125_v50, %v8004_v39  ;;  %v3126_v23 = vmul.f32 %v4969_v35, %v3124_v24  ;;  %v4971_v52 = vpop.eup %4970  ;;  %v8014_v24 = vld [vmem:[#allocation34_spill] sm:$0xff] }
 0xf3a   :  { %v4973_v61 = vpop.eup %4972  ;;  %v3131_v25 = vsub.f32 1.0, %v4971_v52  ;;  %v3135_v8 = vmul.f32 %v4971_v52, %v7234_v33 }
 0xf3b   :  { %4974 = vtanh.f32 %v3127_v40  ;;  %v3128_v18 = vadd.f32 %v3126_v23, %v8007_v4  ;;  %v3132_v19 = vsub.f32 1.0, %v4973_v61  ;;  %v3136_v21 = vmul.f32 %v4973_v61, %v7236_v26 }
 0xf3d   :  { %4976 = vtanh.f32 %v3128_v18 }
 0xf45   :  { %v4975_v14 = vpop.eup %4974 }
 0xf46   :  { %v3133_v48 = vmul.f32 %v4975_v14, %v3131_v25 }
 0xf47   :  { %v4977_v37 = vpop.eup %4976 }
 0xf48   :  { %v3134_v13 = vmul.f32 %v4977_v37, %v3132_v19  ;;  %v7312_v28 = vadd.f32 %v3135_v8, %v3133_v48 }
 0xf4a   :  { %v7314_v41 = vadd.f32 %v3136_v21, %v3134_v13  ;;  %v8016_v21 = vld [vmem:[#allocation101_spill] sm:$0xff] }
 0xf4b   :  { %v8017_v13 = vld [vmem:[#allocation61_spill] sm:$0xff] }
 0xf4c   :  { %v3163_v1 = vpack.c.bf16 %v7314_v41, %v7312_v28 }
 0xf4e   :  { %3197 = vmatmul.mubr.bf16.vlgmr.msra.gmra.mrb[96].mxu0 %v3163_v1  ;;  %4523 = vmatmul.mubr.bf16.vlgmr.msra.gmra.mrb[112].mxu1 %v3163_v1  ;;  %v8018_v1 = vsel %vm5931_vm3, %v8016_v21, %v8017_v13 }
 0xf4f   :  { %3318 = vmatpush1.bf16.msra.mxu0 %v7240_v56  ;;  %4527 = vmatpush3.bf16.msra.mxu1 %v6952_v31  ;;  %v5076_v31 = vld [vmem:[#allocation11 + $0x64] ss:$12 sps:$4 sm:$0xff]   ;;  %v5078_v56 = vld [vmem:[#allocation11 + $0x7c] ss:$12 sps:$4 sm:$0xff]  }
 0xf50   :  { %3319 = vmatprep.subr.bf16.mxu0 %v7244_v55  ;;  %4528 = vmatprep.subr.bf16.mxu1 %v7828_v29  ;;  %v5080_v55 = vld [vmem:[#allocation11 + $0x94] ss:$12 sps:$4 sm:$0xff]  }
 0xf51   :  { %3349 = vmatprep.mubr.bf16.mxu0 %v7829_v20  ;;  %4542 = vmatprep.mubr.msk.bf16.mxu1 %vm5261_vm0, %v7828_v29  ;;  %v5075_v20 = vld [vmem:[#allocation11 + $0x48] ss:$12 sps:$4 sm:$0xff]  }
 0xf53   :  { %3320 = vmatpush1.bf16.msra.mxu0 %v7251_v62  ;;  %4529 = vmatpush3.bf16.msra.mxu1 %v6961_v51  ;;  %v5077_v51 = vld [vmem:[#allocation11 + $0x60] ss:$12 sps:$4 sm:$0xff]  }
 0xf54   :  { %3321 = vmatprep.subr.bf16.mxu0 %v7255_v58  ;;  %4530 = vmatprep.subr.bf16.mxu1 %v7828_v29  ;;  %v5082_v62 = vld [vmem:[#allocation11 + $0xac] ss:$12 sps:$4 sm:$0xff]  }
 0xf57   :  { %3322 = vmatpush1.bf16.msra.mxu0 %v7259_v0  ;;  %4531 = vmatpush3.bf16.msra.mxu1 %v6967_v63  ;;  %v5079_v63 = vld [vmem:[#allocation11 + $0x78] ss:$12 sps:$4 sm:$0xff]  }
 0xf58   :  { %3323 = vmatprep.subr.bf16.mxu0 %v7263_v45  ;;  %4532 = vmatprep.subr.bf16.mxu1 %v7828_v29  ;;  %v8008_v45 = vld [vmem:[#allocation45_spill] sm:$0xff] }
 0xf5b   :  { %3324 = vmatpush1.bf16.msra.mxu0 %v5075_v20  ;;  %4533 = vmatpush3.bf16.msra.mxu1 %v6973_v42  ;;  %v5081_v42 = vld [vmem:[#allocation11 + $0x90] ss:$12 sps:$4 sm:$0xff]  }
 0xf5c   :  { %3325 = vmatprep.subr.bf16.mxu0 %v5076_v31  ;;  %4534 = vmatprep.subr.bf16.mxu1 %v7828_v29 }
 0xf5f   :  { %3326 = vmatpush1.bf16.msra.mxu0 %v5077_v51  ;;  %4535 = vmatpush3.bf16.msra.mxu1 %v6979_v47  ;;  %v5083_v47 = vld [vmem:[#allocation11 + $0xa8] ss:$12 sps:$4 sm:$0xff]   ;;  %v8019_v51 = vld [vmem:[#allocation104_spill] sm:$0xff] }
 0xf60   :  { %3327 = vmatprep.subr.bf16.mxu0 %v5078_v56  ;;  %4536 = vmatprep.subr.bf16.mxu1 %v7828_v29  ;;  %v8020_v56 = vld [vmem:[#allocation62_spill] sm:$0xff] }
 0xf63   :  { %3328 = vmatpush1.bf16.msra.mxu0 %v5079_v63  ;;  %4537 = vmatpush3.bf16.msra.mxu1 %v6985_v60  ;;  %v8021_v63 = vsel %vm5931_vm3, %v8019_v51, %v8020_v56 }
 0xf64   :  { %3329 = vmatprep.subr.bf16.mxu0 %v5080_v55  ;;  %4538 = vmatprep.subr.bf16.mxu1 %v7828_v29 }
 0xf67   :  { %3330 = vmatpush1.bf16.msra.mxu0 %v5081_v42  ;;  %4539 = vmatpush3.bf16.msra.mxu1 %v6991_v43 }
 0xf68   :  { %3331 = vmatprep.subr.bf16.mxu0 %v5082_v62  ;;  %4540 = vmatprep.subr.bf16.mxu1 %v7828_v29  ;;  %v8012_v29 = vld [vmem:[#allocation46_spill] sm:$0xff] }
 0xf6b   :  { %3332 = vmatpush1.bf16.msra.mxu0 %v5083_v47  ;;  %4541 = vmatpush3.bf16.msra.mxu1 %v6997_v36  ;;  %v8013_v36 = vld [vmem:[#allocation40_spill] sm:$0xff] }
 0xf6c   :  { %v8015_v35 = vsel %vm5595_vm2, %v8013_v36, %v8014_v24  ;;  %v4697_v36 = vld [vmem:[#allocation13 + $0x38] sm:$0xff]  }
0x1021   :  { %v3198_v58 = vpop.f32.mrb[96].mxu0  ;;  %v3241_v0 = vpop.f32.mrb[112].mxu1 }
0x1022   :  { %v3248_v60 = vadd.f32 %v3198_v58, %v8008_v45  ;;  %v3200_v7 = vpop.f32.mrb[97].mxu0  ;;  %v4524_v44 = vpop.f32.mrb[113].mxu1  ;;  %v3276_v25 = vadd.f32 %v7151_v5, %v3241_v0 }
0x1023   :  { %v3262_v43 = vadd.f32 %v3200_v7, %v8011_v17  ;;  %v3202_v22 = vpop.f32.mrb[98].mxu0  ;;  %v3244_v12 = vpop.f32.mrb[114].mxu1 }
0x1024   :  { %v3969_v57 = vmul.f32 -1.442695, %v3248_v60  ;;  %v3249_v46 = vadd.f32 %v3202_v22, %v8012_v29  ;;  %v3204_v27 = vpop.f32.mrb[99].mxu0  ;;  %v4525_v50 = vpop.f32.mrb[115].mxu1  ;;  %v3277_v48 = vadd.f32 %v7151_v5, %v3244_v12  ;;  %v4690_v22 = vld [vmem:[#allocation13] sm:$0xff]   ;;  %v4691_v12 = vld [vmem:[#allocation13 + $0x8] sm:$0xff]  }
0x1025   :  { %v3263_v32 = vadd.f32 %v3204_v27, %v8015_v35  ;;  %v3971_v39 = vmul.f32 -1.442695, %v3262_v43  ;;  %4546 = vmatprep.subr.bf16.mxu0 %v4690_v22  ;;  %v4693_v29 = vld [vmem:[#allocation13 + $0x18] sm:$0xff]   ;;  %v4695_v27 = vld [vmem:[#allocation13 + $0x28] sm:$0xff]   ;;  %v4696_v50 = vld [vmem:[#allocation13 + $0x30] sm:$0xff]  }
0x1026   :  { %4978 = vpow2.f32 %v3969_v57  ;;  %v3970_v59 = vmul.f32 -1.442695, %v3249_v46  ;;  %v4692_v57 = vld [vmem:[#allocation13 + $0x10] sm:$0xff]   ;;  %v4694_v46 = vld [vmem:[#allocation13 + $0x20] sm:$0xff]  }
0x1027   :  { %v3972_v40 = vmul.f32 -1.442695, %v3263_v32  ;;  %v8022_v32 = vld [vmem:[#allocation59_spill] sm:$0xff] }
0x1028   :  { %4980 = vpow2.f32 %v3970_v59 }
0x1029   :  { %4982 = vpow2.f32 %v3971_v39 }
0x102a   :  { %4984 = vpow2.f32 %v3972_v40 }
0x1030   :  { %v4979_v23 = vpop.eup %4978 }
0x1031   :  { %v3256_v9 = vadd.f32 1.0, %v4979_v23  ;;  %v8023_v23 = vld [vmem:[#allocation52_spill] sm:$0xff] }
0x1032   :  { %v4981_v3 = vpop.eup %4980 }
0x1033   :  { %4986 = vrcp.f32 %v3256_v9  ;;  %v3257_v4 = vadd.f32 1.0, %v4981_v3  ;;  %v4983_v18 = vpop.eup %4982  ;;  %v8024_v9 = vld [vmem:[#allocation48_spill] sm:$0xff] }
0x1034   :  { %v4985_v52 = vpop.eup %4984  ;;  %v3270_v61 = vadd.f32 1.0, %v4983_v18  ;;  %v8025_v3 = vsel %vm5595_vm2, %v8023_v23, %v8024_v9 }
0x1035   :  { %4988 = vrcp.f32 %v3257_v4  ;;  %v3271_v14 = vadd.f32 1.0, %v4985_v52 }
0x1036   :  { %4990 = vrcp.f32 %v3270_v61 }
0x1037   :  { %4992 = vrcp.f32 %v3271_v14 }
0x103d   :  { %v4987_v8 = vpop.eup %4986 }
0x103e   :  { %v3278_v19 = vmul.f32 %v4987_v8, %v3276_v25  ;;  %v8026_v25 = vld [vmem:[#allocation60_spill] sm:$0xff] }
0x103f   :  { %v4989_v37 = vpop.eup %4988 }
0x1040   :  { %v3280_v20 = vadd.f32 %v3278_v19, %v8018_v1  ;;  %v3279_v31 = vmul.f32 %v4989_v37, %v3277_v48  ;;  %v4991_v42 = vpop.eup %4990  ;;  %v8027_v48 = vld [vmem:[#allocation55_spill] sm:$0xff]  ;;  %v8028_v37 = vld [vmem:[#allocation50_spill] sm:$0xff] }
0x1041   :  { %v4993_v62 = vpop.eup %4992  ;;  %v3284_v47 = vsub.f32 1.0, %v4991_v42  ;;  %v3288_v0 = vmul.f32 %v4991_v42, %v7312_v28  ;;  %v8029_v21 = vsel %vm5595_vm2, %v8027_v48, %v8028_v37 }
0x1042   :  { %4994 = vtanh.f32 %v3280_v20  ;;  %v3281_v55 = vadd.f32 %v3279_v31, %v8021_v63  ;;  %v3285_v45 = vsub.f32 1.0, %v4993_v62  ;;  %v3289_v44 = vmul.f32 %v4993_v62, %v7314_v41 }
0x1044   :  { %4996 = vtanh.f32 %v3281_v55 }
0x104c   :  { %v4995_v58 = vpop.eup %4994 }
0x104d   :  { %v3286_v60 = vmul.f32 %v4995_v58, %v3284_v47 }
0x104e   :  { %v4997_v7 = vpop.eup %4996 }
0x104f   :  { %v3287_v30 = vmul.f32 %v4997_v7, %v3285_v45  ;;  %v7368_v34 = vadd.f32 %v3288_v0, %v3286_v60 }
0x1051   :  { %v7370_v17 = vadd.f32 %v3289_v44, %v3287_v30  ;;  %v8030_v44 = vld [vmem:[#allocation100_spill] sm:$0xff]  ;;  %v8031_v30 = vld [vmem:[#allocation99_spill] sm:$0xff] }
0x1053   :  { %v3316_v43 = vpack.c.bf16 %v7370_v17, %v7368_v34 }
0x1055   :  { %3350 = vmatmul.mubr.bf16.vlgmr.msra.gmra.mrb[100].mxu0 %v3316_v43  ;;  %4543 = vmatmul.mubr.bf16.vlgmr.msra.gmra.mrb[116].mxu1 %v3316_v43  ;;  %v8032_v43 = vsel %vm5931_vm3, %v8030_v44, %v8031_v30  ;;  %v8047_v44 = vld [vmem:[#allocation56_spill] sm:$0xff] }
0x1056   :  { %4547 = vmatpush3.bf16.msra.mxu0 %v4690_v22  ;;  %v3528_v30 = vsel %vm850_vm1, %v8047_v44, %v7097_v6 }
0x1057   :  { %4548 = vmatprep.subr.bf16.mxu0 %v4691_v12 }
0x105a   :  { %4549 = vmatpush3.bf16.msra.mxu0 %v4691_v12 }
0x105b   :  { %4550 = vmatprep.subr.bf16.mxu0 %v4692_v57 }
0x105e   :  { %4551 = vmatpush3.bf16.msra.mxu0 %v4692_v57  ;;  %v8033_v57 = vld [vmem:[#allocation103_spill] sm:$0xff] }
0x105f   :  { %4552 = vmatprep.subr.bf16.mxu0 %v4693_v29 }
0x1062   :  { %4553 = vmatpush3.bf16.msra.mxu0 %v4693_v29  ;;  %v8034_v29 = vld [vmem:[#allocation102_spill] sm:$0xff] }
0x1063   :  { %4554 = vmatprep.subr.bf16.mxu0 %v4694_v46 }
0x1066   :  { %4555 = vmatpush3.bf16.msra.mxu0 %v4694_v46  ;;  %v8035_v46 = vsel %vm5931_vm3, %v8033_v57, %v8034_v29 }
0x1067   :  { %4556 = vmatprep.subr.bf16.mxu0 %v4695_v27 }
0x106a   :  { %4557 = vmatpush3.bf16.msra.mxu0 %v4695_v27 }
0x106b   :  { %4558 = vmatprep.subr.bf16.mxu0 %v4696_v50 }
0x106e   :  { %4559 = vmatpush3.bf16.msra.mxu0 %v4696_v50 }
0x106f   :  { %4560 = vmatprep.subr.bf16.mxu0 %v4697_v36 }
0x1072   :  { %4561 = vmatpush3.bf16.msra.mxu0 %v4697_v36 }
0x1128   :  { %v3351_v24 = vpop.f32.mrb[100].mxu0  ;;  %v3394_v35 = vpop.f32.mrb[116].mxu1 }
0x1129   :  { %v3401_v59 = vadd.f32 %v3351_v24, %v8022_v32  ;;  %v3353_v39 = vpop.f32.mrb[101].mxu0  ;;  %v4544_v40 = vpop.f32.mrb[117].mxu1  ;;  %v3429_v47 = vadd.f32 %v7151_v5, %v3394_v35 }
0x112a   :  { %v3415_v4 = vadd.f32 %v3353_v39, %v8025_v3  ;;  %v3355_v18 = vpop.f32.mrb[102].mxu0  ;;  %v3397_v52 = vpop.f32.mrb[118].mxu1 }
0x112b   :  { %v3973_v61 = vmul.f32 -1.442695, %v3401_v59  ;;  %v3402_v14 = vadd.f32 %v3355_v18, %v8026_v25  ;;  %v3357_v8 = vpop.f32.mrb[103].mxu0  ;;  %v4545_v19 = vpop.f32.mrb[119].mxu1  ;;  %v3430_v60 = vadd.f32 %v7151_v5, %v3397_v52  ;;  %v3520_v18 = vsel %vm850_vm1, %v8036_v53, %v7370_v17  ;;  %v8038_v52 = vld [vmem:[#allocation41_spill] sm:$0xff] }
0x112c   :  { %v3416_v13 = vadd.f32 %v3357_v8, %v8029_v21  ;;  %v3975_v20 = vmul.f32 -1.442695, %v3415_v4  ;;  %v8039_v25 = vld [vmem:[#allocation105_spill] sm:$0xff]  ;;  %v8040_v8 = vld [vmem:[#allocation106_spill] sm:$0xff] }
0x112d   :  { %4998 = vpow2.f32 %v3973_v61  ;;  %v3974_v1 = vmul.f32 -1.442695, %v3402_v14  ;;  %v3522_v61 = vsel %vm850_vm1, %v8038_v52, %v7314_v41 }
0x112e   :  { %v3976_v31 = vmul.f32 -1.442695, %v3416_v13  ;;  %v8041_v13 = vld [vmem:[#allocation80_spill] sm:$0xff] }
0x112f   :  { %5000 = vpow2.f32 %v3974_v1  ;;  %v3519_v1 = vsel %vm850_vm1, %v8041_v13, %v7368_v34 }
0x1130   :  { %5002 = vpow2.f32 %v3975_v20 }
0x1131   :  { %5004 = vpow2.f32 %v3976_v31  ;;  %v3550_v31 = vpack.c.bf16 %v3520_v18, %v3519_v1 }
0x1137   :  { %v4999_v51 = vpop.eup %4998 }
0x1138   :  { %v3409_v56 = vadd.f32 1.0, %v4999_v51  ;;  %v8042_v51 = vld [vmem:[#allocation37_spill] sm:$0xff] }
0x1139   :  { %v5001_v63 = vpop.eup %5000 }
0x113a   :  { %5006 = vrcp.f32 %v3409_v56  ;;  %v3410_v55 = vadd.f32 1.0, %v5001_v63  ;;  %v5003_v42 = vpop.eup %5002  ;;  %v3521_v56 = vsel %vm850_vm1, %v8042_v51, %v7312_v28 }
0x113b   :  { %v5005_v62 = vpop.eup %5004  ;;  %v3423_v16 = vadd.f32 1.0, %v5003_v42  ;;  %v3551_v63 = vpack.c.bf16 %v3522_v61, %v3521_v56 }
0x113c   :  { %5008 = vrcp.f32 %v3410_v55  ;;  %v3424_v58 = vadd.f32 1.0, %v5005_v62  ;;  %v8043_v55 = vld [vmem:[#allocation29_spill] sm:$0xff]  ;;  %v8044_v62 = vld [vmem:[#allocation42_spill] sm:$0xff] }
0x113d   :  { %5010 = vrcp.f32 %v3423_v16  ;;  %v3524_v42 = vsel %vm850_vm1, %v8043_v55, %v7236_v26  ;;  %v3526_v16 = vsel %vm850_vm1, %v8044_v62, %v7169_v15 }
0x113e   :  { %5012 = vrcp.f32 %v3424_v58 }
0x1144   :  { %v5007_v0 = vpop.eup %5006 }
0x1145   :  { %v3431_v45 = vmul.f32 %v5007_v0, %v3429_v47  ;;  %v8045_v47 = vld [vmem:[#allocation25_spill] sm:$0xff] }
0x1146   :  { %v5009_v7 = vpop.eup %5008  ;;  %v3523_v58 = vsel %vm850_vm1, %v8045_v47, %v7234_v33 }
0x1147   :  { %v3433_v22 = vadd.f32 %v3431_v45, %v8032_v43  ;;  %v3432_v12 = vmul.f32 %v5009_v7, %v3430_v60  ;;  %v5011_v50 = vpop.eup %5010  ;;  %v3552_v0 = vpack.c.bf16 %v3524_v42, %v3523_v58  ;;  %v8046_v45 = vld [vmem:[#allocation38_spill] sm:$0xff]  ;;  %v8048_v43 = vld [vmem:[#allocation92_spill] sm:$0xff] }
0x1148   :  { %v5013_v36 = vpop.eup %5012  ;;  %v3437_v5 = vsub.f32 1.0, %v5011_v50  ;;  %v3441_v59 = vmul.f32 %v5011_v50, %v7368_v34  ;;  %v3525_v60 = vsel %vm850_vm1, %v8046_v45, %v7167_v49 }
0x1149   :  { %5014 = vtanh.f32 %v3433_v22  ;;  %v3434_v27 = vadd.f32 %v3432_v12, %v8035_v46  ;;  %v3438_v35 = vsub.f32 1.0, %v5013_v36  ;;  %v3442_v23 = vmul.f32 %v5013_v36, %v7370_v17  ;;  %v8049_v12 = vld [vmem:[#allocation53_spill] sm:$0xff]  ;;  %v8051_v36 = vld [vmem:[#allocation94_spill] sm:$0xff] }
0x114a   :  { %v3553_v7 = vpack.c.bf16 %v3526_v16, %v3525_v60  ;;  %v3530_v22 = vsel %vm850_vm1, %v8048_v43, %v7030_v54  ;;  %v3527_v57 = vsel %vm850_vm1, %v8049_v12, %v7095_v38  ;;  %v8050_v46 = vld [vmem:[#allocation69_spill] sm:$0xff] }
0x114b   :  { %5016 = vtanh.f32 %v3434_v27  ;;  %v3554_v29 = vpack.c.bf16 %v3528_v30, %v3527_v57  ;;  %v3529_v27 = vsel %vm850_vm1, %v8050_v46, %v7028_v11 }
0x114c   :  { %v3555_v50 = vpack.c.bf16 %v3530_v22, %v3529_v27 }
0x1153   :  { %v5015_v24 = vpop.eup %5014 }
0x1154   :  { %v3439_v32 = vmul.f32 %v5015_v24, %v3437_v5  ;;  %v3532_v5 = vsel %vm850_vm1, %v8051_v36, %v6947_v2  ;;  %v3534_v24 = vsel %vm850_vm1, %v6947_v2, %v8051_v36  ;;  %v3538_v2 = vsel %vm850_vm1, %v7097_v6, %v8047_v44 }
0x1155   :  { %v5017_v39 = vpop.eup %5016  ;;  %v3542_v6 = vsel %vm850_vm1, %v7236_v26, %v8043_v55  ;;  %v3546_v26 = vsel %vm850_vm1, %v7370_v17, %v8036_v53 }
0x1156   :  { %v3440_v40 = vmul.f32 %v5017_v39, %v3438_v35  ;;  %v3443_v9 = vadd.f32 %v3441_v59, %v3439_v32  ;;  %v8052_v35 = vld [vmem:[#allocation73_spill] sm:$0xff] }
0x1157   :  { %v3531_v32 = vsel %vm850_vm1, %v8052_v35, %v6945_v10  ;;  %v3533_v39 = vsel %vm850_vm1, %v6945_v10, %v8052_v35  ;;  %v3537_v10 = vsel %vm850_vm1, %v7095_v38, %v8049_v12  ;;  %v3541_v38 = vsel %vm850_vm1, %v7234_v33, %v8045_v47 }
0x1158   :  { %v3444_v3 = vadd.f32 %v3442_v23, %v3440_v40  ;;  %3450 = vst [vmem:[#allocation15] sm:$0xff] %v3443_v9  ;;  %v3517_v14 = vsel %vm850_vm1, %v8039_v25, %v3443_v9  ;;  %v3547_v48 = vsel %vm850_vm1, %v3443_v9, %v8039_v25  ;;  %v3556_v59 = vpack.c.bf16 %v3532_v5, %v3531_v32 }
0x1159   :  { %v3557_v40 = vpack.c.bf16 %v3534_v24, %v3533_v39  ;;  %v3536_v23 = vsel %vm850_vm1, %v7030_v54, %v8048_v43  ;;  %v3535_v9 = vsel %vm850_vm1, %v7028_v11, %v8050_v46  ;;  %v3559_v18 = vpack.c.bf16 %v3538_v2, %v3537_v10 }
0x115a   :  { %v3518_v19 = vsel %vm850_vm1, %v8040_v8, %v3444_v3  ;;  %3451 = vst [vmem:[#allocation15 + $0x8] sm:$0xff] %v3444_v3  ;;  %v3548_v37 = vsel %vm850_vm1, %v3444_v3, %v8040_v8  ;;  %v3558_v3 = vpack.c.bf16 %v3536_v23, %v3535_v9  ;;  %v3540_v54 = vsel %vm850_vm1, %v7169_v15, %v8044_v62 }
0x115b   :  { %v3549_v21 = vpack.c.bf16 %v3518_v19, %v3517_v14  ;;  %v3564_v20 = vpack.c.bf16 %v3548_v37, %v3547_v48  ;;  %v3539_v11 = vsel %vm850_vm1, %v7167_v49, %v8046_v45  ;;  %v3561_v25 = vpack.c.bf16 %v3542_v6, %v3541_v38 }
0x115c   :  { %v3560_v61 = vpack.c.bf16 %v3540_v54, %v3539_v11  ;;  %v3544_v15 = vsel %vm850_vm1, %v7314_v41, %v8038_v52  ;;  %v3543_v49 = vsel %vm850_vm1, %v7312_v28, %v8042_v51  ;;  %v3545_v33 = vsel %vm850_vm1, %v7368_v34, %v8041_v13 }
0x115d   :  { %4562 = vmatprep.mubr.bf16.mxu0 %v3549_v21  ;;  %v3562_v14 = vpack.c.bf16 %v3544_v15, %v3543_v49  ;;  %v3563_v8 = vpack.c.bf16 %v3546_v26, %v3545_v33 }
0x115e   :  { %4563 = vmatmul.mubr.bf16.vlgmr.msra.gmra.mrb[104].mxu0 %v3550_v31 }
0x115f   :  { %4566 = vmatprep.mubr.bf16.mxu0 %v3551_v63 }
0x1166   :  { %4567 = vmatmul.mubr.bf16.gmra.mrb[108].mxu0 %v3552_v0 }
0x1167   :  { %4570 = vmatprep.mubr.bf16.mxu0 %v3553_v7 }
0x116e   :  { %4571 = vmatmul.mubr.bf16.gmra.mrb[112].mxu0 %v3554_v29 }
0x116f   :  { %4574 = vmatprep.mubr.bf16.mxu0 %v3555_v50 }
0x1176   :  { %4575 = vmatmul.mubr.bf16.gmra.mrb[116].mxu0 %v3556_v59 }
0x1177   :  { %4578 = vmatprep.mubr.bf16.mxu0 %v3557_v40 }
0x117e   :  { %4579 = vmatmul.mubr.bf16.gmra.mrb[120].mxu0 %v3558_v3 }
0x117f   :  { %4582 = vmatprep.mubr.bf16.mxu0 %v3559_v18 }
0x1186   :  { %4583 = vmatmul.mubr.bf16.gmra.mrb[124].mxu0 %v3560_v61 }
0x1187   :  { %4586 = vmatprep.mubr.bf16.mxu0 %v3561_v25 }
0x118e   :  { %4587 = vmatmul.mubr.bf16.gmra.mrb[128].mxu0 %v3562_v14 }
0x118f   :  { %4590 = vmatprep.mubr.bf16.mxu0 %v3563_v8 }
0x1196   :  { %4591 = vmatmul.mubr.bf16.gmra.mrb[132].mxu0 %v3564_v20 }
0x1197   :  { %5205 = shalt.err (!%p5202_p2)
}
0x1198   :  { %s5206_s22 = scalar_lea.hbm %s7600_s9, 256 }
0x1199   :  { %p5207_p3 = scmp.ne.s32.totalorder %s7600_s9, %s5206_s22  ;;  %p5210_p4 = scmp.lt.u32.totalorder %s5206_s22, %s7600_s9 }
0x119b   :  { %p5212_p5 = pnand %p5210_p4, %p5207_p3 }
0x119d   :  { %5215 = shalt.err (!%p5212_p5)
}
0x119e   :  { %3852 = dma.vmem_to_hbm [thread:$0]  %s3847_s18, 256, %s7600_s9, [#allocation16], %s5249_s19, %s5249_s19, %s5250_s20  }
0x119f   :  { %v7542_v28 = vld [vmem:[%s7598_s7] ss:$0 sm:$0xff]  ;;  %s5263_s7 = smov [#allocation14]  }
0x11a0   :  { %s3834_s9 = sshll.u32 %s5263_s7, 4  ;;  %s3835_s9 = int_to_ptr.vmem [resolvable:$true] %s3834_s9 }
0x11a1   :  { %s5216_s2 = scalar_lea.vmem %s3835_s9, 4096  ;;  %p5221_p7 = scmp.lt.s32.totalorder %s3835_s9, %s3835_s9 }
0x11a2   :  { %p5217_p6 = scmp.ne.s32.totalorder %s3835_s9, %s5216_s2  ;;  %p5222_p8 = scmp.lt.s32.totalorder %s5216_s2, %s5216_s2 }
0x11a4   :  { %p5223_p9 = por %p5222_p8, %p5221_p7 }
0x11a6   :  { %p5224_p10 = pnand %p5223_p9, %p5217_p6 }
0x1231   :  { %v4564_v41 = vpop.f32.mrb[104].mxu0 }
0x1232   :  { %v3679_v34 = vadd.f32 %v4564_v41, %v7542_v28  ;;  %v3670_v17 = vpop.f32.mrb[105].mxu0 }
0x1233   :  { %v3671_v53 = vadd.f32 %v7542_v28, %v3670_v17  ;;  %v4565_v4 = vpop.f32.mrb[106].mxu0 }
0x1234   :  { %3799 = vst [vmem:[#allocation14 + $0x10] sm:$0xff] %v3679_v34  ;;  %v3682_v52 = vadd.f32 %v4565_v4, %v7542_v28  ;;  %v3673_v19 = vpop.f32.mrb[107].mxu0 }
0x1235   :  { %3797 = vst [vmem:[#allocation14] sm:$0xff] %v3671_v53  ;;  %v3674_v48 = vadd.f32 %v7542_v28, %v3673_v19 }
0x1236   :  { %3800 = vst [vmem:[#allocation14 + $0x18] sm:$0xff] %v3682_v52 }
0x1237   :  { %3798 = vst [vmem:[#allocation14 + $0x8] sm:$0xff] %v3674_v48 }
0x1239   :  { %v4568_v37 = vpop.f32.mrb[108].mxu0 }
0x123a   :  { %v3695_v21 = vadd.f32 %v4568_v37, %v7542_v28  ;;  %v3686_v13 = vpop.f32.mrb[109].mxu0 }
0x123b   :  { %v3687_v1 = vadd.f32 %v7542_v28, %v3686_v13  ;;  %v4569_v20 = vpop.f32.mrb[110].mxu0 }
0x123c   :  { %3803 = vst [vmem:[#allocation14 + $0x30] sm:$0xff] %v3695_v21  ;;  %v3698_v31 = vadd.f32 %v4569_v20, %v7542_v28  ;;  %v3689_v51 = vpop.f32.mrb[111].mxu0 }
0x123d   :  { %3801 = vst [vmem:[#allocation14 + $0x20] sm:$0xff] %v3687_v1  ;;  %v3690_v56 = vadd.f32 %v7542_v28, %v3689_v51 }
0x123e   :  { %3804 = vst [vmem:[#allocation14 + $0x38] sm:$0xff] %v3698_v31 }
0x123f   :  { %3802 = vst [vmem:[#allocation14 + $0x28] sm:$0xff] %v3690_v56 }
0x1241   :  { %v4572_v63 = vpop.f32.mrb[112].mxu0 }
0x1242   :  { %v3711_v55 = vadd.f32 %v4572_v63, %v7542_v28  ;;  %v3702_v42 = vpop.f32.mrb[113].mxu0 }
0x1243   :  { %v3703_v62 = vadd.f32 %v7542_v28, %v3702_v42  ;;  %v4573_v16 = vpop.f32.mrb[114].mxu0 }
0x1244   :  { %3807 = vst [vmem:[#allocation14 + $0x50] sm:$0xff] %v3711_v55  ;;  %v3714_v47 = vadd.f32 %v4573_v16, %v7542_v28  ;;  %v3705_v58 = vpop.f32.mrb[115].mxu0 }
0x1245   :  { %3805 = vst [vmem:[#allocation14 + $0x40] sm:$0xff] %v3703_v62  ;;  %v3706_v0 = vadd.f32 %v7542_v28, %v3705_v58 }
0x1246   :  { %3808 = vst [vmem:[#allocation14 + $0x58] sm:$0xff] %v3714_v47 }
0x1247   :  { %3806 = vst [vmem:[#allocation14 + $0x48] sm:$0xff] %v3706_v0 }
0x1249   :  { %v4576_v45 = vpop.f32.mrb[116].mxu0 }
0x124a   :  { %v3727_v60 = vadd.f32 %v4576_v45, %v7542_v28  ;;  %v3718_v7 = vpop.f32.mrb[117].mxu0 }
0x124b   :  { %v3719_v44 = vadd.f32 %v7542_v28, %v3718_v7  ;;  %v4577_v30 = vpop.f32.mrb[118].mxu0 }
0x124c   :  { %3811 = vst [vmem:[#allocation14 + $0x70] sm:$0xff] %v3727_v60  ;;  %v3730_v43 = vadd.f32 %v4577_v30, %v7542_v28  ;;  %v3721_v22 = vpop.f32.mrb[119].mxu0 }
0x124d   :  { %3809 = vst [vmem:[#allocation14 + $0x60] sm:$0xff] %v3719_v44  ;;  %v3722_v12 = vadd.f32 %v7542_v28, %v3721_v22 }
0x124e   :  { %3812 = vst [vmem:[#allocation14 + $0x78] sm:$0xff] %v3730_v43 }
0x124f   :  { %3810 = vst [vmem:[#allocation14 + $0x68] sm:$0xff] %v3722_v12 }
0x1251   :  { %v4580_v57 = vpop.f32.mrb[120].mxu0 }
0x1252   :  { %v3743_v29 = vadd.f32 %v4580_v57, %v7542_v28  ;;  %v3734_v46 = vpop.f32.mrb[121].mxu0 }
0x1253   :  { %v3735_v27 = vadd.f32 %v7542_v28, %v3734_v46  ;;  %v4581_v50 = vpop.f32.mrb[122].mxu0 }
0x1254   :  { %3815 = vst [vmem:[#allocation14 + $0x90] sm:$0xff] %v3743_v29  ;;  %v3746_v36 = vadd.f32 %v4581_v50, %v7542_v28  ;;  %v3737_v5 = vpop.f32.mrb[123].mxu0 }
0x1255   :  { %3813 = vst [vmem:[#allocation14 + $0x80] sm:$0xff] %v3735_v27  ;;  %v3738_v24 = vadd.f32 %v7542_v28, %v3737_v5 }
0x1256   :  { %3816 = vst [vmem:[#allocation14 + $0x98] sm:$0xff] %v3746_v36 }
0x1257   :  { %3814 = vst [vmem:[#allocation14 + $0x88] sm:$0xff] %v3738_v24 }
0x1259   :  { %v4584_v35 = vpop.f32.mrb[124].mxu0 }
0x125a   :  { %v3759_v32 = vadd.f32 %v4584_v35, %v7542_v28  ;;  %v3750_v59 = vpop.f32.mrb[125].mxu0 }
0x125b   :  { %v3751_v39 = vadd.f32 %v7542_v28, %v3750_v59  ;;  %v4585_v40 = vpop.f32.mrb[126].mxu0 }
0x125c   :  { %3819 = vst [vmem:[#allocation14 + $0xb0] sm:$0xff] %v3759_v32  ;;  %v3762_v23 = vadd.f32 %v4585_v40, %v7542_v28  ;;  %v3753_v2 = vpop.f32.mrb[127].mxu0 }
0x125d   :  { %3817 = vst [vmem:[#allocation14 + $0xa0] sm:$0xff] %v3751_v39  ;;  %v3754_v9 = vadd.f32 %v7542_v28, %v3753_v2 }
0x125e   :  { %3820 = vst [vmem:[#allocation14 + $0xb8] sm:$0xff] %v3762_v23 }
0x125f   :  { %3818 = vst [vmem:[#allocation14 + $0xa8] sm:$0xff] %v3754_v9 }
0x1261   :  { %v4588_v3 = vpop.f32.mrb[128].mxu0 }
0x1262   :  { %v3775_v10 = vadd.f32 %v4588_v3, %v7542_v28  ;;  %v3766_v18 = vpop.f32.mrb[129].mxu0 }
0x1263   :  { %v3767_v54 = vadd.f32 %v7542_v28, %v3766_v18  ;;  %v4589_v6 = vpop.f32.mrb[130].mxu0 }
0x1264   :  { %3823 = vst [vmem:[#allocation14 + $0xd0] sm:$0xff] %v3775_v10  ;;  %v3778_v11 = vadd.f32 %v4589_v6, %v7542_v28  ;;  %v3769_v61 = vpop.f32.mrb[131].mxu0 }
0x1265   :  { %3821 = vst [vmem:[#allocation14 + $0xc0] sm:$0xff] %v3767_v54  ;;  %v3770_v38 = vadd.f32 %v7542_v28, %v3769_v61 }
0x1266   :  { %3824 = vst [vmem:[#allocation14 + $0xd8] sm:$0xff] %v3778_v11 }
0x1267   :  { %3822 = vst [vmem:[#allocation14 + $0xc8] sm:$0xff] %v3770_v38 }
0x1269   :  { %v4592_v25 = vpop.f32.mrb[132].mxu0 }
0x126a   :  { %v3791_v15 = vadd.f32 %v4592_v25, %v7542_v28  ;;  %v3782_v26 = vpop.f32.mrb[133].mxu0 }
0x126b   :  { %v3783_v49 = vadd.f32 %v7542_v28, %v3782_v26  ;;  %v4593_v14 = vpop.f32.mrb[134].mxu0 }
0x126c   :  { %3827 = vst [vmem:[#allocation14 + $0xf0] sm:$0xff] %v3791_v15  ;;  %v3794_v33 = vadd.f32 %v4593_v14, %v7542_v28  ;;  %v3785_v8 = vpop.f32.mrb[135].mxu0 }
0x126d   :  { %3825 = vst [vmem:[#allocation14 + $0xe0] sm:$0xff] %v3783_v49  ;;  %v3786_v41 = vadd.f32 %v7542_v28, %v3785_v8 }
0x126e   :  { %3828 = vst [vmem:[#allocation14 + $0xf8] sm:$0xff] %v3794_v33 }
0x126f   :  { %3826 = vst [vmem:[#allocation14 + $0xe8] sm:$0xff] %v3786_v41 }
0x1270   :  { %5227 = shalt.err (!%p5224_p10)
}
0x1271   :  { %s5228_s30 = scalar_lea.hbm %s7599_s8, 4096 }
0x1272   :  { %p5229_p11 = scmp.ne.s32.totalorder %s7599_s8, %s5228_s30  ;;  %p5232_p12 = scmp.lt.u32.totalorder %s5228_s30, %s7599_s8 }
0x1274   :  { %p5234_p13 = pnand %p5232_p12, %p5229_p11 }
0x1276   :  { %5237 = shalt.err (!%p5234_p13)
}
0x1277   :  { %3840 = dma.vmem_to_hbm [thread:$0]  %s3835_s9, 4096, %s7599_s8, [#allocation7], %s5249_s19, %s5249_s19, %s5250_s20  }
0x1278   :  { %5244 = dma.done.wait [#allocation7], 4096  }
0x1279   :  { %5245 = vsyncadd [#allocation7], 4294963200 }
0x127a   :  { %5246 = dma.done.wait [#allocation16], 256  }
0x127b   :  { %5247 = vsyncadd [#allocation16], 4294967040 }
0x127c   :  { %3859 = vsyncpa [#allocation6], 1 }
0x127d   :  { %3860 = vsyncpa [#allocation9], 1 }
0x127e   :  { %3861 = vsyncpa [#allocation12], 1 }
0x127f   :  { %3862 = vsyncpa [#allocation7], 1 }
0x1280   :  { %3863 = vsyncpa [#allocation16], 1 }

</bundles_post_ra>
